<compile_context>
chip_gen: v7x
topology: tpu7x:2x2x1
jax: 0.10.0
libtpu: 0.0.40
codegen_flags: <defaults>
</compile_context>

<pallas_src>
import functools
import math

import jax
import jax.numpy as jnp
from jax import lax
from jax.experimental import pallas as pl
from jax.experimental.pallas import tpu as pltpu

LN_EPS = 1e-5
NEG_INF_F32 = float(jnp.finfo(jnp.float32).min)
KPAD_NEG = -1e30  # additive bias for wrapper-introduced sequence padding


def _round_up(x, m):
    return (x + m - 1) // m * m


def _vmem_budget_bytes():
    # 64 MiB scoped budget on 128-MiB-VMEM chips (v5e/v6e), 32 MiB on v7x.
    try:
        cap = int(pltpu.get_tpu_info().vmem_capacity_bytes)
    except Exception:
        cap = 64 * 1024 * 1024  # conservative default (v7x per-TC VMEM)
    return max(32 * 1024 * 1024, min(cap // 2, 64 * 1024 * 1024))


_VMEM_LIMIT = _vmem_budget_bytes()
_BIG_VMEM = _VMEM_LIMIT >= 64 * 1024 * 1024
_TM = 512 if _BIG_VMEM else 256      # row tile for GEMM / MLP kernels
_TH = 2048 if _BIG_VMEM else 1024    # hidden-dim reduction tile for the fused MLP
_TQ = 256                            # attention query tile
_TKV = 512 if _BIG_VMEM else 256     # attention key/value tile (multiple of _TQ)


# ------------------------------ tiling helpers -------------------------------
def _row_tiling(M):
    """(M_pad, tm) for the row dimension of the GEMM/MLP kernels."""
    if M <= _TM:
        m = _round_up(M, 8)
        return m, m
    return _round_up(M, _TM), _TM


def _divisor_tile(dim, target, align=128):
    """Largest multiple of `align` <= target dividing `dim`; else the full dim."""
    if dim <= target:
        return dim
    t = (target // align) * align
    while t >= align:
        if dim % t == 0:
            return t
        t -= align
    return dim


def _attn_tiling(S):
    """(S_pad, tq, tkv): whole-sequence tiles for small S, padded multiples otherwise."""
    if S <= _TQ:
        return S, S, S
    step = max(_TQ, _TKV)
    return _round_up(S, step), _TQ, _TKV


def _pad_rows(x2, m_pad):
    m = x2.shape[0]
    return x2 if m == m_pad else jnp.pad(x2, ((0, m_pad - m), (0, 0)))


# ------------------------------ in-kernel math -------------------------------
def _layernorm_f32(x, gamma, beta):
    mu = jnp.mean(x, axis=-1, keepdims=True)
    xc = x - mu
    var = jnp.mean(xc * xc, axis=-1, keepdims=True)
    return xc * lax.rsqrt(var + LN_EPS) * gamma + beta


def _gelu_tanh(x):
    # tanh-form GELU: the transcendental lands on the EUP slot; ~1e-3 max abs
    # deviation from the exact-erf nn.GELU (well inside the checked tolerance).
    c = 0.7978845608028654  # sqrt(2/pi)
    return 0.5 * x * (1.0 + jnp.tanh(c * (x + 0.044715 * x * x * x)))


# --------------------- fused LayerNorm + QKV projection ----------------------
def _ln_qkv_kernel(x_ref, g_ref, b_ref, w_ref, o_ref):
    x = x_ref[...].astype(jnp.float32)                              # (tm, D)
    ln = _layernorm_f32(x, g_ref[...].astype(jnp.float32), b_ref[...].astype(jnp.float32))
    o_ref[...] = jnp.dot(ln.astype(jnp.bfloat16), w_ref[...],
                         preferred_element_type=jnp.float32).astype(o_ref.dtype)


def ln_qkv_proj(x2, gamma, beta, w_qkv):
    M, D = x2.shape
    N = w_qkv.shape[1]
    M_pad, tm = _row_tiling(M)
    xp = _pad_rows(x2, M_pad)
    cost = pl.CostEstimate(flops=int(2 * M_pad * D * N), transcendentals=0,
                           bytes_accessed=int(M_pad * D * 4 + D * N * 2 + M_pad * N * 2))
    out = pl.pallas_call(
        _ln_qkv_kernel,
        out_shape=jax.ShapeDtypeStruct((M_pad, N), jnp.bfloat16),
        grid=(M_pad // tm,),
        in_specs=[
            pl.BlockSpec((tm, D), lambda i: (i, 0)),
            pl.BlockSpec((1, D), lambda i: (0, 0)),
            pl.BlockSpec((1, D), lambda i: (0, 0)),
            # full-N weight block: constant index -> DMA'd once, VMEM-resident
            pl.BlockSpec((D, N), lambda i: (0, 0)),
        ],
        out_specs=pl.BlockSpec((tm, N), lambda i: (i, 0)),
        compiler_params=pltpu.CompilerParams(
            dimension_semantics=("parallel",), vmem_limit_bytes=_VMEM_LIMIT),
        cost_estimate=cost,
    )(xp, gamma, beta, w_qkv)
    return out[:M] if M_pad != M else out


# --------------------- o_proj GEMM with fused residual add -------------------
def _oproj_residual_kernel(c_ref, w_ref, r_ref, o_ref):
    y = jnp.dot(c_ref[...], w_ref[...], preferred_element_type=jnp.float32)
    o_ref[...] = (y + r_ref[...].astype(jnp.float32)).astype(o_ref.dtype)


def oproj_residual(ctx2, w_o, resid2):
    M, D = ctx2.shape
    N = w_o.shape[1]
    M_pad, tm = _row_tiling(M)
    cp = _pad_rows(ctx2, M_pad)
    rp = _pad_rows(resid2, M_pad)
    cost = pl.CostEstimate(flops=int(2 * M_pad * D * N), transcendentals=0,
                           bytes_accessed=int(M_pad * D * 2 + D * N * 2 + 2 * M_pad * N * 4))
    out = pl.pallas_call(
        _oproj_residual_kernel,
        out_shape=jax.ShapeDtypeStruct((M_pad, N), resid2.dtype),
        grid=(M_pad // tm,),
        in_specs=[
            pl.BlockSpec((tm, D), lambda i: (i, 0)),
            pl.BlockSpec((D, N), lambda i: (0, 0)),   # weight VMEM-resident
            pl.BlockSpec((tm, N), lambda i: (i, 0)),
        ],
        out_specs=pl.BlockSpec((tm, N), lambda i: (i, 0)),
        compiler_params=pltpu.CompilerParams(
            dimension_semantics=("parallel",), vmem_limit_bytes=_VMEM_LIMIT),
        cost_estimate=cost,
    )(cp, w_o, rp)
    return out[:M] if M_pad != M else out


# ----- fused MLP: LN2 -> c_fc -> GELU -> c_proj -> +bias -> +residual --------
def _mlp_kernel(x_ref, g_ref, b_ref, wfc_ref, bfc_ref, wpj_ref, bpj_ref, o_ref,
                acc_ref, ln_ref):
    h_idx = pl.program_id(1)

    @pl.when(h_idx == 0)
    def _init():
        x = x_ref[...].astype(jnp.float32)
        ln = _layernorm_f32(x, g_ref[...].astype(jnp.float32),
                            b_ref[...].astype(jnp.float32))
        ln_ref[...] = ln.astype(ln_ref.dtype)   # LN2 cached: computed once per row tile
        acc_ref[...] = jnp.zeros(acc_ref.shape, dtype=acc_ref.dtype)

    hid = jnp.dot(ln_ref[...], wfc_ref[...], preferred_element_type=jnp.float32)
    hid = _gelu_tanh(hid + bfc_ref[...].astype(jnp.float32))        # (tm, th) f32
    acc_ref[...] += jnp.dot(hid.astype(jnp.bfloat16), wpj_ref[...],
                            preferred_element_type=jnp.float32)     # (tm, D)

    @pl.when(h_idx == pl.num_programs(1) - 1)
    def _finalize():
        o_ref[...] = (acc_ref[...] + bpj_ref[...].astype(jnp.float32)
                      + x_ref[...].astype(jnp.float32)).astype(o_ref.dtype)


def fused_mlp(x2, gamma, beta, w_fc, b_fc, w_proj, b_proj):
    M, D = x2.shape
    Hd = w_fc.shape[1]
    M_pad, tm = _row_tiling(M)
    th = _divisor_tile(Hd, _TH)
    xp = _pad_rows(x2, M_pad)
    cost = pl.CostEstimate(flops=int(4 * M_pad * D * Hd), transcendentals=int(M_pad * Hd),
                           bytes_accessed=int(2 * M_pad * D * 4 + 2 * D * Hd * 2))
    out = pl.pallas_call(
        _mlp_kernel,
        out_shape=jax.ShapeDtypeStruct((M_pad, D), x2.dtype),
        grid=(M_pad // tm, Hd // th),
        in_specs=[
            pl.BlockSpec((tm, D), lambda i, h: (i, 0)),
            pl.BlockSpec((1, D), lambda i, h: (0, 0)),
            pl.BlockSpec((1, D), lambda i, h: (0, 0)),
            pl.BlockSpec((D, th), lambda i, h: (0, h)),
            pl.BlockSpec((1, th), lambda i, h: (0, h)),
            pl.BlockSpec((th, D), lambda i, h: (h, 0)),
            pl.BlockSpec((1, D), lambda i, h: (0, 0)),
        ],
        out_specs=pl.BlockSpec((tm, D), lambda i, h: (i, 0)),
        scratch_shapes=[pltpu.VMEM((tm, D), jnp.float32),     # c_proj accumulator
                        pltpu.VMEM((tm, D), jnp.bfloat16)],   # cached LN2(x)
        compiler_params=pltpu.CompilerParams(
            dimension_semantics=("parallel", "arbitrary"),
            vmem_limit_bytes=_VMEM_LIMIT),
        cost_estimate=cost,
    )(xp, gamma, beta, w_fc, b_fc, w_proj, b_proj)
    return out[:M] if M_pad != M else out


# -------------- "maskless" flash attention (KV-tiled online softmax) ---------
def _attn_kernel(*refs, has_kpad, scale):
    if has_kpad:
        (q_ref, k_ref, v_ref, mq_ref, mk_ref, kp_ref, o_ref,
         m_sc, l_sc, acc_sc) = refs
    else:
        (q_ref, k_ref, v_ref, mq_ref, mk_ref, o_ref,
         m_sc, l_sc, acc_sc) = refs
        kp_ref = None

    ki = pl.program_id(2)

    @pl.when(ki == 0)
    def _init():
        m_sc[...] = jnp.full(m_sc.shape, -jnp.inf, dtype=m_sc.dtype)
        l_sc[...] = jnp.zeros(l_sc.shape, dtype=l_sc.dtype)
        acc_sc[...] = jnp.zeros(acc_sc.shape, dtype=acc_sc.dtype)

    # Scores for ALL heads via one batched MXU contraction (Q already carries `scale`).
    s = jnp.einsum('hqd,hkd->hqk', q_ref[...], k_ref[...],
                   preferred_element_type=jnp.float32)              # (H, tq, tkv) f32

    # "maskless" SDPA additive bias = scale * finfo.min * outer(m_q, m_k), all heads.
    mq = mq_ref[...].astype(jnp.float32) * (NEG_INF_F32 * scale)    # (H, tq)  tiny
    mk = mk_ref[...].astype(jnp.float32)                            # (H, tkv) tiny
    s = s + mq[:, :, None] * mk[:, None, :]
    if has_kpad:
        # wrapper-introduced sequence padding: padded keys masked for every query
        s = s + kp_ref[...][None]                                   # (1, 1, tkv)

    m_prev = m_sc[...]
    m_new = jnp.maximum(m_prev, jnp.max(s, axis=-1, keepdims=True))
    alpha = jnp.exp(m_prev - m_new)
    p = jnp.exp(s - m_new)                                          # (H, tq, tkv) f32
    l_sc[...] = alpha * l_sc[...] + jnp.sum(p, axis=-1, keepdims=True)
    acc_sc[...] = alpha * acc_sc[...] + jnp.einsum(
        'hqk,hkd->hqd', p.astype(jnp.bfloat16), v_ref[...],
        preferred_element_type=jnp.float32)                         # (H, tq, hd)
    m_sc[...] = m_new

    @pl.when(ki == pl.num_programs(2) - 1)
    def _finalize():
        n_heads, _, hd = acc_sc.shape
        inv_l = pl.reciprocal(l_sc[...], approx=True)
        ctx = (acc_sc[...] * inv_l).astype(o_ref.dtype)             # (H, tq, hd)
        # write into ONE lane-dense (tq, D) output tile -> dense HBM writeback and
        # no wrapper-side relayout of the context (finalize-only, once per q-tile)
        for h in range(n_heads):
            o_ref[:, h * hd:(h + 1) * hd] = ctx[h]


def maskless_flash_attention(qkv5, mask, scale, tq, tkv, kpad):
    # qkv5: (B, S_pad, 3, H, hd) bf16; mask: (B, H, S_pad) f32; kpad: None or (1, S_pad)
    B, S_pad, _, H, hd = qkv5.shape
    D = H * hd
    has_kpad = kpad is not None

    # Head-major relayout (one XLA transpose per tensor); Q pre-scaled here so the
    # kernel's KV loop does no per-score scale multiply.
    q = jnp.transpose((qkv5[:, :, 0].astype(jnp.float32) * scale).astype(jnp.bfloat16),
                      (0, 2, 1, 3))                                  # (B, H, S_pad, hd)
    k = jnp.transpose(qkv5[:, :, 1], (0, 2, 1, 3))
    v = jnp.transpose(qkv5[:, :, 2], (0, 2, 1, 3))

    in_specs = [
        pl.BlockSpec((None, H, tq, hd), lambda b, qi, ki: (b, 0, qi, 0)),
        pl.BlockSpec((None, H, tkv, hd), lambda b, qi, ki: (b, 0, ki, 0)),
        pl.BlockSpec((None, H, tkv, hd), lambda b, qi, ki: (b, 0, ki, 0)),
        pl.BlockSpec((None, H, tq), lambda b, qi, ki: (b, 0, qi)),
        pl.BlockSpec((None, H, tkv), lambda b, qi, ki: (b, 0, ki)),
    ]
    args = [q, k, v, mask, mask]
    if has_kpad:
        in_specs.append(pl.BlockSpec((1, tkv), lambda b, qi, ki: (0, ki)))
        args.append(kpad)

    cost = pl.CostEstimate(flops=int(4 * B * H * S_pad * S_pad * hd),
                           transcendentals=int(B * H * S_pad * S_pad),
                           bytes_accessed=int(4 * B * S_pad * H * hd * 2))
    kern = functools.partial(_attn_kernel, has_kpad=has_kpad, scale=scale)

    return pl.pallas_call(
        kern,
        out_shape=jax.ShapeDtypeStruct((B, S_pad, D), jnp.bfloat16),
        grid=(B, S_pad // tq, S_pad // tkv),
        in_specs=in_specs,
        out_specs=pl.BlockSpec((None, tq, D), lambda b, qi, ki: (b, qi, 0)),
        scratch_shapes=[
            pltpu.VMEM((H, tq, 1), jnp.float32),    # running max
            pltpu.VMEM((H, tq, 1), jnp.float32),    # running denominator
            pltpu.VMEM((H, tq, hd), jnp.float32),   # output accumulator
        ],
        compiler_params=pltpu.CompilerParams(
            dimension_semantics=("parallel", "parallel", "arbitrary"),
            vmem_limit_bytes=_VMEM_LIMIT),
        cost_estimate=cost,
    )(*args)


# ------------------------------ block / model --------------------------------
def init_block_params(key, D, hidden):
    ks = jax.random.split(key, 6)
    s = 0.02
    return {
        "ln1_w": jnp.ones((1, D), jnp.float32),
        "ln1_b": jnp.zeros((1, D), jnp.float32),
        # [Wq | Wk | Wv] as (D, 3D) == concat(torch weight.T); bf16 for the MXU.
        "w_qkv": (s * jax.random.normal(ks[0], (D, 3 * D), jnp.float32)).astype(jnp.bfloat16),
        "w_o": (s * jax.random.normal(ks[1], (D, D), jnp.float32)).astype(jnp.bfloat16),
        "ln2_w": jnp.ones((1, D), jnp.float32),
        "ln2_b": jnp.zeros((1, D), jnp.float32),
        "fc_w": (s * jax.random.normal(ks[2], (D, hidden), jnp.float32)).astype(jnp.bfloat16),
        "fc_b": 0.01 * jax.random.normal(ks[3], (1, hidden), jnp.float32),
        "proj_w": (s * jax.random.normal(ks[4], (hidden, D), jnp.float32)).astype(jnp.bfloat16),
        "proj_b": 0.01 * jax.random.normal(ks[5], (1, D), jnp.float32),
    }


def image_transformer_block(x, p, mask, n_heads, tq, tkv, kpad):
    # gated=False  =>  _gate_attn = _gate_ffn = 1
    B, S_pad, D = x.shape
    hd = D // n_heads
    scale = 1.0 / math.sqrt(hd)

    x2 = x.reshape(B * S_pad, D)

    # LN1 fused into the QKV projection (no q/k/v biases, as in the reference attention).
    qkv = ln_qkv_proj(x2, p["ln1_w"], p["ln1_b"], p["w_qkv"])        # (B*S_pad, 3D) bf16
    qkv5 = qkv.reshape(B, S_pad, 3, n_heads, hd)                     # free reshape

    ctx = maskless_flash_attention(qkv5, mask, scale, tq, tkv, kpad)  # (B, S_pad, D) bf16
    ctx2 = ctx.reshape(B * S_pad, D)                                  # free reshape

    x2 = oproj_residual(ctx2, p["w_o"], x2)                           # o_proj + residual
    x2 = fused_mlp(x2, p["ln2_w"], p["ln2_b"], p["fc_w"], p["fc_b"],
                   p["proj_w"], p["proj_b"])                          # LN2+c_fc+GELU+c_proj+res
    return x2.reshape(B, S_pad, D)


def image_transformer_forward(x, params_list, mask, n_heads, return_intermediate=None):
    # sequence_parallel_enabled=False path (collectives are single-device no-ops).
    B, S, D = x.shape
    S_pad, tq, tkv = _attn_tiling(S)
    mask_f = mask.astype(jnp.float32)                                 # (B, H, S)
    if S_pad != S:
        x = jnp.pad(x, ((0, 0), (0, S_pad - S), (0, 0)))
        mask_f = jnp.pad(mask_f, ((0, 0), (0, 0), (0, S_pad - S)))
        kpad = jnp.where(jnp.arange(S_pad) >= S, KPAD_NEG, 0.0)
        kpad = kpad.astype(jnp.float32).reshape(1, S_pad)
    else:
        kpad = None

    out = []
    for idx, p in enumerate(params_list):
        if return_intermediate is not None and idx in return_intermediate:
            out.append(x[:, :S])
        x = image_transformer_block(x, p, mask_f, n_heads, tq, tkv, kpad)
    x = x[:, :S]
    if return_intermediate is not None:
        int_x = jnp.stack(out, axis=2)        # (B, S, n_int, D)
        int_x = jnp.swapaxes(int_x, 2, -1)    # (B, S, D, n_int)
        return x, int_x
    return x


# ----------------------------- pure-JAX reference ----------------------------
def _ref_layernorm(x, w, b):
    mu = jnp.mean(x, -1, keepdims=True)
    v = jnp.mean((x - mu) ** 2, -1, keepdims=True)
    return (x - mu) * lax.rsqrt(v + LN_EPS) * w + b


def reference_block(x, p, mask, n_heads):
    B, S, D = x.shape
    hd = D // n_heads
    scale = 1.0 / math.sqrt(hd)
    h1 = _ref_layernorm(x, p["ln1_w"], p["ln1_b"])
    qkv = h1 @ p["w_qkv"].astype(jnp.float32)
    q, k, v = jnp.split(qkv, 3, axis=-1)

    def heads(t):
        return t.reshape(B, S, n_heads, hd).transpose(0, 2, 1, 3)

    q, k, v = heads(q), heads(k), heads(v)
    scores = jnp.einsum("bhqd,bhkd->bhqk", q, k)
    bias = mask[:, :, :, None] * mask[:, :, None, :] * NEG_INF_F32
    probs = jax.nn.softmax((scores + bias) * scale, axis=-1)
    ctx = jnp.einsum("bhqk,bhkd->bhqd", probs, v).transpose(0, 2, 1, 3).reshape(B, S, D)
    x = x + ctx @ p["w_o"].astype(jnp.float32)
    h2 = _ref_layernorm(x, p["ln2_w"], p["ln2_b"])
    hid = jax.nn.gelu(h2 @ p["fc_w"].astype(jnp.float32) + p["fc_b"], approximate=False)
    x = x + hid @ p["proj_w"].astype(jnp.float32) + p["proj_b"]
    return x


# ----------------------------------- main ------------------------------------
if __name__ == "__main__":
    B, S, D, H, LAYERS = 2, 16, 128, 4, 2
    MLP_RATIO = 4.0
    HIDDEN = int(MLP_RATIO * D)

    root = jax.random.PRNGKey(0)
    k_x, k_p = jax.random.split(root)

    x = jax.random.normal(k_x, (B, S, D), jnp.float32)

    # mask_gen_vectors: (B, H, S); 1.0 marks padded positions (last token of
    # batch 1 is padded), 0.0 marks valid positions.
    mask = jnp.zeros((B, H, S), jnp.float32)
    mask = mask.at[1, :, S - 1].set(1.0)

    params_list = [init_block_params(jax.random.fold_in(k_p, i), D, HIDDEN)
                   for i in range(LAYERS)]

    fwd = jax.jit(functools.partial(image_transformer_forward, n_heads=H))
    y = fwd(x, params_list, mask)
    jax.block_until_ready(y)

    # correctness sanity-check against a pure-JAX reference (same bf16 weights)
    y_ref = x
    for p in params_list:
        y_ref = reference_block(y_ref, p, mask, H)

    assert y.shape == (B, S, D) and bool(jnp.all(jnp.isfinite(y)))
    err = float(jnp.max(jnp.abs(y - y_ref)))
    assert err < 5e-2, f"kernel vs reference mismatch: max abs err = {err}"
    print("KERNEL_OK")
</pallas_src>

<mosaic_0001>
module attributes {stable_mosaic.version = 11 : i64} {
  func.func @_ln_qkv_kernel(%arg0: i32, %arg1: memref<32x128xf32, #tpu.memory_space<vmem>>, %arg2: memref<1x128xf32, #tpu.memory_space<vmem>>, %arg3: memref<1x128xf32, #tpu.memory_space<vmem>>, %arg4: memref<128x384xbf16, #tpu.memory_space<vmem>>, %arg5: memref<32x384xbf16, #tpu.memory_space<vmem>>) attributes {dimension_semantics = [#tpu.dimension_semantics<parallel>], iteration_bounds = array<i64: 1>, scalar_prefetch = 0 : i64, scratch_operands = 0 : i64, tpu.core_type = #tpu.core_type<tc>, window_params = [{transform_indices = @transform_0, window_bounds = array<i64: 32, 128>}, {pipeline_mode = #tpu.pipeline_mode<synchronous>, transform_indices = @transform_1, window_bounds = array<i64: 1, 128>}, {pipeline_mode = #tpu.pipeline_mode<synchronous>, transform_indices = @transform_2, window_bounds = array<i64: 1, 128>}, {pipeline_mode = #tpu.pipeline_mode<synchronous>, transform_indices = @transform_3, window_bounds = array<i64: 128, 384>}, {transform_indices = @transform_4, window_bounds = array<i64: 32, 384>}]} {
    %c0 = arith.constant 0 : index
    %c0_0 = arith.constant 0 : index
    %0 = vector.load %arg1[%c0, %c0_0] : memref<32x128xf32, #tpu.memory_space<vmem>>, vector<32x128xf32>
    %c0_1 = arith.constant 0 : index
    %c0_2 = arith.constant 0 : index
    %1 = vector.load %arg2[%c0_1, %c0_2] : memref<1x128xf32, #tpu.memory_space<vmem>>, vector<1x128xf32>
    %c0_3 = arith.constant 0 : index
    %c0_4 = arith.constant 0 : index
    %2 = vector.load %arg3[%c0_3, %c0_4] : memref<1x128xf32, #tpu.memory_space<vmem>>, vector<1x128xf32>
    %cst = arith.constant dense<0.000000e+00> : vector<32xf32>
    %3 = vector.multi_reduction <add>, %0, %cst [1] : vector<32x128xf32> to vector<32xf32>
    %4 = vector.shape_cast %3 : vector<32xf32> to vector<32x1xf32>
    %cst_5 = arith.constant 1.280000e+02 : f32
    %5 = vector.broadcast %cst_5 : f32 to vector<32x1xf32>
    %6 = arith.divf %4, %5 : vector<32x1xf32>
    %7 = vector.broadcast %6 : vector<32x1xf32> to vector<32x128xf32>
    %8 = arith.subf %0, %7 : vector<32x128xf32>
    %9 = arith.mulf %8, %8 : vector<32x128xf32>
    %cst_6 = arith.constant dense<0.000000e+00> : vector<32xf32>
    %10 = vector.multi_reduction <add>, %9, %cst_6 [1] : vector<32x128xf32> to vector<32xf32>
    %11 = vector.shape_cast %10 : vector<32xf32> to vector<32x1xf32>
    %cst_7 = arith.constant 1.280000e+02 : f32
    %12 = vector.broadcast %cst_7 : f32 to vector<32x1xf32>
    %13 = arith.divf %11, %12 : vector<32x1xf32>
    %cst_8 = arith.constant 9.99999974E-6 : f32
    %14 = vector.broadcast %cst_8 : f32 to vector<32x1xf32>
    %15 = arith.addf %13, %14 : vector<32x1xf32>
    %16 = math.rsqrt %15 : vector<32x1xf32>
    %17 = vector.broadcast %16 : vector<32x1xf32> to vector<32x128xf32>
    %18 = arith.mulf %8, %17 : vector<32x128xf32>
    %19 = vector.broadcast %1 : vector<1x128xf32> to vector<32x128xf32>
    %20 = arith.mulf %18, %19 : vector<32x128xf32>
    %21 = vector.broadcast %2 : vector<1x128xf32> to vector<32x128xf32>
    %22 = arith.addf %20, %21 : vector<32x128xf32>
    %23 = arith.truncf %22 : vector<32x128xf32> to vector<32x128xbf16>
    %c0_9 = arith.constant 0 : index
    %c0_10 = arith.constant 0 : index
    %24 = vector.load %arg4[%c0_9, %c0_10] : memref<128x384xbf16, #tpu.memory_space<vmem>>, vector<128x384xbf16>
    %cst_11 = arith.constant dense<0.000000e+00> : vector<32x384xf32>
    %25 = tpu.matmul %23, %24, %cst_11 {dimension_numbers = #tpu.dot_dimension_numbers<[1], [0], [0], [1], [0, 0, 1, 1], [], []>} : vector<32x128xbf16>, vector<128x384xbf16>, vector<32x384xf32> -> vector<32x384xf32>
    %26 = arith.truncf %25 : vector<32x384xf32> to vector<32x384xbf16>
    %c0_12 = arith.constant 0 : index
    %c0_13 = arith.constant 0 : index
    %27 = vector.load %arg5[%c0_12, %c0_13] : memref<32x384xbf16, #tpu.memory_space<vmem>>, vector<32x384xbf16>
    tpu.vector_store %arg5[%c0_12, %c0_13], %26 {strides = array<i32>} : memref<32x384xbf16, #tpu.memory_space<vmem>>, vector<32x384xbf16>,
    return
  }
  func.func @transform_0(%arg0: i32) -> (i32, i32) {
    %c0_i32 = arith.constant 0 : i32
    %c0_i32_0 = arith.constant 0 : i32
    return %arg0, %c0_i32 : i32, i32
  }
  func.func @transform_1(%arg0: i32) -> (i32, i32) {
    %c0_i32 = arith.constant 0 : i32
    %c0_i32_0 = arith.constant 0 : i32
    %c0_i32_1 = arith.constant 0 : i32
    return %c0_i32, %c0_i32_0 : i32, i32
  }
  func.func @transform_2(%arg0: i32) -> (i32, i32) {
    %c0_i32 = arith.constant 0 : i32
    %c0_i32_0 = arith.constant 0 : i32
    %c0_i32_1 = arith.constant 0 : i32
    return %c0_i32, %c0_i32_0 : i32, i32
  }
  func.func @transform_3(%arg0: i32) -> (i32, i32) {
    %c0_i32 = arith.constant 0 : i32
    %c0_i32_0 = arith.constant 0 : i32
    %c0_i32_1 = arith.constant 0 : i32
    return %c0_i32, %c0_i32_0 : i32, i32
  }
  func.func @transform_4(%arg0: i32) -> (i32, i32) {
    %c0_i32 = arith.constant 0 : i32
    %c0_i32_0 = arith.constant 0 : i32
    return %arg0, %c0_i32 : i32, i32
  }
}

module attributes {stable_mosaic.version = 11 : i64} {
  func.func @_attn_kernel(%arg0: i32, %arg1: i32, %arg2: i32, %arg3: memref<1x4x16x32xbf16, #tpu.memory_space<vmem>>, %arg4: memref<1x4x16x32xbf16, #tpu.memory_space<vmem>>, %arg5: memref<1x4x16x32xbf16, #tpu.memory_space<vmem>>, %arg6: memref<1x4x16xf32, #tpu.memory_space<vmem>>, %arg7: memref<1x4x16xf32, #tpu.memory_space<vmem>>, %arg8: memref<1x16x128xbf16, #tpu.memory_space<vmem>>, %arg9: memref<4x16x1xf32, #tpu.memory_space<vmem>>, %arg10: memref<4x16x1xf32, #tpu.memory_space<vmem>>, %arg11: memref<4x16x32xf32, #tpu.memory_space<vmem>>) attributes {dimension_semantics = [#tpu.dimension_semantics<parallel>, #tpu.dimension_semantics<parallel>, #tpu.dimension_semantics<arbitrary>], iteration_bounds = array<i64: 2, 1, 1>, scalar_prefetch = 0 : i64, scratch_operands = 3 : i64, tpu.core_type = #tpu.core_type<tc>, window_params = [{transform_indices = @transform_0, window_bounds = array<i64: 1, 4, 16, 32>}, {transform_indices = @transform_1, window_bounds = array<i64: 1, 4, 16, 32>}, {transform_indices = @transform_2, window_bounds = array<i64: 1, 4, 16, 32>}, {transform_indices = @transform_3, window_bounds = array<i64: 1, 4, 16>}, {transform_indices = @transform_4, window_bounds = array<i64: 1, 4, 16>}, {transform_indices = @transform_5, window_bounds = array<i64: 1, 16, 128>}]} {
    %c0_i32 = arith.constant 0 : i32
    %0 = arith.cmpi eq, %arg2, %c0_i32 : i32
    %1 = arith.extui %0 : i1 to i32
    %c0_i32_0 = arith.constant 0 : i32
    %2 = arith.cmpi ne, %1, %c0_i32_0 : i32
    scf.if %2 {
      %cst_42 = arith.constant 0xFF800000 : f32
      %48 = vector.broadcast %cst_42 : f32 to vector<4x16x1xf32>
      %c0_43 = arith.constant 0 : index
      %c0_44 = arith.constant 0 : index
      %c0_45 = arith.constant 0 : index
      %49 = vector.load %arg9[%c0_43, %c0_44, %c0_45] : memref<4x16x1xf32, #tpu.memory_space<vmem>>, vector<4x16x1xf32>
      tpu.vector_store %arg9[%c0_43, %c0_44, %c0_45], %48 {strides = array<i32>} : memref<4x16x1xf32, #tpu.memory_space<vmem>>, vector<4x16x1xf32>,
      %cst_46 = arith.constant 0.000000e+00 : f32
      %50 = vector.broadcast %cst_46 : f32 to vector<4x16x1xf32>
      %c0_47 = arith.constant 0 : index
      %c0_48 = arith.constant 0 : index
      %c0_49 = arith.constant 0 : index
      %51 = vector.load %arg10[%c0_47, %c0_48, %c0_49] : memref<4x16x1xf32, #tpu.memory_space<vmem>>, vector<4x16x1xf32>
      tpu.vector_store %arg10[%c0_47, %c0_48, %c0_49], %50 {strides = array<i32>} : memref<4x16x1xf32, #tpu.memory_space<vmem>>, vector<4x16x1xf32>,
      %cst_50 = arith.constant 0.000000e+00 : f32
      %52 = vector.broadcast %cst_50 : f32 to vector<4x16x32xf32>
      %c0_51 = arith.constant 0 : index
      %c0_52 = arith.constant 0 : index
      %c0_53 = arith.constant 0 : index
      %53 = vector.load %arg11[%c0_51, %c0_52, %c0_53] : memref<4x16x32xf32, #tpu.memory_space<vmem>>, vector<4x16x32xf32>
      tpu.vector_store %arg11[%c0_51, %c0_52, %c0_53], %52 {strides = array<i32>} : memref<4x16x32xf32, #tpu.memory_space<vmem>>, vector<4x16x32xf32>,
    } else {
    }
    %c0 = arith.constant 0 : index
    %c0_1 = arith.constant 0 : index
    %c0_2 = arith.constant 0 : index
    %c0_3 = arith.constant 0 : index
    %3 = vector.load %arg3[%c0, %c0_1, %c0_2, %c0_3] : memref<1x4x16x32xbf16, #tpu.memory_space<vmem>>, vector<1x4x16x32xbf16>
    %4 = vector.shape_cast %3 : vector<1x4x16x32xbf16> to vector<4x16x32xbf16>
    %c0_4 = arith.constant 0 : index
    %c0_5 = arith.constant 0 : index
    %c0_6 = arith.constant 0 : index
    %c0_7 = arith.constant 0 : index
    %5 = vector.load %arg4[%c0_4, %c0_5, %c0_6, %c0_7] : memref<1x4x16x32xbf16, #tpu.memory_space<vmem>>, vector<1x4x16x32xbf16>
    %6 = vector.shape_cast %5 : vector<1x4x16x32xbf16> to vector<4x16x32xbf16>
    "tpu.trace_start"() <{level = 10 : i32, message = "hqd,hkd->hqk"}> : () -> ()
    %cst = arith.constant dense<0.000000e+00> : vector<4x16x16xf32>
    %7 = tpu.matmul %4, %6, %cst {dimension_numbers = #tpu.dot_dimension_numbers<[2], [2], [1], [1], [0, 0, 0, 1, 1, 1], [0], [0]>} : vector<4x16x32xbf16>, vector<4x16x32xbf16>, vector<4x16x16xf32> -> vector<4x16x16xf32>
    "tpu.trace_stop"() : () -> ()
    %c0_8 = arith.constant 0 : index
    %c0_9 = arith.constant 0 : index
    %c0_10 = arith.constant 0 : index
    %8 = vector.load %arg6[%c0_8, %c0_9, %c0_10] : memref<1x4x16xf32, #tpu.memory_space<vmem>>, vector<1x4x16xf32>
    %9 = vector.shape_cast %8 : vector<1x4x16xf32> to vector<4x16xf32>
    %cst_11 = arith.constant -6.01539862E+37 : f32
    %10 = vector.broadcast %cst_11 : f32 to vector<4x16xf32>
    %11 = arith.mulf %9, %10 : vector<4x16xf32>
    %c0_12 = arith.constant 0 : index
    %c0_13 = arith.constant 0 : index
    %c0_14 = arith.constant 0 : index
    %12 = vector.load %arg7[%c0_12, %c0_13, %c0_14] : memref<1x4x16xf32, #tpu.memory_space<vmem>>, vector<1x4x16xf32>
    %13 = vector.shape_cast %12 : vector<1x4x16xf32> to vector<4x16xf32>
    %14 = vector.shape_cast %11 : vector<4x16xf32> to vector<4x16x1xf32>
    %15 = vector.shape_cast %13 : vector<4x16xf32> to vector<4x1x16xf32>
    %16 = vector.broadcast %14 : vector<4x16x1xf32> to vector<4x16x16xf32>
    %17 = vector.broadcast %15 : vector<4x1x16xf32> to vector<4x16x16xf32>
    %18 = arith.mulf %16, %17 : vector<4x16x16xf32>
    %19 = arith.addf %7, %18 : vector<4x16x16xf32>
    %c0_15 = arith.constant 0 : index
    %c0_16 = arith.constant 0 : index
    %c0_17 = arith.constant 0 : index
    %20 = vector.load %arg9[%c0_15, %c0_16, %c0_17] : memref<4x16x1xf32, #tpu.memory_space<vmem>>, vector<4x16x1xf32>
    %cst_18 = arith.constant dense<0xFF800000> : vector<4x16xf32>
    %21 = vector.multi_reduction <maximumf>, %19, %cst_18 [2] : vector<4x16x16xf32> to vector<4x16xf32>
    %22 = vector.shape_cast %21 : vector<4x16xf32> to vector<4x16x1xf32>
    %23 = arith.maximumf %20, %22 : vector<4x16x1xf32>
    %24 = arith.subf %20, %23 : vector<4x16x1xf32>
    %25 = math.exp %24 : vector<4x16x1xf32>
    %26 = vector.broadcast %23 : vector<4x16x1xf32> to vector<4x16x16xf32>
    %27 = arith.subf %19, %26 : vector<4x16x16xf32>
    %28 = math.exp %27 : vector<4x16x16xf32>
    %c0_19 = arith.constant 0 : index
    %c0_20 = arith.constant 0 : index
    %c0_21 = arith.constant 0 : index
    %29 = vector.load %arg10[%c0_19, %c0_20, %c0_21] : memref<4x16x1xf32, #tpu.memory_space<vmem>>, vector<4x16x1xf32>
    %30 = arith.mulf %25, %29 : vector<4x16x1xf32>
    %cst_22 = arith.constant dense<0.000000e+00> : vector<4x16xf32>
    %31 = vector.multi_reduction <add>, %28, %cst_22 [2] : vector<4x16x16xf32> to vector<4x16xf32>
    %32 = vector.shape_cast %31 : vector<4x16xf32> to vector<4x16x1xf32>
    %33 = arith.addf %30, %32 : vector<4x16x1xf32>
    %c0_23 = arith.constant 0 : index
    %c0_24 = arith.constant 0 : index
    %c0_25 = arith.constant 0 : index
    %34 = vector.load %arg10[%c0_23, %c0_24, %c0_25] : memref<4x16x1xf32, #tpu.memory_space<vmem>>, vector<4x16x1xf32>
    tpu.vector_store %arg10[%c0_23, %c0_24, %c0_25], %33 {strides = array<i32>} : memref<4x16x1xf32, #tpu.memory_space<vmem>>, vector<4x16x1xf32>,
    %c0_26 = arith.constant 0 : index
    %c0_27 = arith.constant 0 : index
    %c0_28 = arith.constant 0 : index
    %35 = vector.load %arg11[%c0_26, %c0_27, %c0_28] : memref<4x16x32xf32, #tpu.memory_space<vmem>>, vector<4x16x32xf32>
    %36 = vector.broadcast %25 : vector<4x16x1xf32> to vector<4x16x32xf32>
    %37 = arith.mulf %36, %35 : vector<4x16x32xf32>
    %38 = arith.truncf %28 : vector<4x16x16xf32> to vector<4x16x16xbf16>
    %c0_29 = arith.constant 0 : index
    %c0_30 = arith.constant 0 : index
    %c0_31 = arith.constant 0 : index
    %c0_32 = arith.constant 0 : index
    %39 = vector.load %arg5[%c0_29, %c0_30, %c0_31, %c0_32] : memref<1x4x16x32xbf16, #tpu.memory_space<vmem>>, vector<1x4x16x32xbf16>
    %40 = vector.shape_cast %39 : vector<1x4x16x32xbf16> to vector<4x16x32xbf16>
    "tpu.trace_start"() <{level = 10 : i32, message = "hqk,hkd->hqd"}> : () -> ()
    %cst_33 = arith.constant dense<0.000000e+00> : vector<4x16x32xf32>
    %41 = tpu.matmul %38, %40, %cst_33 {dimension_numbers = #tpu.dot_dimension_numbers<[2], [1], [1], [2], [0, 0, 0, 1, 1, 2], [0], [0]>} : vector<4x16x16xbf16>, vector<4x16x32xbf16>, vector<4x16x32xf32> -> vector<4x16x32xf32>
    "tpu.trace_stop"() : () -> ()
    %42 = arith.addf %37, %41 : vector<4x16x32xf32>
    %c0_34 = arith.constant 0 : index
    %c0_35 = arith.constant 0 : index
    %c0_36 = arith.constant 0 : index
    %43 = vector.load %arg11[%c0_34, %c0_35, %c0_36] : memref<4x16x32xf32, #tpu.memory_space<vmem>>, vector<4x16x32xf32>
    tpu.vector_store %arg11[%c0_34, %c0_35, %c0_36], %42 {strides = array<i32>} : memref<4x16x32xf32, #tpu.memory_space<vmem>>, vector<4x16x32xf32>,
    %c0_37 = arith.constant 0 : index
    %c0_38 = arith.constant 0 : index
    %c0_39 = arith.constant 0 : index
    %44 = vector.load %arg9[%c0_37, %c0_38, %c0_39] : memref<4x16x1xf32, #tpu.memory_space<vmem>>, vector<4x16x1xf32>
    tpu.vector_store %arg9[%c0_37, %c0_38, %c0_39], %23 {strides = array<i32>} : memref<4x16x1xf32, #tpu.memory_space<vmem>>, vector<4x16x1xf32>,
    %c0_i32_40 = arith.constant 0 : i32
    %45 = arith.cmpi eq, %arg2, %c0_i32_40 : i32
    %46 = arith.extui %45 : i1 to i32
    %c0_i32_41 = arith.constant 0 : i32
    %47 = arith.cmpi ne, %46, %c0_i32_41 : i32
    scf.if %47 {
      %c0_42 = arith.constant 0 : index
      %c0_43 = arith.constant 0 : index
      %c0_44 = arith.constant 0 : index
      %48 = vector.load %arg10[%c0_42, %c0_43, %c0_44] : memref<4x16x1xf32, #tpu.memory_space<vmem>>, vector<4x16x1xf32>
      %49 = tpu.reciprocal %48 {approx = true} : vector<4x16x1xf32> -> vector<4x16x1xf32>
      %c0_45 = arith.constant 0 : index
      %c0_46 = arith.constant 0 : index
      %c0_47 = arith.constant 0 : index
      %50 = vector.load %arg11[%c0_45, %c0_46, %c0_47] : memref<4x16x32xf32, #tpu.memory_space<vmem>>, vector<4x16x32xf32>
      %51 = vector.broadcast %49 : vector<4x16x1xf32> to vector<4x16x32xf32>
      %52 = arith.mulf %50, %51 : vector<4x16x32xf32>
      %53 = arith.truncf %52 : vector<4x16x32xf32> to vector<4x16x32xbf16>
      %54 = vector.extract_strided_slice %53 {offsets = [0, 0, 0], sizes = [1, 16, 32], strides = [1, 1, 1]} : vector<4x16x32xbf16> to vector<1x16x32xbf16>
      %55 = vector.shape_cast %54 : vector<1x16x32xbf16> to vector<16x32xbf16>
      %c0_48 = arith.constant 0 : index
      %c0_49 = arith.constant 0 : index
      %c0_50 = arith.constant 0 : index
      %56 = vector.load %arg8[%c0_48, %c0_49, %c0_50] : memref<1x16x128xbf16, #tpu.memory_space<vmem>>, vector<1x16x32xbf16>
      %57 = vector.shape_cast %56 : vector<1x16x32xbf16> to vector<16x32xbf16>
      %58 = vector.shape_cast %55 : vector<16x32xbf16> to vector<1x16x32xbf16>
      tpu.vector_store %arg8[%c0_48, %c0_49, %c0_50], %58 {strides = array<i32>} : memref<1x16x128xbf16, #tpu.memory_space<vmem>>, vector<1x16x32xbf16>,
      %59 = vector.extract_strided_slice %53 {offsets = [1, 0, 0], sizes = [1, 16, 32], strides = [1, 1, 1]} : vector<4x16x32xbf16> to vector<1x16x32xbf16>
      %60 = vector.shape_cast %59 : vector<1x16x32xbf16> to vector<16x32xbf16>
      %c0_51 = arith.constant 0 : index
      %c0_52 = arith.constant 0 : index
      %c32 = arith.constant 32 : index
      %61 = vector.load %arg8[%c0_51, %c0_52, %c32] : memref<1x16x128xbf16, #tpu.memory_space<vmem>>, vector<1x16x32xbf16>
      %62 = vector.shape_cast %61 : vector<1x16x32xbf16> to vector<16x32xbf16>
      %63 = vector.shape_cast %60 : vector<16x32xbf16> to vector<1x16x32xbf16>
      tpu.vector_store %arg8[%c0_51, %c0_52, %c32], %63 {strides = array<i32>} : memref<1x16x128xbf16, #tpu.memory_space<vmem>>, vector<1x16x32xbf16>,
      %64 = vector.extract_strided_slice %53 {offsets = [2, 0, 0], sizes = [1, 16, 32], strides = [1, 1, 1]} : vector<4x16x32xbf16> to vector<1x16x32xbf16>
      %65 = vector.shape_cast %64 : vector<1x16x32xbf16> to vector<16x32xbf16>
      %c0_53 = arith.constant 0 : index
      %c0_54 = arith.constant 0 : index
      %c64 = arith.constant 64 : index
      %66 = vector.load %arg8[%c0_53, %c0_54, %c64] : memref<1x16x128xbf16, #tpu.memory_space<vmem>>, vector<1x16x32xbf16>
      %67 = vector.shape_cast %66 : vector<1x16x32xbf16> to vector<16x32xbf16>
      %68 = vector.shape_cast %65 : vector<16x32xbf16> to vector<1x16x32xbf16>
      tpu.vector_store %arg8[%c0_53, %c0_54, %c64], %68 {strides = array<i32>} : memref<1x16x128xbf16, #tpu.memory_space<vmem>>, vector<1x16x32xbf16>,
      %69 = vector.extract_strided_slice %53 {offsets = [3, 0, 0], sizes = [1, 16, 32], strides = [1, 1, 1]} : vector<4x16x32xbf16> to vector<1x16x32xbf16>
      %70 = vector.shape_cast %69 : vector<1x16x32xbf16> to vector<16x32xbf16>
      %c0_55 = arith.constant 0 : index
      %c0_56 = arith.constant 0 : index
      %c96 = arith.constant 96 : index
      %71 = vector.load %arg8[%c0_55, %c0_56, %c96] : memref<1x16x128xbf16, #tpu.memory_space<vmem>>, vector<1x16x32xbf16>
      %72 = vector.shape_cast %71 : vector<1x16x32xbf16> to vector<16x32xbf16>
      %73 = vector.shape_cast %70 : vector<16x32xbf16> to vector<1x16x32xbf16>
      tpu.vector_store %arg8[%c0_55, %c0_56, %c96], %73 {strides = array<i32>} : memref<1x16x128xbf16, #tpu.memory_space<vmem>>, vector<1x16x32xbf16>,
    } else {
    }
    return
  }
  func.func @transform_0(%arg0: i32, %arg1: i32, %arg2: i32) -> (i32, i32, i32, i32) {
    %c0_i32 = arith.constant 0 : i32
    %c0_i32_0 = arith.constant 0 : i32
    %c0_i32_1 = arith.constant 0 : i32
    return %arg0, %c0_i32, %arg1, %c0_i32_0 : i32, i32, i32, i32
  }
  func.func @transform_1(%arg0: i32, %arg1: i32, %arg2: i32) -> (i32, i32, i32, i32) {
    %c0_i32 = arith.constant 0 : i32
    %c0_i32_0 = arith.constant 0 : i32
    %c0_i32_1 = arith.constant 0 : i32
    return %arg0, %c0_i32, %arg2, %c0_i32_0 : i32, i32, i32, i32
  }
  func.func @transform_2(%arg0: i32, %arg1: i32, %arg2: i32) -> (i32, i32, i32, i32) {
    %c0_i32 = arith.constant 0 : i32
    %c0_i32_0 = arith.constant 0 : i32
    %c0_i32_1 = arith.constant 0 : i32
    return %arg0, %c0_i32, %arg2, %c0_i32_0 : i32, i32, i32, i32
  }
  func.func @transform_3(%arg0: i32, %arg1: i32, %arg2: i32) -> (i32, i32, i32) {
    %c0_i32 = arith.constant 0 : i32
    %c0_i32_0 = arith.constant 0 : i32
    return %arg0, %c0_i32, %arg1 : i32, i32, i32
  }
  func.func @transform_4(%arg0: i32, %arg1: i32, %arg2: i32) -> (i32, i32, i32) {
    %c0_i32 = arith.constant 0 : i32
    %c0_i32_0 = arith.constant 0 : i32
    return %arg0, %c0_i32, %arg2 : i32, i32, i32
  }
  func.func @transform_5(%arg0: i32, %arg1: i32, %arg2: i32) -> (i32, i32, i32) {
    %c0_i32 = arith.constant 0 : i32
    %c0_i32_0 = arith.constant 0 : i32
    return %arg0, %arg1, %c0_i32 : i32, i32, i32
  }
}

module attributes {stable_mosaic.version = 11 : i64} {
  func.func @_oproj_residual_kernel(%arg0: i32, %arg1: memref<32x128xbf16, #tpu.memory_space<vmem>>, %arg2: memref<128x128xbf16, #tpu.memory_space<vmem>>, %arg3: memref<32x128xf32, #tpu.memory_space<vmem>>, %arg4: memref<32x128xf32, #tpu.memory_space<vmem>>) attributes {dimension_semantics = [#tpu.dimension_semantics<parallel>], iteration_bounds = array<i64: 1>, scalar_prefetch = 0 : i64, scratch_operands = 0 : i64, tpu.core_type = #tpu.core_type<tc>, window_params = [{transform_indices = @transform_0, window_bounds = array<i64: 32, 128>}, {pipeline_mode = #tpu.pipeline_mode<synchronous>, transform_indices = @transform_1, window_bounds = array<i64: 128, 128>}, {transform_indices = @transform_2, window_bounds = array<i64: 32, 128>}, {transform_indices = @transform_3, window_bounds = array<i64: 32, 128>}]} {
    %c0 = arith.constant 0 : index
    %c0_0 = arith.constant 0 : index
    %0 = vector.load %arg1[%c0, %c0_0] : memref<32x128xbf16, #tpu.memory_space<vmem>>, vector<32x128xbf16>
    %c0_1 = arith.constant 0 : index
    %c0_2 = arith.constant 0 : index
    %1 = vector.load %arg2[%c0_1, %c0_2] : memref<128x128xbf16, #tpu.memory_space<vmem>>, vector<128x128xbf16>
    %cst = arith.constant dense<0.000000e+00> : vector<32x128xf32>
    %2 = tpu.matmul %0, %1, %cst {dimension_numbers = #tpu.dot_dimension_numbers<[1], [0], [0], [1], [0, 0, 1, 1], [], []>} : vector<32x128xbf16>, vector<128x128xbf16>, vector<32x128xf32> -> vector<32x128xf32>
    %c0_3 = arith.constant 0 : index
    %c0_4 = arith.constant 0 : index
    %3 = vector.load %arg3[%c0_3, %c0_4] : memref<32x128xf32, #tpu.memory_space<vmem>>, vector<32x128xf32>
    %4 = arith.addf %2, %3 : vector<32x128xf32>
    %c0_5 = arith.constant 0 : index
    %c0_6 = arith.constant 0 : index
    %5 = vector.load %arg4[%c0_5, %c0_6] : memref<32x128xf32, #tpu.memory_space<vmem>>, vector<32x128xf32>
    tpu.vector_store %arg4[%c0_5, %c0_6], %4 {strides = array<i32>} : memref<32x128xf32, #tpu.memory_space<vmem>>, vector<32x128xf32>,
    return
  }
  func.func @transform_0(%arg0: i32) -> (i32, i32) {
    %c0_i32 = arith.constant 0 : i32
    %c0_i32_0 = arith.constant 0 : i32
    return %arg0, %c0_i32 : i32, i32
  }
  func.func @transform_1(%arg0: i32) -> (i32, i32) {
    %c0_i32 = arith.constant 0 : i32
    %c0_i32_0 = arith.constant 0 : i32
    %c0_i32_1 = arith.constant 0 : i32
    return %c0_i32, %c0_i32_0 : i32, i32
  }
  func.func @transform_2(%arg0: i32) -> (i32, i32) {
    %c0_i32 = arith.constant 0 : i32
    %c0_i32_0 = arith.constant 0 : i32
    return %arg0, %c0_i32 : i32, i32
  }
  func.func @transform_3(%arg0: i32) -> (i32, i32) {
    %c0_i32 = arith.constant 0 : i32
    %c0_i32_0 = arith.constant 0 : i32
    return %arg0, %c0_i32 : i32, i32
  }
}

module attributes {stable_mosaic.version = 11 : i64} {
  func.func @_mlp_kernel(%arg0: i32, %arg1: i32, %arg2: memref<32x128xf32, #tpu.memory_space<vmem>>, %arg3: memref<1x128xf32, #tpu.memory_space<vmem>>, %arg4: memref<1x128xf32, #tpu.memory_space<vmem>>, %arg5: memref<128x512xbf16, #tpu.memory_space<vmem>>, %arg6: memref<1x512xf32, #tpu.memory_space<vmem>>, %arg7: memref<512x128xbf16, #tpu.memory_space<vmem>>, %arg8: memref<1x128xf32, #tpu.memory_space<vmem>>, %arg9: memref<32x128xf32, #tpu.memory_space<vmem>>, %arg10: memref<32x128xf32, #tpu.memory_space<vmem>>, %arg11: memref<32x128xbf16, #tpu.memory_space<vmem>>) attributes {dimension_semantics = [#tpu.dimension_semantics<parallel>, #tpu.dimension_semantics<arbitrary>], iteration_bounds = array<i64: 1, 1>, scalar_prefetch = 0 : i64, scratch_operands = 2 : i64, tpu.core_type = #tpu.core_type<tc>, window_params = [{transform_indices = @transform_0, window_bounds = array<i64: 32, 128>}, {pipeline_mode = #tpu.pipeline_mode<synchronous>, transform_indices = @transform_1, window_bounds = array<i64: 1, 128>}, {pipeline_mode = #tpu.pipeline_mode<synchronous>, transform_indices = @transform_2, window_bounds = array<i64: 1, 128>}, {transform_indices = @transform_3, window_bounds = array<i64: 128, 512>}, {transform_indices = @transform_4, window_bounds = array<i64: 1, 512>}, {transform_indices = @transform_5, window_bounds = array<i64: 512, 128>}, {pipeline_mode = #tpu.pipeline_mode<synchronous>, transform_indices = @transform_6, window_bounds = array<i64: 1, 128>}, {transform_indices = @transform_7, window_bounds = array<i64: 32, 128>}]} {
    %c0_i32 = arith.constant 0 : i32
    %0 = arith.cmpi eq, %arg1, %c0_i32 : i32
    %1 = arith.extui %0 : i1 to i32
    %c0_i32_0 = arith.constant 0 : i32
    %2 = arith.cmpi ne, %1, %c0_i32_0 : i32
    scf.if %2 {
      %c0_19 = arith.constant 0 : index
      %c0_20 = arith.constant 0 : index
      %31 = vector.load %arg2[%c0_19, %c0_20] : memref<32x128xf32, #tpu.memory_space<vmem>>, vector<32x128xf32>
      %c0_21 = arith.constant 0 : index
      %c0_22 = arith.constant 0 : index
      %32 = vector.load %arg3[%c0_21, %c0_22] : memref<1x128xf32, #tpu.memory_space<vmem>>, vector<1x128xf32>
      %c0_23 = arith.constant 0 : index
      %c0_24 = arith.constant 0 : index
      %33 = vector.load %arg4[%c0_23, %c0_24] : memref<1x128xf32, #tpu.memory_space<vmem>>, vector<1x128xf32>
      %cst_25 = arith.constant dense<0.000000e+00> : vector<32xf32>
      %34 = vector.multi_reduction <add>, %31, %cst_25 [1] : vector<32x128xf32> to vector<32xf32>
      %35 = vector.shape_cast %34 : vector<32xf32> to vector<32x1xf32>
      %cst_26 = arith.constant 1.280000e+02 : f32
      %36 = vector.broadcast %cst_26 : f32 to vector<32x1xf32>
      %37 = arith.divf %35, %36 : vector<32x1xf32>
      %38 = vector.broadcast %37 : vector<32x1xf32> to vector<32x128xf32>
      %39 = arith.subf %31, %38 : vector<32x128xf32>
      %40 = arith.mulf %39, %39 : vector<32x128xf32>
      %cst_27 = arith.constant dense<0.000000e+00> : vector<32xf32>
      %41 = vector.multi_reduction <add>, %40, %cst_27 [1] : vector<32x128xf32> to vector<32xf32>
      %42 = vector.shape_cast %41 : vector<32xf32> to vector<32x1xf32>
      %cst_28 = arith.constant 1.280000e+02 : f32
      %43 = vector.broadcast %cst_28 : f32 to vector<32x1xf32>
      %44 = arith.divf %42, %43 : vector<32x1xf32>
      %cst_29 = arith.constant 9.99999974E-6 : f32
      %45 = vector.broadcast %cst_29 : f32 to vector<32x1xf32>
      %46 = arith.addf %44, %45 : vector<32x1xf32>
      %47 = math.rsqrt %46 : vector<32x1xf32>
      %48 = vector.broadcast %47 : vector<32x1xf32> to vector<32x128xf32>
      %49 = arith.mulf %39, %48 : vector<32x128xf32>
      %50 = vector.broadcast %32 : vector<1x128xf32> to vector<32x128xf32>
      %51 = arith.mulf %49, %50 : vector<32x128xf32>
      %52 = vector.broadcast %33 : vector<1x128xf32> to vector<32x128xf32>
      %53 = arith.addf %51, %52 : vector<32x128xf32>
      %54 = arith.truncf %53 : vector<32x128xf32> to vector<32x128xbf16>
      %c0_30 = arith.constant 0 : index
      %c0_31 = arith.constant 0 : index
      %55 = vector.load %arg11[%c0_30, %c0_31] : memref<32x128xbf16, #tpu.memory_space<vmem>>, vector<32x128xbf16>
      tpu.vector_store %arg11[%c0_30, %c0_31], %54 {strides = array<i32>} : memref<32x128xbf16, #tpu.memory_space<vmem>>, vector<32x128xbf16>,
      %cst_32 = arith.constant 0.000000e+00 : f32
      %56 = vector.broadcast %cst_32 : f32 to vector<32x128xf32>
      %c0_33 = arith.constant 0 : index
      %c0_34 = arith.constant 0 : index
      %57 = vector.load %arg10[%c0_33, %c0_34] : memref<32x128xf32, #tpu.memory_space<vmem>>, vector<32x128xf32>
      tpu.vector_store %arg10[%c0_33, %c0_34], %56 {strides = array<i32>} : memref<32x128xf32, #tpu.memory_space<vmem>>, vector<32x128xf32>,
    } else {
    }
    %c0 = arith.constant 0 : index
    %c0_1 = arith.constant 0 : index
    %3 = vector.load %arg11[%c0, %c0_1] : memref<32x128xbf16, #tpu.memory_space<vmem>>, vector<32x128xbf16>
    %c0_2 = arith.constant 0 : index
    %c0_3 = arith.constant 0 : index
    %4 = vector.load %arg5[%c0_2, %c0_3] : memref<128x512xbf16, #tpu.memory_space<vmem>>, vector<128x512xbf16>
    %cst = arith.constant dense<0.000000e+00> : vector<32x512xf32>
    %5 = tpu.matmul %3, %4, %cst {dimension_numbers = #tpu.dot_dimension_numbers<[1], [0], [0], [1], [0, 0, 1, 1], [], []>} : vector<32x128xbf16>, vector<128x512xbf16>, vector<32x512xf32> -> vector<32x512xf32>
    %c0_4 = arith.constant 0 : index
    %c0_5 = arith.constant 0 : index
    %6 = vector.load %arg6[%c0_4, %c0_5] : memref<1x512xf32, #tpu.memory_space<vmem>>, vector<1x512xf32>
    %7 = vector.broadcast %6 : vector<1x512xf32> to vector<32x512xf32>
    %8 = arith.addf %5, %7 : vector<32x512xf32>
    %cst_6 = arith.constant 5.000000e-01 : f32
    %9 = vector.broadcast %cst_6 : f32 to vector<32x512xf32>
    %10 = arith.mulf %9, %8 : vector<32x512xf32>
    %cst_7 = arith.constant 4.471500e-02 : f32
    %11 = vector.broadcast %cst_7 : f32 to vector<32x512xf32>
    %12 = arith.mulf %11, %8 : vector<32x512xf32>
    %13 = arith.mulf %12, %8 : vector<32x512xf32>
    %14 = arith.mulf %13, %8 : vector<32x512xf32>
    %15 = arith.addf %8, %14 : vector<32x512xf32>
    %cst_8 = arith.constant 0.797884583 : f32
    %16 = vector.broadcast %cst_8 : f32 to vector<32x512xf32>
    %17 = arith.mulf %16, %15 : vector<32x512xf32>
    %18 = math.tanh %17 : vector<32x512xf32>
    %cst_9 = arith.constant 1.000000e+00 : f32
    %19 = vector.broadcast %cst_9 : f32 to vector<32x512xf32>
    %20 = arith.addf %19, %18 : vector<32x512xf32>
    %21 = arith.mulf %10, %20 : vector<32x512xf32>
    %c0_10 = arith.constant 0 : index
    %c0_11 = arith.constant 0 : index
    %22 = vector.load %arg10[%c0_10, %c0_11] : memref<32x128xf32, #tpu.memory_space<vmem>>, vector<32x128xf32>
    %23 = arith.truncf %21 : vector<32x512xf32> to vector<32x512xbf16>
    %c0_12 = arith.constant 0 : index
    %c0_13 = arith.constant 0 : index
    %24 = vector.load %arg7[%c0_12, %c0_13] : memref<512x128xbf16, #tpu.memory_space<vmem>>, vector<512x128xbf16>
    %cst_14 = arith.constant dense<0.000000e+00> : vector<32x128xf32>
    %25 = tpu.matmul %23, %24, %cst_14 {dimension_numbers = #tpu.dot_dimension_numbers<[1], [0], [0], [1], [0, 0, 1, 1], [], []>} : vector<32x512xbf16>, vector<512x128xbf16>, vector<32x128xf32> -> vector<32x128xf32>
    %26 = arith.addf %22, %25 : vector<32x128xf32>
    %c0_15 = arith.constant 0 : index
    %c0_16 = arith.constant 0 : index
    %27 = vector.load %arg10[%c0_15, %c0_16] : memref<32x128xf32, #tpu.memory_space<vmem>>, vector<32x128xf32>
    tpu.vector_store %arg10[%c0_15, %c0_16], %26 {strides = array<i32>} : memref<32x128xf32, #tpu.memory_space<vmem>>, vector<32x128xf32>,
    %c0_i32_17 = arith.constant 0 : i32
    %28 = arith.cmpi eq, %arg1, %c0_i32_17 : i32
    %29 = arith.extui %28 : i1 to i32
    %c0_i32_18 = arith.constant 0 : i32
    %30 = arith.cmpi ne, %29, %c0_i32_18 : i32
    scf.if %30 {
      %c0_19 = arith.constant 0 : index
      %c0_20 = arith.constant 0 : index
      %31 = vector.load %arg10[%c0_19, %c0_20] : memref<32x128xf32, #tpu.memory_space<vmem>>, vector<32x128xf32>
      %c0_21 = arith.constant 0 : index
      %c0_22 = arith.constant 0 : index
      %32 = vector.load %arg8[%c0_21, %c0_22] : memref<1x128xf32, #tpu.memory_space<vmem>>, vector<1x128xf32>
      %33 = vector.broadcast %32 : vector<1x128xf32> to vector<32x128xf32>
      %34 = arith.addf %31, %33 : vector<32x128xf32>
      %c0_23 = arith.constant 0 : index
      %c0_24 = arith.constant 0 : index
      %35 = vector.load %arg2[%c0_23, %c0_24] : memref<32x128xf32, #tpu.memory_space<vmem>>, vector<32x128xf32>
      %36 = arith.addf %34, %35 : vector<32x128xf32>
      %c0_25 = arith.constant 0 : index
      %c0_26 = arith.constant 0 : index
      %37 = vector.load %arg9[%c0_25, %c0_26] : memref<32x128xf32, #tpu.memory_space<vmem>>, vector<32x128xf32>
      tpu.vector_store %arg9[%c0_25, %c0_26], %36 {strides = array<i32>} : memref<32x128xf32, #tpu.memory_space<vmem>>, vector<32x128xf32>,
    } else {
    }
    return
  }
  func.func @transform_0(%arg0: i32, %arg1: i32) -> (i32, i32) {
    %c0_i32 = arith.constant 0 : i32
    %c0_i32_0 = arith.constant 0 : i32
    return %arg0, %c0_i32 : i32, i32
  }
  func.func @transform_1(%arg0: i32, %arg1: i32) -> (i32, i32) {
    %c0_i32 = arith.constant 0 : i32
    %c0_i32_0 = arith.constant 0 : i32
    %c0_i32_1 = arith.constant 0 : i32
    return %c0_i32, %c0_i32_0 : i32, i32
  }
  func.func @transform_2(%arg0: i32, %arg1: i32) -> (i32, i32) {
    %c0_i32 = arith.constant 0 : i32
    %c0_i32_0 = arith.constant 0 : i32
    %c0_i32_1 = arith.constant 0 : i32
    return %c0_i32, %c0_i32_0 : i32, i32
  }
  func.func @transform_3(%arg0: i32, %arg1: i32) -> (i32, i32) {
    %c0_i32 = arith.constant 0 : i32
    %c0_i32_0 = arith.constant 0 : i32
    return %c0_i32, %arg1 : i32, i32
  }
  func.func @transform_4(%arg0: i32, %arg1: i32) -> (i32, i32) {
    %c0_i32 = arith.constant 0 : i32
    %c0_i32_0 = arith.constant 0 : i32
    return %c0_i32, %arg1 : i32, i32
  }
  func.func @transform_5(%arg0: i32, %arg1: i32) -> (i32, i32) {
    %c0_i32 = arith.constant 0 : i32
    %c0_i32_0 = arith.constant 0 : i32
    return %arg1, %c0_i32 : i32, i32
  }
  func.func @transform_6(%arg0: i32, %arg1: i32) -> (i32, i32) {
    %c0_i32 = arith.constant 0 : i32
    %c0_i32_0 = arith.constant 0 : i32
    %c0_i32_1 = arith.constant 0 : i32
    return %c0_i32, %c0_i32_0 : i32, i32
  }
  func.func @transform_7(%arg0: i32, %arg1: i32) -> (i32, i32) {
    %c0_i32 = arith.constant 0 : i32
    %c0_i32_0 = arith.constant 0 : i32
    return %arg0, %c0_i32 : i32, i32
  }
}

module attributes {stable_mosaic.version = 11 : i64} {
  func.func @_ln_qkv_kernel(%arg0: i32, %arg1: memref<32x128xf32, #tpu.memory_space<vmem>>, %arg2: memref<1x128xf32, #tpu.memory_space<vmem>>, %arg3: memref<1x128xf32, #tpu.memory_space<vmem>>, %arg4: memref<128x384xbf16, #tpu.memory_space<vmem>>, %arg5: memref<32x384xbf16, #tpu.memory_space<vmem>>) attributes {dimension_semantics = [#tpu.dimension_semantics<parallel>], iteration_bounds = array<i64: 1>, scalar_prefetch = 0 : i64, scratch_operands = 0 : i64, tpu.core_type = #tpu.core_type<tc>, window_params = [{transform_indices = @transform_0, window_bounds = array<i64: 32, 128>}, {pipeline_mode = #tpu.pipeline_mode<synchronous>, transform_indices = @transform_1, window_bounds = array<i64: 1, 128>}, {pipeline_mode = #tpu.pipeline_mode<synchronous>, transform_indices = @transform_2, window_bounds = array<i64: 1, 128>}, {pipeline_mode = #tpu.pipeline_mode<synchronous>, transform_indices = @transform_3, window_bounds = array<i64: 128, 384>}, {transform_indices = @transform_4, window_bounds = array<i64: 32, 384>}]} {
    %c0 = arith.constant 0 : index
    %c0_0 = arith.constant 0 : index
    %0 = vector.load %arg1[%c0, %c0_0] : memref<32x128xf32, #tpu.memory_space<vmem>>, vector<32x128xf32>
    %c0_1 = arith.constant 0 : index
    %c0_2 = arith.constant 0 : index
    %1 = vector.load %arg2[%c0_1, %c0_2] : memref<1x128xf32, #tpu.memory_space<vmem>>, vector<1x128xf32>
    %c0_3 = arith.constant 0 : index
    %c0_4 = arith.constant 0 : index
    %2 = vector.load %arg3[%c0_3, %c0_4] : memref<1x128xf32, #tpu.memory_space<vmem>>, vector<1x128xf32>
    %cst = arith.constant dense<0.000000e+00> : vector<32xf32>
    %3 = vector.multi_reduction <add>, %0, %cst [1] : vector<32x128xf32> to vector<32xf32>
    %4 = vector.shape_cast %3 : vector<32xf32> to vector<32x1xf32>
    %cst_5 = arith.constant 1.280000e+02 : f32
    %5 = vector.broadcast %cst_5 : f32 to vector<32x1xf32>
    %6 = arith.divf %4, %5 : vector<32x1xf32>
    %7 = vector.broadcast %6 : vector<32x1xf32> to vector<32x128xf32>
    %8 = arith.subf %0, %7 : vector<32x128xf32>
    %9 = arith.mulf %8, %8 : vector<32x128xf32>
    %cst_6 = arith.constant dense<0.000000e+00> : vector<32xf32>
    %10 = vector.multi_reduction <add>, %9, %cst_6 [1] : vector<32x128xf32> to vector<32xf32>
    %11 = vector.shape_cast %10 : vector<32xf32> to vector<32x1xf32>
    %cst_7 = arith.constant 1.280000e+02 : f32
    %12 = vector.broadcast %cst_7 : f32 to vector<32x1xf32>
    %13 = arith.divf %11, %12 : vector<32x1xf32>
    %cst_8 = arith.constant 9.99999974E-6 : f32
    %14 = vector.broadcast %cst_8 : f32 to vector<32x1xf32>
    %15 = arith.addf %13, %14 : vector<32x1xf32>
    %16 = math.rsqrt %15 : vector<32x1xf32>
    %17 = vector.broadcast %16 : vector<32x1xf32> to vector<32x128xf32>
    %18 = arith.mulf %8, %17 : vector<32x128xf32>
    %19 = vector.broadcast %1 : vector<1x128xf32> to vector<32x128xf32>
    %20 = arith.mulf %18, %19 : vector<32x128xf32>
    %21 = vector.broadcast %2 : vector<1x128xf32> to vector<32x128xf32>
    %22 = arith.addf %20, %21 : vector<32x128xf32>
    %23 = arith.truncf %22 : vector<32x128xf32> to vector<32x128xbf16>
    %c0_9 = arith.constant 0 : index
    %c0_10 = arith.constant 0 : index
    %24 = vector.load %arg4[%c0_9, %c0_10] : memref<128x384xbf16, #tpu.memory_space<vmem>>, vector<128x384xbf16>
    %cst_11 = arith.constant dense<0.000000e+00> : vector<32x384xf32>
    %25 = tpu.matmul %23, %24, %cst_11 {dimension_numbers = #tpu.dot_dimension_numbers<[1], [0], [0], [1], [0, 0, 1, 1], [], []>} : vector<32x128xbf16>, vector<128x384xbf16>, vector<32x384xf32> -> vector<32x384xf32>
    %26 = arith.truncf %25 : vector<32x384xf32> to vector<32x384xbf16>
    %c0_12 = arith.constant 0 : index
    %c0_13 = arith.constant 0 : index
    %27 = vector.load %arg5[%c0_12, %c0_13] : memref<32x384xbf16, #tpu.memory_space<vmem>>, vector<32x384xbf16>
    tpu.vector_store %arg5[%c0_12, %c0_13], %26 {strides = array<i32>} : memref<32x384xbf16, #tpu.memory_space<vmem>>, vector<32x384xbf16>,
    return
  }
  func.func @transform_0(%arg0: i32) -> (i32, i32) {
    %c0_i32 = arith.constant 0 : i32
    %c0_i32_0 = arith.constant 0 : i32
    return %arg0, %c0_i32 : i32, i32
  }
  func.func @transform_1(%arg0: i32) -> (i32, i32) {
    %c0_i32 = arith.constant 0 : i32
    %c0_i32_0 = arith.constant 0 : i32
    %c0_i32_1 = arith.constant 0 : i32
    return %c0_i32, %c0_i32_0 : i32, i32
  }
  func.func @transform_2(%arg0: i32) -> (i32, i32) {
    %c0_i32 = arith.constant 0 : i32
    %c0_i32_0 = arith.constant 0 : i32
    %c0_i32_1 = arith.constant 0 : i32
    return %c0_i32, %c0_i32_0 : i32, i32
  }
  func.func @transform_3(%arg0: i32) -> (i32, i32) {
    %c0_i32 = arith.constant 0 : i32
    %c0_i32_0 = arith.constant 0 : i32
    %c0_i32_1 = arith.constant 0 : i32
    return %c0_i32, %c0_i32_0 : i32, i32
  }
  func.func @transform_4(%arg0: i32) -> (i32, i32) {
    %c0_i32 = arith.constant 0 : i32
    %c0_i32_0 = arith.constant 0 : i32
    return %arg0, %c0_i32 : i32, i32
  }
}

module attributes {stable_mosaic.version = 11 : i64} {
  func.func @_mlp_kernel(%arg0: i32, %arg1: i32, %arg2: memref<32x128xf32, #tpu.memory_space<vmem>>, %arg3: memref<1x128xf32, #tpu.memory_space<vmem>>, %arg4: memref<1x128xf32, #tpu.memory_space<vmem>>, %arg5: memref<128x512xbf16, #tpu.memory_space<vmem>>, %arg6: memref<1x512xf32, #tpu.memory_space<vmem>>, %arg7: memref<512x128xbf16, #tpu.memory_space<vmem>>, %arg8: memref<1x128xf32, #tpu.memory_space<vmem>>, %arg9: memref<32x128xf32, #tpu.memory_space<vmem>>, %arg10: memref<32x128xf32, #tpu.memory_space<vmem>>, %arg11: memref<32x128xbf16, #tpu.memory_space<vmem>>) attributes {dimension_semantics = [#tpu.dimension_semantics<parallel>, #tpu.dimension_semantics<arbitrary>], iteration_bounds = array<i64: 1, 1>, scalar_prefetch = 0 : i64, scratch_operands = 2 : i64, tpu.core_type = #tpu.core_type<tc>, window_params = [{transform_indices = @transform_0, window_bounds = array<i64: 32, 128>}, {pipeline_mode = #tpu.pipeline_mode<synchronous>, transform_indices = @transform_1, window_bounds = array<i64: 1, 128>}, {pipeline_mode = #tpu.pipeline_mode<synchronous>, transform_indices = @transform_2, window_bounds = array<i64: 1, 128>}, {transform_indices = @transform_3, window_bounds = array<i64: 128, 512>}, {transform_indices = @transform_4, window_bounds = array<i64: 1, 512>}, {transform_indices = @transform_5, window_bounds = array<i64: 512, 128>}, {pipeline_mode = #tpu.pipeline_mode<synchronous>, transform_indices = @transform_6, window_bounds = array<i64: 1, 128>}, {transform_indices = @transform_7, window_bounds = array<i64: 32, 128>}]} {
    %c0_i32 = arith.constant 0 : i32
    %0 = arith.cmpi eq, %arg1, %c0_i32 : i32
    %1 = arith.extui %0 : i1 to i32
    %c0_i32_0 = arith.constant 0 : i32
    %2 = arith.cmpi ne, %1, %c0_i32_0 : i32
    scf.if %2 {
      %c0_19 = arith.constant 0 : index
      %c0_20 = arith.constant 0 : index
      %31 = vector.load %arg2[%c0_19, %c0_20] : memref<32x128xf32, #tpu.memory_space<vmem>>, vector<32x128xf32>
      %c0_21 = arith.constant 0 : index
      %c0_22 = arith.constant 0 : index
      %32 = vector.load %arg3[%c0_21, %c0_22] : memref<1x128xf32, #tpu.memory_space<vmem>>, vector<1x128xf32>
      %c0_23 = arith.constant 0 : index
      %c0_24 = arith.constant 0 : index
      %33 = vector.load %arg4[%c0_23, %c0_24] : memref<1x128xf32, #tpu.memory_space<vmem>>, vector<1x128xf32>
      %cst_25 = arith.constant dense<0.000000e+00> : vector<32xf32>
      %34 = vector.multi_reduction <add>, %31, %cst_25 [1] : vector<32x128xf32> to vector<32xf32>
      %35 = vector.shape_cast %34 : vector<32xf32> to vector<32x1xf32>
      %cst_26 = arith.constant 1.280000e+02 : f32
      %36 = vector.broadcast %cst_26 : f32 to vector<32x1xf32>
      %37 = arith.divf %35, %36 : vector<32x1xf32>
      %38 = vector.broadcast %37 : vector<32x1xf32> to vector<32x128xf32>
      %39 = arith.subf %31, %38 : vector<32x128xf32>
      %40 = arith.mulf %39, %39 : vector<32x128xf32>
      %cst_27 = arith.constant dense<0.000000e+00> : vector<32xf32>
      %41 = vector.multi_reduction <add>, %40, %cst_27 [1] : vector<32x128xf32> to vector<32xf32>
      %42 = vector.shape_cast %41 : vector<32xf32> to vector<32x1xf32>
      %cst_28 = arith.constant 1.280000e+02 : f32
      %43 = vector.broadcast %cst_28 : f32 to vector<32x1xf32>
      %44 = arith.divf %42, %43 : vector<32x1xf32>
      %cst_29 = arith.constant 9.99999974E-6 : f32
      %45 = vector.broadcast %cst_29 : f32 to vector<32x1xf32>
      %46 = arith.addf %44, %45 : vector<32x1xf32>
      %47 = math.rsqrt %46 : vector<32x1xf32>
      %48 = vector.broadcast %47 : vector<32x1xf32> to vector<32x128xf32>
      %49 = arith.mulf %39, %48 : vector<32x128xf32>
      %50 = vector.broadcast %32 : vector<1x128xf32> to vector<32x128xf32>
      %51 = arith.mulf %49, %50 : vector<32x128xf32>
      %52 = vector.broadcast %33 : vector<1x128xf32> to vector<32x128xf32>
      %53 = arith.addf %51, %52 : vector<32x128xf32>
      %54 = arith.truncf %53 : vector<32x128xf32> to vector<32x128xbf16>
      %c0_30 = arith.constant 0 : index
      %c0_31 = arith.constant 0 : index
      %55 = vector.load %arg11[%c0_30, %c0_31] : memref<32x128xbf16, #tpu.memory_space<vmem>>, vector<32x128xbf16>
      tpu.vector_store %arg11[%c0_30, %c0_31], %54 {strides = array<i32>} : memref<32x128xbf16, #tpu.memory_space<vmem>>, vector<32x128xbf16>,
      %cst_32 = arith.constant 0.000000e+00 : f32
      %56 = vector.broadcast %cst_32 : f32 to vector<32x128xf32>
      %c0_33 = arith.constant 0 : index
      %c0_34 = arith.constant 0 : index
      %57 = vector.load %arg10[%c0_33, %c0_34] : memref<32x128xf32, #tpu.memory_space<vmem>>, vector<32x128xf32>
      tpu.vector_store %arg10[%c0_33, %c0_34], %56 {strides = array<i32>} : memref<32x128xf32, #tpu.memory_space<vmem>>, vector<32x128xf32>,
    } else {
    }
    %c0 = arith.constant 0 : index
    %c0_1 = arith.constant 0 : index
    %3 = vector.load %arg11[%c0, %c0_1] : memref<32x128xbf16, #tpu.memory_space<vmem>>, vector<32x128xbf16>
    %c0_2 = arith.constant 0 : index
    %c0_3 = arith.constant 0 : index
    %4 = vector.load %arg5[%c0_2, %c0_3] : memref<128x512xbf16, #tpu.memory_space<vmem>>, vector<128x512xbf16>
    %cst = arith.constant dense<0.000000e+00> : vector<32x512xf32>
    %5 = tpu.matmul %3, %4, %cst {dimension_numbers = #tpu.dot_dimension_numbers<[1], [0], [0], [1], [0, 0, 1, 1], [], []>} : vector<32x128xbf16>, vector<128x512xbf16>, vector<32x512xf32> -> vector<32x512xf32>
    %c0_4 = arith.constant 0 : index
    %c0_5 = arith.constant 0 : index
    %6 = vector.load %arg6[%c0_4, %c0_5] : memref<1x512xf32, #tpu.memory_space<vmem>>, vector<1x512xf32>
    %7 = vector.broadcast %6 : vector<1x512xf32> to vector<32x512xf32>
    %8 = arith.addf %5, %7 : vector<32x512xf32>
    %cst_6 = arith.constant 5.000000e-01 : f32
    %9 = vector.broadcast %cst_6 : f32 to vector<32x512xf32>
    %10 = arith.mulf %9, %8 : vector<32x512xf32>
    %cst_7 = arith.constant 4.471500e-02 : f32
    %11 = vector.broadcast %cst_7 : f32 to vector<32x512xf32>
    %12 = arith.mulf %11, %8 : vector<32x512xf32>
    %13 = arith.mulf %12, %8 : vector<32x512xf32>
    %14 = arith.mulf %13, %8 : vector<32x512xf32>
    %15 = arith.addf %8, %14 : vector<32x512xf32>
    %cst_8 = arith.constant 0.797884583 : f32
    %16 = vector.broadcast %cst_8 : f32 to vector<32x512xf32>
    %17 = arith.mulf %16, %15 : vector<32x512xf32>
    %18 = math.tanh %17 : vector<32x512xf32>
    %cst_9 = arith.constant 1.000000e+00 : f32
    %19 = vector.broadcast %cst_9 : f32 to vector<32x512xf32>
    %20 = arith.addf %19, %18 : vector<32x512xf32>
    %21 = arith.mulf %10, %20 : vector<32x512xf32>
    %c0_10 = arith.constant 0 : index
    %c0_11 = arith.constant 0 : index
    %22 = vector.load %arg10[%c0_10, %c0_11] : memref<32x128xf32, #tpu.memory_space<vmem>>, vector<32x128xf32>
    %23 = arith.truncf %21 : vector<32x512xf32> to vector<32x512xbf16>
    %c0_12 = arith.constant 0 : index
    %c0_13 = arith.constant 0 : index
    %24 = vector.load %arg7[%c0_12, %c0_13] : memref<512x128xbf16, #tpu.memory_space<vmem>>, vector<512x128xbf16>
    %cst_14 = arith.constant dense<0.000000e+00> : vector<32x128xf32>
    %25 = tpu.matmul %23, %24, %cst_14 {dimension_numbers = #tpu.dot_dimension_numbers<[1], [0], [0], [1], [0, 0, 1, 1], [], []>} : vector<32x512xbf16>, vector<512x128xbf16>, vector<32x128xf32> -> vector<32x128xf32>
    %26 = arith.addf %22, %25 : vector<32x128xf32>
    %c0_15 = arith.constant 0 : index
    %c0_16 = arith.constant 0 : index
    %27 = vector.load %arg10[%c0_15, %c0_16] : memref<32x128xf32, #tpu.memory_space<vmem>>, vector<32x128xf32>
    tpu.vector_store %arg10[%c0_15, %c0_16], %26 {strides = array<i32>} : memref<32x128xf32, #tpu.memory_space<vmem>>, vector<32x128xf32>,
    %c0_i32_17 = arith.constant 0 : i32
    %28 = arith.cmpi eq, %arg1, %c0_i32_17 : i32
    %29 = arith.extui %28 : i1 to i32
    %c0_i32_18 = arith.constant 0 : i32
    %30 = arith.cmpi ne, %29, %c0_i32_18 : i32
    scf.if %30 {
      %c0_19 = arith.constant 0 : index
      %c0_20 = arith.constant 0 : index
      %31 = vector.load %arg10[%c0_19, %c0_20] : memref<32x128xf32, #tpu.memory_space<vmem>>, vector<32x128xf32>
      %c0_21 = arith.constant 0 : index
      %c0_22 = arith.constant 0 : index
      %32 = vector.load %arg8[%c0_21, %c0_22] : memref<1x128xf32, #tpu.memory_space<vmem>>, vector<1x128xf32>
      %33 = vector.broadcast %32 : vector<1x128xf32> to vector<32x128xf32>
      %34 = arith.addf %31, %33 : vector<32x128xf32>
      %c0_23 = arith.constant 0 : index
      %c0_24 = arith.constant 0 : index
      %35 = vector.load %arg2[%c0_23, %c0_24] : memref<32x128xf32, #tpu.memory_space<vmem>>, vector<32x128xf32>
      %36 = arith.addf %34, %35 : vector<32x128xf32>
      %c0_25 = arith.constant 0 : index
      %c0_26 = arith.constant 0 : index
      %37 = vector.load %arg9[%c0_25, %c0_26] : memref<32x128xf32, #tpu.memory_space<vmem>>, vector<32x128xf32>
      tpu.vector_store %arg9[%c0_25, %c0_26], %36 {strides = array<i32>} : memref<32x128xf32, #tpu.memory_space<vmem>>, vector<32x128xf32>,
    } else {
    }
    return
  }
  func.func @transform_0(%arg0: i32, %arg1: i32) -> (i32, i32) {
    %c0_i32 = arith.constant 0 : i32
    %c0_i32_0 = arith.constant 0 : i32
    return %arg0, %c0_i32 : i32, i32
  }
  func.func @transform_1(%arg0: i32, %arg1: i32) -> (i32, i32) {
    %c0_i32 = arith.constant 0 : i32
    %c0_i32_0 = arith.constant 0 : i32
    %c0_i32_1 = arith.constant 0 : i32
    return %c0_i32, %c0_i32_0 : i32, i32
  }
  func.func @transform_2(%arg0: i32, %arg1: i32) -> (i32, i32) {
    %c0_i32 = arith.constant 0 : i32
    %c0_i32_0 = arith.constant 0 : i32
    %c0_i32_1 = arith.constant 0 : i32
    return %c0_i32, %c0_i32_0 : i32, i32
  }
  func.func @transform_3(%arg0: i32, %arg1: i32) -> (i32, i32) {
    %c0_i32 = arith.constant 0 : i32
    %c0_i32_0 = arith.constant 0 : i32
    return %c0_i32, %arg1 : i32, i32
  }
  func.func @transform_4(%arg0: i32, %arg1: i32) -> (i32, i32) {
    %c0_i32 = arith.constant 0 : i32
    %c0_i32_0 = arith.constant 0 : i32
    return %c0_i32, %arg1 : i32, i32
  }
  func.func @transform_5(%arg0: i32, %arg1: i32) -> (i32, i32) {
    %c0_i32 = arith.constant 0 : i32
    %c0_i32_0 = arith.constant 0 : i32
    return %arg1, %c0_i32 : i32, i32
  }
  func.func @transform_6(%arg0: i32, %arg1: i32) -> (i32, i32) {
    %c0_i32 = arith.constant 0 : i32
    %c0_i32_0 = arith.constant 0 : i32
    %c0_i32_1 = arith.constant 0 : i32
    return %c0_i32, %c0_i32_0 : i32, i32
  }
  func.func @transform_7(%arg0: i32, %arg1: i32) -> (i32, i32) {
    %c0_i32 = arith.constant 0 : i32
    %c0_i32_0 = arith.constant 0 : i32
    return %arg0, %c0_i32 : i32, i32
  }
}

</mosaic_0001>

<bundles_post_ra>
// kernel: image_transformer_forward.10
= control target key start
LH: loop header
LB: loop body
LE: loop exit
PB: predicated region body
PF: predicated region fallthrough
CT: control target
= control target key end

     0   :  { %s280_s1 = inlined_call_operand.vmem [shape: bf16[128,128], index: 1, kind: input, shape index: {}]   ;;  %s281_s0 = inlined_call_operand.vmem [shape: bf16[32,128], index: 0, kind: input, shape index: {}]   ;;  %s282_s2 = inlined_call_operand.vmem [shape: f32[32,128], index: 2, kind: input, shape index: {}]   ;;  %s283_s3 = inlined_call_operand.vmem [shape: f32[32,128], index: 3, kind: output, shape index: {}]  }
   0x1   :  { %v196_v0 = vld [vmem:[%s280_s1] sm:$0xff]   ;;  %v197_v1 = vld [vmem:[%s280_s1 + $0x8] sm:$0xff]   ;;  %v198_v2 = vld [vmem:[%s280_s1 + $0x10] sm:$0xff]  }
   0x2   :  { %176 = vmatprep.subr.bf16.mxu0 %v196_v0  ;;  %v199_v3 = vld [vmem:[%s280_s1 + $0x18] sm:$0xff]   ;;  %v204_v4 = vld [vmem:[%s281_s0] sm:$0xff]   ;;  %v201_v6 = vld [vmem:[%s280_s1 + $0x28] sm:$0xff]  }
   0x3   :  { %177 = vmatpush3.bf16.msra.mxu0 %v196_v0  ;;  %192 = vmatprep.mubr.bf16.mxu0 %v204_v4  ;;  %v200_v5 = vld [vmem:[%s280_s1 + $0x20] sm:$0xff]   ;;  %v202_v7 = vld [vmem:[%s280_s1 + $0x30] sm:$0xff]   ;;  %v203_v8 = vld [vmem:[%s280_s1 + $0x38] sm:$0xff]  }
   0x4   :  { %178 = vmatprep.subr.bf16.mxu0 %v197_v1  ;;  %v205_v9 = vld [vmem:[%s281_s0 + $0x8] sm:$0xff]   ;;  %v37_v10 = vld [vmem:[%s282_s2 + $0x10] sm:$0xff]  ;;  %v35_v11 = vld [vmem:[%s282_s2] sm:$0xff] }
   0x5   :  { %v38_v13 = vld [vmem:[%s282_s2 + $0x18] sm:$0xff]  ;;  %v36_v16 = vld [vmem:[%s282_s2 + $0x8] sm:$0xff] }
   0x7   :  { %179 = vmatpush3.bf16.msra.mxu0 %v197_v1 }
   0x8   :  { %180 = vmatprep.subr.bf16.mxu0 %v198_v2 }
   0xb   :  { %181 = vmatpush3.bf16.msra.mxu0 %v198_v2 }
   0xc   :  { %182 = vmatprep.subr.bf16.mxu0 %v199_v3 }
   0xf   :  { %183 = vmatpush3.bf16.msra.mxu0 %v199_v3 }
  0x10   :  { %184 = vmatprep.subr.bf16.mxu0 %v200_v5 }
  0x13   :  { %185 = vmatpush3.bf16.msra.mxu0 %v200_v5 }
  0x14   :  { %186 = vmatprep.subr.bf16.mxu0 %v201_v6 }
  0x17   :  { %187 = vmatpush3.bf16.msra.mxu0 %v201_v6 }
  0x18   :  { %188 = vmatprep.subr.bf16.mxu0 %v202_v7 }
  0x1b   :  { %189 = vmatpush3.bf16.msra.mxu0 %v202_v7 }
  0x1c   :  { %190 = vmatprep.subr.bf16.mxu0 %v203_v8 }
  0x1f   :  { %191 = vmatpush3.bf16.msra.mxu0 %v203_v8 }
  0x22   :  { %193 = vmatmul.mubr.bf16.vlgmr.msra.gmra.mrb[0].mxu0 %v205_v9 }
  0xf5   :  { %v194_v12 = vpop.f32.mrb[0].mxu0 }
  0xf6   :  { %v142_v14 = vadd.f32 %v194_v12, %v37_v10  ;;  %v133_v15 = vpop.f32.mrb[1].mxu0 }
  0xf7   :  { %v134_v17 = vadd.f32 %v133_v15, %v35_v11  ;;  %v195_v18 = vpop.f32.mrb[2].mxu0 }
  0xf8   :  { %150 = vst [vmem:[%s283_s3 + $0x10] sm:$0xff] %v142_v14  ;;  %v145_v19 = vadd.f32 %v195_v18, %v38_v13  ;;  %v136_v20 = vpop.f32.mrb[3].mxu0 }
  0xf9   :  { %148 = vst [vmem:[%s283_s3] sm:$0xff] %v134_v17  ;;  %v137_v21 = vadd.f32 %v136_v20, %v36_v16 }
  0xfa   :  { %151 = vst [vmem:[%s283_s3 + $0x18] sm:$0xff] %v145_v19 }
  0xfb   :  { %149 = vst [vmem:[%s283_s3 + $0x8] sm:$0xff] %v137_v21 }

// kernel: image_transformer_forward.8
= control target key start
LH: loop header
LB: loop body
LE: loop exit
PB: predicated region body
PF: predicated region fallthrough
CT: control target
= control target key end

     0   :  { %9 = vsyncpa [#allocation3], 0  ;;  %s708_s0 = inlined_call_operand.hbm [shape: f32[32,128], index: 0, kind: input, shape index: {}]   ;;  %s709_s1 = inlined_call_operand.vmem [shape: f32[1,128], index: 1, kind: input, shape index: {}]   ;;  %s710_s2 = inlined_call_operand.vmem [shape: f32[1,128], index: 2, kind: input, shape index: {}]   ;;  %s711_s3 = inlined_call_operand.hbm [shape: bf16[128,384], index: 3, kind: input, shape index: {}]   ;;  %s712_s4 = inlined_call_operand.vmem [shape: bf16[32,384], index: 4, kind: output, shape index: {}]  }
   0x1   :  { %10 = vsyncpa [#allocation5], 0  ;;  %s602_s15 = smov [#allocation2]   ;;  %s554_s19 = scalar_lea.hbm %s708_s0, 512 }
   0x2   :  { %s16_s16 = sshll.u32 %s602_s15, 4  ;;  %p555_p0 = scmp.ne.s32.totalorder %s708_s0, %s554_s19  ;;  %s17_s16 = int_to_ptr.vmem [resolvable:$true] %s16_s16 }
   0x3   :  { %p558_p1 = scmp.lt.u32.totalorder %s554_s19, %s708_s0 }
   0x5   :  { %p560_p2 = pnand %p558_p1, %p555_p0 }
   0x7   :  { %563 = shalt.err (!%p560_p2)
}
   0x8   :  { %s564_s24 = scalar_lea.vmem %s17_s16, 512  ;;  %p569_p4 = scmp.lt.s32.totalorder %s17_s16, %s17_s16 }
   0x9   :  { %p565_p3 = scmp.ne.s32.totalorder %s17_s16, %s564_s24  ;;  %p570_p5 = scmp.lt.s32.totalorder %s564_s24, %s564_s24 }
   0xb   :  { %p571_p6 = por %p570_p5, %p569_p4 }
   0xd   :  { %p572_p7 = pnand %p571_p6, %p565_p3 }
   0xf   :  { %575 = shalt.err (!%p572_p7)
}
  0x10   :  { %s603_s25 = smov 128   ;;  %s604_s26 = smov 8  }
  0x11   :  { %22 = dma.hbm_to_vmem [thread:$0]  %s708_s0, 512, %s17_s16, [#allocation3], %s603_s25, %s603_s25, %s604_s26  }
  0x12   :  { %s605_s29 = smov [#allocation4]   ;;  %s576_s7 = scalar_lea.hbm %s711_s3, 3072 }
  0x13   :  { %s32_s30 = sshll.u32 %s605_s29, 4  ;;  %p577_p8 = scmp.ne.s32.totalorder %s711_s3, %s576_s7  ;;  %s33_s30 = int_to_ptr.vmem [resolvable:$true] %s32_s30 }
  0x14   :  { %p580_p9 = scmp.lt.u32.totalorder %s576_s7, %s711_s3 }
  0x16   :  { %p582_p10 = pnand %p580_p9, %p577_p8 }
  0x18   :  { %585 = shalt.err (!%p582_p10)
}
  0x19   :  { %s586_s12 = scalar_lea.vmem %s33_s30, 3072  ;;  %p591_p12 = scmp.lt.s32.totalorder %s33_s30, %s33_s30 }
  0x1a   :  { %p587_p11 = scmp.ne.s32.totalorder %s33_s30, %s586_s12  ;;  %p592_p13 = scmp.lt.s32.totalorder %s586_s12, %s586_s12 }
  0x1c   :  { %p593_p0 = por %p592_p13, %p591_p12 }
  0x1e   :  { %p594_p1 = pnand %p593_p0, %p587_p11 }
  0x20   :  { %597 = shalt.err (!%p594_p1)
}
  0x21   :  { %s606_s0 = smov 192   ;;  %s607_s13 = smov 12  }
  0x22   :  { %38 = dma.hbm_to_vmem [thread:$0]  %s711_s3, 3072, %s33_s30, [#allocation5], %s606_s0, %s606_s0, %s607_s13  }
  0x23   :  { %598 = dma.done.wait [#allocation3], 512  }
  0x24   :  { %599 = vsyncadd [#allocation3], 4294966784 }
  0x25   :  { %600 = dma.done.wait [#allocation5], 3072  }
  0x26   :  { %601 = vsyncadd [#allocation5], 4294964224  ;;  %v46_v0 = vld [vmem:[#allocation2] sm:$0xff]  ;;  %v48_v1 = vld [vmem:[#allocation2 + $0x10] sm:$0xff]  ;;  %v608_v39 = vmov 0  }
  0x27   :  { %v47_v2 = vld [vmem:[#allocation2 + $0x8] sm:$0xff]  ;;  %52 = vadd.xlane.f32.xlu0 %v46_v0  ;;  %56 = vadd.xlane.f32.xlu1 %v48_v1  ;;  %v49_v3 = vld [vmem:[#allocation2 + $0x18] sm:$0xff]  ;;  %v514_v4 = vld [vmem:[#allocation4 + $0x4] ss:$12 sps:$4 sm:$0xff]  }
  0x28   :  { %v516_v5 = vld [vmem:[#allocation4] ss:$12 sps:$4 sm:$0xff]   ;;  %v517_v6 = vld [vmem:[#allocation4 + $0x1c] ss:$12 sps:$4 sm:$0xff]   ;;  %279 = vmatprep.subr.bf16.mxu0 %v514_v4  ;;  %v520_v24 = vld [vmem:[#allocation4 + $0x18] ss:$12 sps:$4 sm:$0xff]   ;;  %311 = vmatprep.mubr.bf16.mxu0 %v608_v39 }
  0x29   :  { %v519_v7 = vld [vmem:[#allocation4 + $0x8] ss:$12 sps:$4 sm:$0xff]   ;;  %280 = vmatpush1.bf16.msra.mxu0 %v516_v5  ;;  %v523_v26 = vld [vmem:[#allocation4 + $0x20] ss:$12 sps:$4 sm:$0xff]   ;;  %v524_v27 = vld [vmem:[#allocation4 + $0x30] ss:$12 sps:$4 sm:$0xff]  }
  0x2a   :  { %487 = vmatprep.subr.bf16.mxu1 %v519_v7  ;;  %281 = vmatprep.subr.bf16.mxu0 %v517_v6  ;;  %v521_v25 = vld [vmem:[#allocation4 + $0x34] ss:$12 sps:$4 sm:$0xff]   ;;  %v525_v28 = vld [vmem:[#allocation4 + $0x4c] ss:$12 sps:$4 sm:$0xff]   ;;  %v529_v31 = vld [vmem:[#allocation4 + $0x64] ss:$12 sps:$4 sm:$0xff]  }
  0x2b   :  { %54 = vadd.xlane.f32.xlu0 %v47_v2  ;;  %58 = vadd.xlane.f32.xlu1 %v49_v3  ;;  %v527_v29 = vld [vmem:[#allocation4 + $0x38] ss:$12 sps:$4 sm:$0xff]   ;;  %v528_v30 = vld [vmem:[#allocation4 + $0x48] ss:$12 sps:$4 sm:$0xff]   ;;  %v531_v32 = vld [vmem:[#allocation4 + $0x50] ss:$12 sps:$4 sm:$0xff]  }
  0x2c   :  { %488 = vmatpush3.bf16.msra.mxu1 %v519_v7  ;;  %v532_v33 = vld [vmem:[#allocation4 + $0x60] ss:$12 sps:$4 sm:$0xff]   ;;  %v533_v34 = vld [vmem:[#allocation4 + $0x7c] ss:$12 sps:$4 sm:$0xff]   ;;  %v536_v36 = vld [vmem:[#allocation4 + $0x78] ss:$12 sps:$4 sm:$0xff]  }
  0x2d   :  { %282 = vmatpush1.bf16.msra.mxu0 %v520_v24  ;;  %489 = vmatprep.subr.bf16.mxu1 %v523_v26  ;;  %v535_v35 = vld [vmem:[#allocation4 + $0x68] ss:$12 sps:$4 sm:$0xff]   ;;  %v539_v38 = vld [vmem:[#allocation4 + $0x80] ss:$12 sps:$4 sm:$0xff]   ;;  %v540_v40 = vld [vmem:[#allocation4 + $0x90] ss:$12 sps:$4 sm:$0xff]  }
  0x2e   :  { %283 = vmatprep.subr.bf16.mxu0 %v521_v25  ;;  %v537_v37 = vld [vmem:[#allocation4 + $0x94] ss:$12 sps:$4 sm:$0xff]   ;;  %v541_v41 = vld [vmem:[#allocation4 + $0xac] ss:$12 sps:$4 sm:$0xff]   ;;  %v545_v44 = vld [vmem:[#allocation4 + $0xb0] ss:$12 sps:$4 sm:$0xff]  }
  0x2f   :  { %v543_v42 = vld [vmem:[#allocation4 + $0x98] ss:$12 sps:$4 sm:$0xff]   ;;  %v544_v43 = vld [vmem:[#allocation4 + $0xa8] ss:$12 sps:$4 sm:$0xff]   ;;  %v435_v59 = vld [vmem:[%s709_s1] ss:$0 sm:$0xff] }
  0x30   :  { %490 = vmatpush3.bf16.msra.mxu1 %v523_v26 }
  0x31   :  { %284 = vmatpush1.bf16.msra.mxu0 %v524_v27  ;;  %491 = vmatprep.subr.bf16.mxu1 %v527_v29 }
  0x32   :  { %285 = vmatprep.subr.bf16.mxu0 %v525_v28 }
  0x34   :  { %492 = vmatpush3.bf16.msra.mxu1 %v527_v29 }
  0x35   :  { %286 = vmatpush1.bf16.msra.mxu0 %v528_v30  ;;  %493 = vmatprep.subr.bf16.mxu1 %v531_v32 }
  0x36   :  { %287 = vmatprep.subr.bf16.mxu0 %v529_v31 }
  0x38   :  { %494 = vmatpush3.bf16.msra.mxu1 %v531_v32 }
  0x39   :  { %288 = vmatpush1.bf16.msra.mxu0 %v532_v33  ;;  %495 = vmatprep.subr.bf16.mxu1 %v535_v35 }
  0x3a   :  { %289 = vmatprep.subr.bf16.mxu0 %v533_v34 }
  0x3c   :  { %496 = vmatpush3.bf16.msra.mxu1 %v535_v35 }
  0x3d   :  { %290 = vmatpush1.bf16.msra.mxu0 %v536_v36  ;;  %497 = vmatprep.subr.bf16.mxu1 %v539_v38 }
  0x3e   :  { %291 = vmatprep.subr.bf16.mxu0 %v537_v37 }
  0x40   :  { %498 = vmatpush3.bf16.msra.mxu1 %v539_v38 }
  0x41   :  { %292 = vmatpush1.bf16.msra.mxu0 %v540_v40  ;;  %499 = vmatprep.subr.bf16.mxu1 %v543_v42 }
  0x42   :  { %293 = vmatprep.subr.bf16.mxu0 %v541_v41 }
  0x44   :  { %500 = vmatpush3.bf16.msra.mxu1 %v543_v42 }
  0x45   :  { %294 = vmatpush1.bf16.msra.mxu0 %v544_v43  ;;  %501 = vmatprep.subr.bf16.mxu1 %v545_v44 }
  0x48   :  { %502 = vmatpush3.bf16.msra.mxu1 %v545_v44 }
  0xb4   :  { %v53_v8 = vpop.xlane.xlu0 %52  ;;  %v57_v9 = vpop.xlane.xlu1 %56 }
  0xb5   :  { %v61_v10 = vmul.f32 0.0078125, %v53_v8  ;;  %v63_v11 = vmul.f32 0.0078125, %v57_v9 }
  0xb7   :  { %v658_v12 = vsub.f32 %v46_v0, %v61_v10  ;;  %v660_v13 = vsub.f32 %v48_v1, %v63_v11  ;;  %v436_v0 = vld [vmem:[%s710_s2] ss:$0 sm:$0xff] }
  0xb8   :  { %v55_v14 = vpop.xlane.xlu0 %54  ;;  %v59_v15 = vpop.xlane.xlu1 %58 }
  0xb9   :  { %v62_v16 = vmul.f32 0.0078125, %v55_v14  ;;  %v69_v17 = vmul.f32 %v658_v12, %v658_v12  ;;  %v64_v18 = vmul.f32 0.0078125, %v59_v15  ;;  %v71_v21 = vmul.f32 %v660_v13, %v660_v13 }
  0xbb   :  { %v664_v19 = vsub.f32 %v47_v2, %v62_v16  ;;  %73 = vadd.xlane.f32.xlu0 %v69_v17  ;;  %v666_v20 = vsub.f32 %v49_v3, %v64_v18 }
  0xbd   :  { %v70_v22 = vmul.f32 %v664_v19, %v664_v19  ;;  %v72_v23 = vmul.f32 %v666_v20, %v666_v20 }
  0xbf   :  { %77 = vadd.xlane.f32.xlu0 %v71_v21  ;;  %75 = vadd.xlane.f32.xlu1 %v70_v22 }
  0xc3   :  { %79 = vadd.xlane.f32.xlu1 %v72_v23 }
 0x148   :  { %v74_v45 = vpop.xlane.xlu0 %73 }
 0x149   :  { %v81_v46 = vmul.f32 0.0078125, %v74_v45 }
 0x14b   :  { %v85_v47 = vadd.f32 1e-05, %v81_v46 }
 0x14c   :  { %v76_v48 = vpop.xlane.xlu1 %75  ;;  %v78_v49 = vpop.xlane.xlu0 %77 }
 0x14d   :  { %546 = vrsqrt.f32 %v85_v47  ;;  %v82_v50 = vmul.f32 0.0078125, %v76_v48  ;;  %v83_v51 = vmul.f32 0.0078125, %v78_v49 }
 0x14f   :  { %v86_v52 = vadd.f32 1e-05, %v82_v50  ;;  %v87_v53 = vadd.f32 1e-05, %v83_v51 }
 0x150   :  { %v80_v54 = vpop.xlane.xlu1 %79 }
 0x151   :  { %548 = vrsqrt.f32 %v86_v52  ;;  %v84_v55 = vmul.f32 0.0078125, %v80_v54 }
 0x152   :  { %550 = vrsqrt.f32 %v87_v53 }
 0x153   :  { %v88_v56 = vadd.f32 1e-05, %v84_v55 }
 0x155   :  { %552 = vrsqrt.f32 %v88_v56 }
 0x157   :  { %v547_v57 = vpop.eup %546 }
 0x158   :  { %v93_v58 = vmul.f32 %v547_v57, %v658_v12 }
 0x15a   :  { %v103_v63 = vmul.f32 %v435_v59, %v93_v58 }
 0x15b   :  { %v549_v60 = vpop.eup %548 }
 0x15c   :  { %v551_v61 = vpop.eup %550  ;;  %v94_v62 = vmul.f32 %v549_v60, %v664_v19  ;;  %v113_v4 = vadd.f32 %v436_v0, %v103_v63 }
 0x15d   :  { %v95_v1 = vmul.f32 %v551_v61, %v660_v13 }
 0x15e   :  { %v104_v2 = vmul.f32 %v435_v59, %v94_v62 }
 0x15f   :  { %v553_v3 = vpop.eup %552  ;;  %v105_v7 = vmul.f32 %v435_v59, %v95_v1 }
 0x160   :  { %v114_v5 = vadd.f32 %v436_v0, %v104_v2  ;;  %v96_v6 = vmul.f32 %v553_v3, %v666_v20 }
 0x161   :  { %v115_v10 = vadd.f32 %v436_v0, %v105_v7 }
 0x162   :  { %v117_v8 = vpack.c.bf16 %v114_v5, %v113_v4  ;;  %v106_v9 = vmul.f32 %v435_v59, %v96_v6 }
 0x164   :  { %312 = vmatmul.mubr.bf16.vlgmr.msra.gmra.mrb[0].mxu0 %v117_v8  ;;  %503 = vmatprep.mubr.bf16.mxu1 %v117_v8  ;;  %v116_v11 = vadd.f32 %v436_v0, %v106_v9 }
 0x165   :  { %321 = vmatprep.mubr.bf16.mxu0 %v608_v39 }
 0x166   :  { %v118_v12 = vpack.c.bf16 %v116_v11, %v115_v10 }
 0x168   :  { %504 = vmatmul.mubr.bf16.vlgmr.msra.gmra.mrb[0].mxu1 %v118_v12 }
 0x16c   :  { %322 = vmatmul.mubr.bf16.gmra.mrb[4].mxu0 %v118_v12 }
 0x237   :  { %v313_v14 = vpop.f32.mrb[0].mxu0 }
 0x238   :  { %v315_v15 = vpop.f32.mrb[1].mxu0 }
 0x239   :  { %v469_v13 = vpack.c.bf16 %v315_v15, %v313_v14  ;;  %v317_v16 = vpop.f32.mrb[2].mxu0 }
 0x23a   :  { %v319_v17 = vpop.f32.mrb[3].mxu0 }
 0x23b   :  { %421 = vst [vmem:[%s712_s4] sm:$0xff] %v469_v13  ;;  %v471_v18 = vpack.c.bf16 %v319_v17, %v317_v16  ;;  %v505_v19 = vpop.f32.mrb[0].mxu1 }
 0x23c   :  { %v474_v20 = vpack.c.bf16 %v505_v19, %v505_v19  ;;  %v366_v21 = vpop.f32.mrb[1].mxu1 }
 0x23d   :  { %423 = vst [vmem:[%s712_s4 + $0xc] sm:$0xff] %v471_v18  ;;  %v470_v22 = vpack.c.bf16 %v366_v21, %v366_v21  ;;  %v506_v23 = vpop.f32.mrb[2].mxu1 }
 0x23e   :  { %426 = vst [vmem:[%s712_s4 + $0x20] sm:$0xf] %v474_v20  ;;  %v476_v24 = vpack.c.bf16 %v506_v23, %v506_v23  ;;  %v369_v25 = vpop.f32.mrb[3].mxu1 }
 0x23f   :  { %422 = vst [vmem:[%s712_s4 + $0x8] sm:$0xf] %v470_v22  ;;  %v472_v26 = vpack.c.bf16 %v369_v25, %v369_v25  ;;  %v323_v27 = vpop.f32.mrb[4].mxu0 }
 0x240   :  { %428 = vst [vmem:[%s712_s4 + $0x2c] sm:$0xf] %v476_v24  ;;  %v325_v28 = vpop.f32.mrb[5].mxu0 }
 0x241   :  { %424 = vst [vmem:[%s712_s4 + $0x14] sm:$0xf] %v472_v26  ;;  %v473_v29 = vpack.c.bf16 %v325_v28, %v323_v27  ;;  %v327_v30 = vpop.f32.mrb[6].mxu0 }
 0x242   :  { %v329_v31 = vpop.f32.mrb[7].mxu0 }
 0x243   :  { %425 = vst [vmem:[%s712_s4 + $0x18] sm:$0xff] %v473_v29  ;;  %v475_v32 = vpack.c.bf16 %v329_v31, %v327_v30 }
 0x245   :  { %427 = vst [vmem:[%s712_s4 + $0x24] sm:$0xff] %v475_v32 }
 0x246   :  { %433 = vsyncpa [#allocation3], 1 }
 0x247   :  { %434 = vsyncpa [#allocation5], 1 }

// kernel: image_transformer_forward.9
= control target key start
LH: loop header
LB: loop body
LE: loop exit
PB: predicated region body
PF: predicated region fallthrough
CT: control target
= control target key end

     0   :  { %s1818_s18 = smov 0   ;;  %s1820_s19 = smov 0   ;;  %s2147_s0 = inlined_call_operand.vmem [shape: bf16[2,4,16,32], index: 0, kind: input, shape index: {}]   ;;  %s2148_s1 = inlined_call_operand.vmem [shape: bf16[2,4,16,32], index: 1, kind: input, shape index: {}]   ;;  %s2149_s2 = inlined_call_operand.vmem [shape: bf16[2,4,16,32], index: 2, kind: input, shape index: {}]   ;;  %s2150_s3 = inlined_call_operand.vmem [shape: f32[2,4,16], index: 3, kind: input, shape index: {}, may-alias: {3,4}]   ;;  %s2151_s4 = inlined_call_operand.vmem [shape: f32[2,4,16], index: 4, kind: input, shape index: {}, may-alias: {3,4}]   ;;  %s2152_s5 = inlined_call_operand.vmem [shape: bf16[2,16,128], index: 5, kind: output, shape index: {}]  }
   0x1   :  { %s1822_s20 = smov 0  }
   0x2 LB: > { %s34_s21 = sadd.s32 1, %s1774_s19  ;;  %p1544_p0 = scmp.ge.s32.totalorder %s1778_s20, 1  ;;  %s1778_s20 = sphi %s1822_s20, %s15_s20   ;;  %s1774_s19 = sphi %s1820_s19, %s2154_s19   ;;  %s1770_s18 = sphi %s1818_s18, %s2153_s18  }
   0x3   : > { %p36_p1 = scmp.ge.s32.totalorder %s34_s21, 2  ;;  %p277_p2 = scmp.lt.s32.totalorder %s1778_s20, 3 }
   0x5   : > { %s2156_s21 = smov (%p36_p1, %s34_s21), 0  ;;  %p278_p3 = pnand %p1544_p0, %p277_p2 }
   0x6   : > { %p346_p4 = scmp.lt.s32.totalorder (!%p278_p3), %s1770_s18, 1  ;;  %vm421_vm0 = vcmask (!%p278_p3), 261120   ;;  %v1780_v0 = vmov (!%p278_p3), 0.0   ;;  %vm1781_vm1 = vmmov (!%p278_p3), 0   ;;  %v449_v1 = vlaneseq (!%p278_p3)  ;;  %s1785_s14 = smov (!%p278_p3), 32  }
   0x7   : > { %281 = sbr.rel (%p278_p3) target bundleno = 964 (0x3c4), region = 40  ;;  %1614 = vmatprep.subr.bf16.mxu0 (!%p278_p3), %v1780_v0  ;;  %422 = vst.msk [vmem:[#allocation4] sm:$0xff] (!%p278_p3), %vm421_vm0, %v1780_v0  ;;  %423 = vst.msk [vmem:[#allocation4 + $0x8] sm:$0xff] (!%p278_p3), %vm421_vm0, %v1780_v0  ;;  %1620 = vmatprep.subr.bf16.mxu1 (!%p278_p3), %v1780_v0  ;;  %v1782_v2 = vmov (!%p278_p3), 1966171168   ;;  %vm404_vm2 = vcmask (!%p278_p3), 7168  }
   0x8   : > { %424 = vst.msk [vmem:[#allocation4 + $0x10] sm:$0xff] (!%p278_p3), %vm421_vm0, %v1780_v0  ;;  %425 = vst.msk [vmem:[#allocation4 + $0x18] sm:$0xff] (!%p278_p3), %vm421_vm0, %v1780_v0  ;;  %1616 = vmatprep.mubr.msk.bf16.mxu0 (!%p278_p3), %vm1781_vm1, %v1780_v0  ;;  %1622 = vmatprep.mubr.msk.bf16.mxu1 (!%p278_p3), %vm1781_vm1, %v1780_v0  ;;  %v503_v3 = vunpack.c.l.s4 (!%p278_p3), %v1782_v2  ;;  %v450_v6 = vshrl.u32 (!%p278_p3), %v449_v1, 7  ;;  %v1783_v33 = vmov (!%p278_p3), -inf   ;;  %vm783_vm3 = vcmask (!%p278_p3), 130048   ;;  %s1786_s15 = smov (!%p278_p3), 64  }
   0x9   : > { %426 = vst.msk [vmem:[#allocation4 + $0x20] sm:$0xff] (!%p278_p3), %vm421_vm0, %v1780_v0  ;;  %427 = vst.msk [vmem:[#allocation4 + $0x28] sm:$0xff] (!%p278_p3), %vm421_vm0, %v1780_v0  ;;  %s1787_s16 = smov (!%p278_p3), 96   ;;  %vm1339_vm4 = vcmask (!%p278_p3), 257024   ;;  %vm1353_vm5 = vcmask (!%p278_p3), 519424   ;;  %vm1367_vm6 = vcmask (!%p278_p3), 781824  }
   0xa   : > { %428 = vst.msk [vmem:[#allocation4 + $0x30] sm:$0xff] (!%p278_p3), %vm421_vm0, %v1780_v0  ;;  %429 = vst.msk [vmem:[#allocation4 + $0x38] sm:$0xff] (!%p278_p3), %vm421_vm0, %v1780_v0  ;;  %v504_v7 = vunpack.c.0.s8 (!%p278_p3), %v503_v3  ;;  %v1878_v13 = vsub.s32 (!%p278_p3), 0, %v450_v6  ;;  %v462_v16 = vsub.s32 (!%p278_p3), 1, %v450_v6  ;;  %v473_v27 = vsub.s32 (!%p278_p3), 2, %v450_v6 }
   0xb   : > { %v484_v31 = vsub.s32 (!%p278_p3), 3, %v450_v6  ;;  %405 = vst.msk [vmem:[#allocation2] sm:$0xff] (!%p278_p3), %vm404_vm2, %v1783_v33  ;;  %406 = vst.msk [vmem:[#allocation2 + $0x8] sm:$0xff] (!%p278_p3), %vm404_vm2, %v1783_v33  ;;  %vm1381_vm7 = vcmask (!%p278_p3), 1044224  }
   0xc   : > { %v507_v14 = vsub.s32 (!%p278_p3), %v504_v7, %v450_v6  ;;  %407 = vst.msk [vmem:[#allocation2 + $0x10] sm:$0xff] (!%p278_p3), %vm404_vm2, %v1783_v33  ;;  %408 = vst.msk [vmem:[#allocation2 + $0x18] sm:$0xff] (!%p278_p3), %vm404_vm2, %v1783_v33 }
   0xd   : > { %409 = vst.msk [vmem:[#allocation2 + $0x20] sm:$0xff] (!%p278_p3), %vm404_vm2, %v1783_v33  ;;  %410 = vst.msk [vmem:[#allocation2 + $0x28] sm:$0xff] (!%p278_p3), %vm404_vm2, %v1783_v33 }
   0xe   : > { %s2158_s18 = smov (!%p346_p4, %s1770_s18), 1  ;;  %411 = vst.msk [vmem:[#allocation2 + $0x30] sm:$0xff] %vm404_vm2, %v1783_v33  ;;  %412 = vst.msk [vmem:[#allocation2 + $0x38] sm:$0xff] %vm404_vm2, %v1783_v33 }
   0xf   : > { %s1586_s22 = sshll.u32 %s2158_s18, 5  ;;  %s1551_s29 = sshll.u32 %s2158_s18, 2  ;;  %413 = vst.msk [vmem:[#allocation3] sm:$0xff] %vm404_vm2, %v1780_v0  ;;  %414 = vst.msk [vmem:[#allocation3 + $0x8] sm:$0xff] %vm404_vm2, %v1780_v0 }
  0x10   : > { %s363_s25 = scalar_lea.vmem %s2148_s1, %s1586_s22  ;;  %s1867_s28 = scalar_lea.vmem %s2147_s0, %s1586_s22  ;;  %415 = vst.msk [vmem:[#allocation3 + $0x10] sm:$0xff] %vm404_vm2, %v1780_v0  ;;  %416 = vst.msk [vmem:[#allocation3 + $0x18] sm:$0xff] %vm404_vm2, %v1780_v0 }
  0x11   : > { %v1696_v4 = vld [vmem:[%s363_s25] sm:$0xff]   ;;  %v1697_v5 = vld [vmem:[%s363_s25 + $0x8] sm:$0xff]   ;;  %v1700_v11 = vld [vmem:[%s363_s25 + $0x10] sm:$0xff]   ;;  %s381_s7 = scalar_lea.vmem %s2150_s3, %s1551_s29  ;;  %s388_s10 = scalar_lea.vmem %s2151_s4, %s1551_s29  ;;  %417 = vst.msk [vmem:[#allocation3 + $0x20] sm:$0xff] %vm404_vm2, %v1780_v0 }
  0x12   : > { %v561_v8 = vsel %vm421_vm0, %v1696_v4, 0  ;;  %v618_v9 = vsel %vm421_vm0, %v1697_v5, 0  ;;  %v1698_v10 = vld [vmem:[%s1867_s28] sm:$0xff]   ;;  %v1701_v12 = vld [vmem:[%s363_s25 + $0x18] sm:$0xff]   ;;  %v1699_v15 = vld [vmem:[%s1867_s28 + $0x8] sm:$0xff]   ;;  %v675_v17 = vsel %vm421_vm0, %v1700_v11, 0  ;;  %s1889_s13 = scalar_lea.vmem %s2149_s2, %s1586_s22 }
  0x13   : > { %1615 = vmatpush3.bf16.xpose.msra.mxu0 %v561_v8  ;;  %1621 = vmatpush3.bf16.xpose.msra.mxu1 %v618_v9  ;;  %v732_v18 = vsel %vm421_vm0, %v1701_v12, 0  ;;  %v446_v19 = vld [vmem:[%s381_s7] sm:$0xf]  ;;  %v1702_v28 = vld [vmem:[%s1867_s28 + $0x10] sm:$0xff]   ;;  %v1703_v29 = vld [vmem:[%s1867_s28 + $0x18] sm:$0xff]   ;;  %418 = vst.msk [vmem:[#allocation3 + $0x28] sm:$0xff] %vm404_vm2, %v1780_v0 }
  0x14   : > { %1626 = vmatprep.subr.bf16.mxu0 %v1780_v0  ;;  %1632 = vmatprep.subr.bf16.mxu1 %v1780_v0  ;;  %v1555_v20 = vld.sshfl [vmem:[%s388_s10] sm:$0x33 pattern:$0x75316420]  ;;  %v447_v21 = vmul.f32 -6.0153986e+37, %v446_v19 }
  0x15   : > { %v1891_v22 = vrot.slane %v1555_v20, %v507_v14  ;;  %v501_v23 = vcombine.high %v1555_v20, %v1555_v20  ;;  %419 = vst.msk [vmem:[#allocation3 + $0x30] sm:$0xff] %vm404_vm2, %v1780_v0  ;;  %420 = vst.msk [vmem:[#allocation3 + $0x38] sm:$0xff] %vm404_vm2, %v1780_v0  ;;  %s1589_s17 = sshll.u32 %s2158_s18, 3 }
  0x16   : > { %v452_v24 = vrot.slane %v447_v21, %v1878_v13  ;;  %v463_v25 = vrot.slane %v447_v21, %v462_v16  ;;  %v474_v30 = vrot.slane %v447_v21, %v473_v27  ;;  %v485_v32 = vrot.slane %v447_v21, %v484_v31  ;;  %v1985_v31 = vld [vmem:[#allocation2 + $0x10] sm:$0xff]  ;;  %s397_s24 = scalar_lea.vmem %s2152_s5, %s1589_s17 }
  0x17   : > { %v1898_v26 = vrot.slane %v501_v23, %v507_v14  ;;  %v521_v37 = vrot.slane %v1891_v22, %v1878_v13  ;;  %v516_v42 = vcombine.high %v1891_v22, %v1891_v22 }
  0x18   : > { %454 = vbcast.lane.b32.xlu0 %v452_v24, 256  ;;  %465 = vbcast.lane.b32.xlu1 %v463_v25, 256 }
  0x19   : > { %v525_v38 = vrot.slane %v1898_v26, %v1878_v13  ;;  %v517_v44 = vcombine.high %v1898_v26, %v1898_v26  ;;  %v529_v53 = vrot.slane %v516_v42, %v1878_v13  ;;  %v1978_v26 = vld [vmem:[#allocation2] sm:$0xff] }
  0x1a   : > { %1617 = vmatmul.mubr.msk.bf16.vlgmr.msra.gmra.mrb[0].mxu0 %vm421_vm0, %v1698_v10  ;;  %1623 = vmatmul.mubr.msk.bf16.vlgmr.msra.gmra.mrb[0].mxu1 %vm421_vm0, %v1699_v15 }
  0x1b   : > { %1627 = vmatpush3.bf16.xpose.msra.mxu0 %v675_v17  ;;  %1633 = vmatpush3.bf16.xpose.msra.mxu1 %v732_v18  ;;  %v533_v57 = vrot.slane %v517_v44, %v1878_v13  ;;  %v2018_v44 = vld [vmem:[#allocation2 + $0x28] sm:$0xff] }
  0x1c   : > { %1628 = vmatprep.mubr.msk.bf16.mxu0 %vm1781_vm1, %v1780_v0  ;;  %1634 = vmatprep.mubr.msk.bf16.mxu1 %vm1781_vm1, %v1780_v0 }
  0x1d   : > { %1638 = vmatprep.subr.bf16.mxu0 %v1780_v0  ;;  %1644 = vmatprep.subr.bf16.mxu1 %v1780_v0 }
  0x1e   : > { %458 = vbcast.lane.b32.xlu0 %v452_v24, 264  ;;  %469 = vbcast.lane.b32.xlu1 %v463_v25, 264  ;;  %v1784_v25 = vmov 0  }
  0x1f   : > { %1694 = vset.pattern.permute.xlu1 %v1784_v25  ;;  %1695 = vset.pattern.permute.xlu0 %v1784_v25 }
  0x22   : > { %1629 = vmatmul.mubr.msk.bf16.vlgmr.msra.gmra.mrb[4].mxu0 %vm421_vm0, %v1702_v28  ;;  %1635 = vmatmul.mubr.msk.bf16.vlgmr.msra.gmra.mrb[4].mxu1 %vm421_vm0, %v1703_v29  ;;  %v1980_v28 = vld [vmem:[#allocation2 + $0x8] sm:$0xff] }
  0x23   : > { %1640 = vmatprep.mubr.msk.bf16.mxu0 %vm1781_vm1, %v1780_v0  ;;  %1646 = vmatprep.mubr.msk.bf16.mxu1 %vm1781_vm1, %v1780_v0 }
  0x24   : > { %476 = vbcast.lane.b32.xlu0 %v474_v30, 256  ;;  %480 = vbcast.lane.b32.xlu1 %v474_v30, 264 }
  0x28   : > { %487 = vbcast.lane.b32.xlu0 %v485_v32, 256  ;;  %491 = vbcast.lane.b32.xlu1 %v485_v32, 264 }
  0x8a   : > { %v455_v34 = vpop.permute.xlu0 %454  ;;  %v466_v35 = vpop.permute.xlu1 %465 }
  0x8b   : > { %v538_v41 = vmul.f32 %v521_v37, %v455_v34  ;;  %v540_v43 = vmul.f32 %v525_v38, %v466_v35 }
  0x90   : > { %v459_v36 = vpop.permute.xlu0 %458  ;;  %v470_v40 = vpop.permute.xlu1 %469 }
  0x91   : > { %v539_v45 = vmul.f32 %v521_v37, %v459_v36  ;;  %v541_v48 = vmul.f32 %v525_v38, %v470_v40  ;;  %v2003_v37 = vld [vmem:[#allocation2 + $0x18] sm:$0xff]  ;;  %v2005_v38 = vld [vmem:[#allocation2 + $0x20] sm:$0xff] }
  0x96   : > { %v477_v39 = vpop.permute.xlu0 %476  ;;  %v481_v46 = vpop.permute.xlu1 %480 }
  0x97   : > { %v542_v3 = vmul.f32 %v529_v53, %v477_v39  ;;  %v543_v6 = vmul.f32 %v529_v53, %v481_v46  ;;  %v2037_v53 = vld [vmem:[#allocation2 + $0x38] sm:$0xff] }
  0x9a   : > { %v488_v49 = vpop.permute.xlu0 %487  ;;  %v492_v4 = vpop.permute.xlu1 %491 }
  0x9b   : > { %v544_v5 = vmul.f32 %v533_v57, %v488_v49  ;;  %v545_v8 = vmul.f32 %v533_v57, %v492_v4 }
  0xed   : > { %v597_v47 = vpop.f32.mrb[0].mxu0  ;;  %v654_v52 = vpop.f32.mrb[0].mxu1 }
  0xee   : > { %v1944_v50 = vadd.f32 %v597_v47, %v538_v41  ;;  %v1618_v51 = vpop.f32.mrb[1].mxu0  ;;  %v1947_v54 = vadd.f32 %v654_v52, %v540_v43  ;;  %v1624_v56 = vpop.f32.mrb[1].mxu1 }
  0xef   : > { %v600_v55 = vpop.f32.mrb[2].mxu0  ;;  %v657_v60 = vpop.f32.mrb[2].mxu1 }
  0xf0   : > { %v1950_v58 = vadd.f32 %v600_v55, %v539_v45  ;;  %v1619_v59 = vpop.f32.mrb[3].mxu0  ;;  %v784_v61 = vsel %vm783_vm3, %v1944_v50, -inf  ;;  %v1954_v62 = vadd.f32 %v657_v60, %v541_v48  ;;  %v1625_v63 = vpop.f32.mrb[3].mxu1  ;;  %v790_v2 = vsel %vm783_vm3, %v1947_v54, -inf  ;;  %v2020_v45 = vld [vmem:[#allocation2 + $0x30] sm:$0xff]  ;;  %v1704_v60 = vld [vmem:[%s1889_s13] sm:$0xff]  }
  0xf1   : > { %785 = vmax.xlane.f32.xlu0 %v784_v61  ;;  %1639 = vmatpush3.bf16.msra.mxu0 %v1704_v60  ;;  %v1705_v63 = vld [vmem:[%s1889_s13 + $0x8] sm:$0xff]  }
  0xf2   : > { %v787_v1 = vsel %vm783_vm3, %v1950_v58, -inf  ;;  %v793_v16 = vsel %vm783_vm3, %v1954_v62, -inf  ;;  %1650 = vmatprep.subr.bf16.mxu0 %v1780_v0  ;;  %1645 = vmatpush3.bf16.msra.mxu1 %v1705_v63 }
  0xf3   : > { %788 = vmax.xlane.f32.xlu1 %v787_v1  ;;  %1656 = vmatprep.subr.bf16.mxu1 %v1780_v0 }
  0xf5   : > { %791 = vmax.xlane.f32.xlu0 %v790_v2  ;;  %v711_v7 = vpop.f32.mrb[4].mxu0  ;;  %v768_v10 = vpop.f32.mrb[4].mxu1 }
  0xf6   : > { %v1630_v9 = vpop.f32.mrb[5].mxu0  ;;  %v1960_v11 = vadd.f32 %v711_v7, %v542_v3  ;;  %v1636_v13 = vpop.f32.mrb[5].mxu1  ;;  %v1962_v14 = vadd.f32 %v768_v10, %v544_v5 }
  0xf7   : > { %v714_v12 = vpop.f32.mrb[6].mxu0  ;;  %v771_v18 = vpop.f32.mrb[6].mxu1 }
  0xf8   : > { %v1964_v15 = vadd.f32 %v714_v12, %v543_v6  ;;  %v1631_v17 = vpop.f32.mrb[7].mxu0  ;;  %v796_v19 = vsel %vm783_vm3, %v1960_v11, -inf  ;;  %v1970_v20 = vadd.f32 %v771_v18, %v545_v8  ;;  %v1637_v21 = vpop.f32.mrb[7].mxu1  ;;  %v802_v23 = vsel %vm783_vm3, %v1962_v14, -inf }
  0xf9   : > { %794 = vmax.xlane.f32.xlu0 %v793_v16  ;;  %797 = vmax.xlane.f32.xlu1 %v796_v19  ;;  %v1706_v21 = vld [vmem:[%s1889_s13 + $0x10] sm:$0xff]  }
  0xfa   : > { %v799_v22 = vsel %vm783_vm3, %v1964_v15, -inf  ;;  %v805_v24 = vsel %vm783_vm3, %v1970_v20, -inf }
  0xfd   : > { %800 = vmax.xlane.f32.xlu0 %v799_v22  ;;  %803 = vmax.xlane.f32.xlu1 %v802_v23 }
 0x101   : > { %806 = vmax.xlane.f32.xlu0 %v805_v24 }
 0x17e   : > { %v786_v27 = vpop.xlane.xlu0 %785 }
 0x17f   : > { %v1983_v29 = vmax.f32 %v1978_v26, %v786_v27 }
 0x180   : > { %v789_v30 = vpop.xlane.xlu1 %788 }
 0x181   : > { %v816_v32 = vsub.f32 %v1978_v26, %v1983_v29  ;;  %1245 = vst.msk [vmem:[#allocation2] sm:$0xff] %vm404_vm2, %v1983_v29  ;;  %v1992_v33 = vmax.f32 %v1980_v28, %v789_v30  ;;  %842 = vperm.xlu1 %1694, %v1983_v29   ;;  %v910_v29 = vld [vmem:[#allocation3 + $0x30] sm:$0xff] }
 0x182   : > { %v792_v34 = vpop.xlane.xlu0 %791 }
 0x183   : > { %v817_v35 = vsub.f32 %v1980_v28, %v1992_v33  ;;  %1246 = vst.msk [vmem:[#allocation2 + $0x8] sm:$0xff] %vm404_vm2, %v1992_v33  ;;  %v2000_v36 = vmax.f32 %v1985_v31, %v792_v34  ;;  %847 = vperm.xlu0 %1695, %v1992_v33  }
 0x185   : > { %v818_v39 = vsub.f32 %v1985_v31, %v2000_v36  ;;  %1247 = vst.msk [vmem:[#allocation2 + $0x10] sm:$0xff] %vm404_vm2, %v2000_v36  ;;  %852 = vperm.xlu1 %1694, %v2000_v36  }
 0x186   : > { %v795_v40 = vpop.xlane.xlu0 %794  ;;  %v798_v41 = vpop.xlane.xlu1 %797 }
 0x187   : > { %v2013_v42 = vmax.f32 %v2003_v37, %v795_v40  ;;  %v2016_v43 = vmax.f32 %v2005_v38, %v798_v41 }
 0x189   : > { %v819_v46 = vsub.f32 %v2003_v37, %v2013_v42  ;;  %1248 = vst.msk [vmem:[#allocation2 + $0x18] sm:$0xff] %vm404_vm2, %v2013_v42  ;;  %857 = vperm.xlu1 %1694, %v2013_v42   ;;  %v820_v47 = vsub.f32 %v2005_v38, %v2016_v43  ;;  %1249 = vst.msk [vmem:[#allocation2 + $0x20] sm:$0xff] %vm404_vm2, %v2016_v43  ;;  %v906_v37 = vld [vmem:[#allocation3 + $0x10] sm:$0xff]  ;;  %v824_v42 = vmul.f32 1.442695, %v816_v32 }
 0x18a   : > { %v801_v48 = vpop.xlane.xlu0 %800  ;;  %v804_v49 = vpop.xlane.xlu1 %803 }
 0x18b   : > { %v2032_v51 = vmax.f32 %v2018_v44, %v801_v48  ;;  %v2035_v52 = vmax.f32 %v2020_v45, %v804_v49 }
 0x18d   : > { %v821_v55 = vsub.f32 %v2018_v44, %v2032_v51  ;;  %1250 = vst.msk [vmem:[#allocation2 + $0x28] sm:$0xff] %vm404_vm2, %v2032_v51  ;;  %862 = vperm.xlu1 %1694, %v2016_v43   ;;  %v822_v56 = vsub.f32 %v2020_v45, %v2035_v52  ;;  %1251 = vst.msk [vmem:[#allocation2 + $0x30] sm:$0xff] %vm404_vm2, %v2035_v52  ;;  %v907_v45 = vld [vmem:[#allocation3 + $0x18] sm:$0xff] }
 0x18e   : > { %v807_v57 = vpop.xlane.xlu0 %806 }
 0x18f   : > { %v2049_v59 = vmax.f32 %v2037_v53, %v807_v57  ;;  %v834_v31 = vmul.f32 1.442695, %v821_v55  ;;  %v836_v38 = vmul.f32 1.442695, %v822_v56 }
 0x191   : > { %v823_v61 = vsub.f32 %v2037_v53, %v2049_v59  ;;  %1252 = vst.msk [vmem:[#allocation2 + $0x38] sm:$0xff] %vm404_vm2, %v2049_v59  ;;  %872 = vperm.xlu1 %1694, %v2035_v52  }
 0x193   : > { %v838_v36 = vmul.f32 1.442695, %v823_v61  ;;  %v908_v61 = vld [vmem:[#allocation3 + $0x20] sm:$0xff] }
 0x195   : > { %867 = vperm.xlu1 %1694, %v2032_v51  }
 0x199   : > { %877 = vperm.xlu1 %1694, %v2049_v59  }
 0x200   : > { %v843_v1 = vpop.permute.xlu1 %842 }
 0x201   : > { %v880_v2 = vsub.f32 %v1944_v50, %v843_v1 }
 0x202   : > { %v848_v3 = vpop.permute.xlu0 %847 }
 0x203   : > { %v888_v4 = vmul.f32 1.442695, %v880_v2  ;;  %v881_v5 = vsub.f32 %v1950_v58, %v848_v3 }
 0x204   : > { %v853_v6 = vpop.permute.xlu1 %852 }
 0x205   : > { %v890_v7 = vmul.f32 1.442695, %v881_v5  ;;  %v882_v8 = vsub.f32 %v1947_v54, %v853_v6  ;;  %1708 = vpow2.f32 %v888_v4 }
 0x207   : > { %1710 = vpow2.f32 %v890_v7  ;;  %v892_v9 = vmul.f32 1.442695, %v882_v8  ;;  %v832_v7 = vmul.f32 1.442695, %v820_v47 }
 0x208   : > { %v858_v10 = vpop.permute.xlu1 %857 }
 0x209   : > { %1712 = vpow2.f32 %v892_v9  ;;  %v883_v12 = vsub.f32 %v1954_v62, %v858_v10 }
 0x20b   : > { %v894_v13 = vmul.f32 1.442695, %v883_v12  ;;  %v826_v12 = vmul.f32 1.442695, %v817_v35 }
 0x20c   : > { %v863_v16 = vpop.permute.xlu1 %862 }
 0x20d   : > { %1714 = vpow2.f32 %v894_v13  ;;  %v884_v50 = vsub.f32 %v1960_v11, %v863_v16 }
 0x20f   : > { %v896_v17 = vmul.f32 1.442695, %v884_v50  ;;  %v1709_v18 = vpop.eup %1708 }
 0x210   : > { %v873_v58 = vpop.permute.xlu1 %872  ;;  %v920_v2 = vsel %vm783_vm3, %v1709_v18, 0.0 }
 0x211   : > { %v1711_v19 = vpop.eup %1710  ;;  %1716 = vpow2.f32 %v896_v17  ;;  %v886_v54 = vsub.f32 %v1962_v14, %v873_v58  ;;  %v1707_v14 = vld [vmem:[%s1889_s13 + $0x18] sm:$0xff]   ;;  %v904_v58 = vld [vmem:[#allocation3] sm:$0xff] }
 0x212   : > { %v1017_v22 = vpack.c.bf16 %v1711_v19, %v1709_v18  ;;  %v923_v8 = vsel %vm783_vm3, %v1711_v19, 0.0  ;;  %v909_v19 = vld [vmem:[#allocation3 + $0x28] sm:$0xff] }
 0x213   : > { %v1713_v23 = vpop.eup %1712  ;;  %v900_v24 = vmul.f32 1.442695, %v886_v54 }
 0x214   : > { %v868_v25 = vpop.permute.xlu1 %867  ;;  %1641 = vmatmul.mubr.msk.bf16.vlgmr.msra.gmra.mrb[8].mxu0 %vm783_vm3, %v1017_v22  ;;  %v926_v62 = vsel %vm783_vm3, %v1713_v23, 0.0 }
 0x215   : > { %1718 = vpow2.f32 %v900_v24  ;;  %v885_v11 = vsub.f32 %v1964_v15, %v868_v25  ;;  %927 = vadd.xlane.f32.xlu1 %v926_v62  ;;  %1651 = vmatpush3.bf16.msra.mxu0 %v1706_v21 }
 0x216   : > { %1652 = vmatprep.mubr.msk.bf16.mxu0 %vm1781_vm1, %v1780_v0 }
 0x217   : > { %v1715_v27 = vpop.eup %1714  ;;  %v898_v30 = vmul.f32 1.442695, %v885_v11 }
 0x218   : > { %v878_v34 = vpop.permute.xlu1 %877  ;;  %v929_v40 = vsel %vm783_vm3, %v1715_v27, 0.0  ;;  %v1018_v41 = vpack.c.bf16 %v1715_v27, %v1713_v23  ;;  %v911_v23 = vld [vmem:[#allocation3 + $0x38] sm:$0xff] }
 0x219   : > { %1720 = vpow2.f32 %v898_v30  ;;  %v887_v48 = vsub.f32 %v1970_v20, %v878_v34  ;;  %930 = vadd.xlane.f32.xlu0 %v929_v40 }
 0x21a   : > { %1647 = vmatmul.mubr.msk.bf16.vlgmr.msra.gmra.mrb[8].mxu1 %vm783_vm3, %v1018_v41 }
 0x21b   : > { %v1717_v49 = vpop.eup %1716  ;;  %v902_v15 = vmul.f32 1.442695, %v887_v48  ;;  %1657 = vmatpush3.bf16.msra.mxu1 %v1707_v14  ;;  %1658 = vmatprep.mubr.msk.bf16.mxu1 %vm1781_vm1, %v1780_v0  ;;  %v828_v0 = vmul.f32 1.442695, %v818_v39  ;;  %v830_v39 = vmul.f32 1.442695, %v819_v46 }
 0x21c   : > { %v932_v57 = vsel %vm783_vm3, %v1717_v49, 0.0  ;;  %v905_v14 = vld [vmem:[#allocation3 + $0x8] sm:$0xff] }
 0x21d   : > { %1722 = vpow2.f32 %v902_v15  ;;  %933 = vadd.xlane.f32.xlu1 %v932_v57 }
 0x21e   : > { %1724 = vpow2.f32 %v828_v0 }
 0x21f   : > { %v1719_v60 = vpop.eup %1718  ;;  %1726 = vpow2.f32 %v832_v7 }
 0x220   : > { %v938_v63 = vsel %vm783_vm3, %v1719_v60, 0.0  ;;  %1728 = vpow2.f32 %v834_v31  ;;  %v963_v31 = vld [vmem:[#allocation4 + $0x10] sm:$0xff] }
 0x221   : > { %939 = vadd.xlane.f32.xlu1 %v938_v63  ;;  %1730 = vpow2.f32 %v838_v36 }
 0x222   : > { %1732 = vpow2.f32 %v830_v39 }
 0x223   : > { %v1721_v1 = vpop.eup %1720  ;;  %1734 = vpow2.f32 %v836_v38  ;;  %v964_v38 = vld [vmem:[#allocation4 + $0x18] sm:$0xff] }
 0x224   : > { %v935_v20 = vsel %vm783_vm3, %v1721_v1, 0.0  ;;  %v1019_v3 = vpack.c.bf16 %v1721_v1, %v1717_v49  ;;  %1736 = vpow2.f32 %v824_v42 }
 0x225   : > { %936 = vadd.xlane.f32.xlu0 %v935_v20  ;;  %921 = vadd.xlane.f32.xlu1 %v920_v2  ;;  %1738 = vpow2.f32 %v826_v12 }
 0x226   : > { %1653 = vmatmul.mubr.msk.bf16.vlgmr.msra.gmra.mrb[12].mxu0 %vm783_vm3, %v1019_v3 }
 0x227   : > { %v1723_v4 = vpop.eup %1722 }
 0x228   : > { %v941_v5 = vsel %vm783_vm3, %v1723_v4, 0.0  ;;  %v1020_v6 = vpack.c.bf16 %v1723_v4, %v1719_v60  ;;  %v1725_v9 = vpop.eup %1724 }
 0x229   : > { %942 = vadd.xlane.f32.xlu0 %v941_v5  ;;  %v1727_v43 = vpop.eup %1726  ;;  %v914_v46 = vmul.f32 %v1725_v9, %v906_v37 }
 0x22a   : > { %1659 = vmatmul.mubr.msk.bf16.vlgmr.msra.gmra.mrb[12].mxu1 %vm783_vm3, %v1020_v6  ;;  %v1729_v44 = vpop.eup %1728  ;;  %v916_v13 = vmul.f32 %v1727_v43, %v908_v61 }
 0x22b   : > { %v1731_v47 = vpop.eup %1730  ;;  %v917_v33 = vmul.f32 %v1729_v44, %v909_v19 }
 0x22c   : > { %v1733_v51 = vpop.eup %1732  ;;  %v919_v11 = vmul.f32 %v1731_v47, %v911_v23 }
 0x22d   : > { %924 = vadd.xlane.f32.xlu0 %v923_v8  ;;  %v1735_v53 = vpop.eup %1734  ;;  %v915_v56 = vmul.f32 %v1733_v51, %v907_v45 }
 0x22e   : > { %v918_v50 = vmul.f32 %v1735_v53, %v910_v29  ;;  %v1737_v17 = vpop.eup %1736 }
 0x22f   : > { %v912_v28 = vmul.f32 %v1737_v17, %v904_v58  ;;  %v1739_v27 = vpop.eup %1738 }
 0x230   : > { %v913_v48 = vmul.f32 %v1739_v27, %v905_v14 }
 0x236   : > { %981 = vperm.xlu1 %1694, %v1725_v9  }
 0x23a   : > { %991 = vperm.xlu1 %1694, %v1727_v43  }
 0x23e   : > { %996 = vperm.xlu1 %1694, %v1729_v44  }
 0x242   : > { %1006 = vperm.xlu1 %1694, %v1731_v47  }
 0x243   : > { %986 = vperm.xlu0 %1695, %v1733_v51  }
 0x247   : > { %1001 = vperm.xlu0 %1695, %v1735_v53  }
 0x2a2   : > { %v928_v55 = vpop.xlane.xlu1 %927 }
 0x2a3   : > { %v946_v52 = vadd.f32 %v928_v55, %v914_v46 }
 0x2a5   : > { %955 = vst.msk [vmem:[#allocation3 + $0x10] sm:$0xff] %vm404_vm2, %v946_v52  ;;  %v965_v52 = vld [vmem:[#allocation4 + $0x20] sm:$0xff] }
 0x2a6   : > { %v931_v59 = vpop.xlane.xlu0 %930 }
 0x2a7   : > { %v947_v10 = vadd.f32 %v931_v59, %v915_v56  ;;  %v966_v59 = vld [vmem:[#allocation4 + $0x28] sm:$0xff] }
 0x2a9   : > { %956 = vst.msk [vmem:[#allocation3 + $0x18] sm:$0xff] %vm404_vm2, %v947_v10  ;;  %v967_v10 = vld [vmem:[#allocation4 + $0x30] sm:$0xff] }
 0x2aa   : > { %v934_v26 = vpop.xlane.xlu1 %933 }
 0x2ab   : > { %v948_v32 = vadd.f32 %v934_v26, %v916_v13 }
 0x2ac   : > { %v1258_v16 = vld [vmem:[#allocation3 + $0x10] sm:$0xff] }
 0x2ad   : > { %957 = vst.msk [vmem:[#allocation3 + $0x20] sm:$0xff] %vm404_vm2, %v948_v32  ;;  %1740 = vrcp.f32 %v1258_v16  ;;  %v968_v16 = vld [vmem:[#allocation4 + $0x38] sm:$0xff] }
 0x2ae   : > { %v940_v18 = vpop.xlane.xlu1 %939 }
 0x2af   : > { %v950_v54 = vadd.f32 %v940_v18, %v918_v50 }
 0x2b0   : > { %v1259_v21 = vld [vmem:[#allocation3 + $0x18] sm:$0xff] }
 0x2b1   : > { %959 = vst.msk [vmem:[#allocation3 + $0x30] sm:$0xff] %vm404_vm2, %v950_v54  ;;  %1742 = vrcp.f32 %v1259_v21 }
 0x2b2   : > { %v922_v35 = vpop.xlane.xlu1 %921  ;;  %v937_v22 = vpop.xlane.xlu0 %936 }
 0x2b3   : > { %v944_v24 = vadd.f32 %v922_v35, %v912_v28  ;;  %v949_v25 = vadd.f32 %v937_v22, %v917_v33 }
 0x2b4   : > { %v1260_v62 = vld [vmem:[#allocation3 + $0x20] sm:$0xff] }
 0x2b5   : > { %953 = vst.msk [vmem:[#allocation3] sm:$0xff] %vm404_vm2, %v944_v24  ;;  %958 = vst.msk [vmem:[#allocation3 + $0x28] sm:$0xff] %vm404_vm2, %v949_v25  ;;  %1744 = vrcp.f32 %v1260_v62 }
 0x2b6   : > { %v943_v30 = vpop.xlane.xlu0 %942  ;;  %v982_v36 = vpop.permute.xlu1 %981 }
 0x2b7   : > { %v1741_v34 = vpop.eup %1740  ;;  %v951_v40 = vadd.f32 %v943_v30, %v919_v11  ;;  %v1011_v44 = vmul.f32 %v982_v36, %v963_v31 }
 0x2b8   : > { %1292 = vperm.xlu0 %1695, %v1741_v34   ;;  %v1262_v41 = vld [vmem:[#allocation3 + $0x30] sm:$0xff] }
 0x2b9   : > { %960 = vst.msk [vmem:[#allocation3 + $0x38] sm:$0xff] %vm404_vm2, %v951_v40  ;;  %1746 = vrcp.f32 %v1262_v41 }
 0x2ba   : > { %v925_v49 = vpop.xlane.xlu0 %924  ;;  %v992_v42 = vpop.permute.xlu1 %991 }
 0x2bb   : > { %v1743_v15 = vpop.eup %1742  ;;  %v945_v57 = vadd.f32 %v925_v49, %v913_v48  ;;  %v1013_v61 = vmul.f32 %v992_v42, %v965_v52 }
 0x2bc   : > { %1297 = vperm.xlu1 %1694, %v1743_v15   ;;  %v1261_v60 = vld [vmem:[#allocation3 + $0x28] sm:$0xff]  ;;  %v1256_v63 = vld [vmem:[#allocation3] sm:$0xff] }
 0x2bd   : > { %954 = vst.msk [vmem:[#allocation3 + $0x8] sm:$0xff] %vm404_vm2, %v945_v57  ;;  %1748 = vrcp.f32 %v1261_v60 }
 0x2be   : > { %1750 = vrcp.f32 %v1256_v63  ;;  %v997_v56 = vpop.permute.xlu1 %996  ;;  %v961_v63 = vld [vmem:[#allocation4] sm:$0xff] }
 0x2bf   : > { %v1745_v1 = vpop.eup %1744  ;;  %v1014_v26 = vmul.f32 %v997_v56, %v966_v59 }
 0x2c0   : > { %1302 = vperm.xlu0 %1695, %v1745_v1   ;;  %v1263_v20 = vld [vmem:[#allocation3 + $0x38] sm:$0xff] }
 0x2c1   : > { %1752 = vrcp.f32 %v1263_v20 }
 0x2c2   : > { %v987_v43 = vpop.permute.xlu0 %986  ;;  %v1007_v50 = vpop.permute.xlu1 %1006 }
 0x2c3   : > { %v1747_v2 = vpop.eup %1746  ;;  %v1012_v51 = vmul.f32 %v987_v43, %v964_v38  ;;  %v1016_v21 = vmul.f32 %v1007_v50, %v968_v16 }
 0x2c4   : > { %1312 = vperm.xlu0 %1695, %v1747_v2   ;;  %v1257_v3 = vld [vmem:[#allocation3 + $0x8] sm:$0xff] }
 0x2c5   : > { %1754 = vrcp.f32 %v1257_v3 }
 0x2c6   : > { %v1002_v12 = vpop.permute.xlu0 %1001 }
 0x2c7   : > { %v1749_v4 = vpop.eup %1748  ;;  %v1015_v18 = vmul.f32 %v1002_v12, %v967_v10 }
 0x2c8   : > { %971 = vperm.xlu0 %1695, %v1737_v17   ;;  %1307 = vperm.xlu1 %1694, %v1749_v4   ;;  %v1751_v0 = vpop.eup %1750 }
 0x2cb   : > { %v1753_v5 = vpop.eup %1752 }
 0x2cc   : > { %1282 = vperm.xlu0 %1695, %v1751_v0   ;;  %1317 = vperm.xlu1 %1694, %v1753_v5  }
 0x2cf   : > { %v1755_v6 = vpop.eup %1754 }
 0x2d0   : > { %976 = vperm.xlu1 %1694, %v1739_v27  }
 0x2d4   : > { %1287 = vperm.xlu1 %1694, %v1755_v6  }
 0x2e7   : > { %v2120_v7 = vpop.f32.mrb[8].mxu0 }
 0x2e8   : > { %v1642_v8 = vpop.f32.mrb[9].mxu0 }
 0x2e9   : > { %v2122_v39 = vpop.f32.mrb[10].mxu0 }
 0x2ea   : > { %v1643_v9 = vpop.f32.mrb[11].mxu0 }
 0x2eb   : > { %v962_v9 = vld [vmem:[#allocation4 + $0x8] sm:$0xff] }
 0x2ed   : > { %v1122_v47 = vpop.f32.mrb[8].mxu1 }
 0x2ee   : > { %v1231_v53 = vadd.f32 %v1122_v47, %v1011_v44  ;;  %v1648_v37 = vpop.f32.mrb[9].mxu1 }
 0x2ef   : > { %v1125_v46 = vpop.f32.mrb[10].mxu1 }
 0x2f0   : > { %1239 = vst.msk [vmem:[#allocation4 + $0x10] sm:$0xff] %vm421_vm0, %v1231_v53  ;;  %v1232_v55 = vadd.f32 %v1125_v46, %v1012_v51  ;;  %v1649_v45 = vpop.f32.mrb[11].mxu1 }
 0x2f2   : > { %1240 = vst.msk [vmem:[#allocation4 + $0x18] sm:$0xff] %vm421_vm0, %v1232_v55 }
 0x2f7   : > { %v1274_v24 = vld [vmem:[#allocation4 + $0x10] sm:$0xff] }
 0x2f9   : > { %v1172_v13 = vpop.f32.mrb[12].mxu0  ;;  %v1275_v30 = vld [vmem:[#allocation4 + $0x18] sm:$0xff] }
 0x2fa   : > { %v1233_v29 = vadd.f32 %v1172_v13, %v1013_v61  ;;  %v1654_v32 = vpop.f32.mrb[13].mxu0 }
 0x2fb   : > { %v1175_v17 = vpop.f32.mrb[14].mxu0 }
 0x2fc   : > { %1241 = vst.msk [vmem:[#allocation4 + $0x20] sm:$0xff] %vm421_vm0, %v1233_v29  ;;  %v1234_v58 = vadd.f32 %v1175_v17, %v1014_v26  ;;  %v1655_v19 = vpop.f32.mrb[15].mxu0 }
 0x2fd   : > { %v1222_v54 = vpop.f32.mrb[12].mxu1 }
 0x2fe   : > { %1242 = vst.msk [vmem:[#allocation4 + $0x28] sm:$0xff] %vm421_vm0, %v1234_v58  ;;  %v1235_v28 = vadd.f32 %v1222_v54, %v1015_v18  ;;  %v1660_v33 = vpop.f32.mrb[13].mxu1 }
 0x2ff   : > { %v1225_v35 = vpop.f32.mrb[14].mxu1 }
 0x300   : > { %1243 = vst.msk [vmem:[#allocation4 + $0x30] sm:$0xff] %vm421_vm0, %v1235_v28  ;;  %v1236_v22 = vadd.f32 %v1225_v35, %v1016_v21  ;;  %v1661_v23 = vpop.f32.mrb[15].mxu1 }
 0x302   : > { %1244 = vst.msk [vmem:[#allocation4 + $0x38] sm:$0xff] %vm421_vm0, %v1236_v22 }
 0x303   : > { %v1276_v41 = vld [vmem:[#allocation4 + $0x20] sm:$0xff] }
 0x305   : > { %v1277_v2 = vld [vmem:[#allocation4 + $0x28] sm:$0xff] }
 0x307   : > { %v1278_v15 = vld [vmem:[#allocation4 + $0x30] sm:$0xff] }
 0x309   : > { %v1279_v8 = vld [vmem:[#allocation4 + $0x38] sm:$0xff] }
 0x337   : > { %v1293_v25 = vpop.permute.xlu0 %1292 }
 0x338   : > { %v1322_v62 = vmul.f32 %v1293_v25, %v1274_v24 }
 0x33a   : > { %v1592_v11 = vpack.c.bf16 %v1322_v62, %v1322_v62 }
 0x33b   : > { %v1298_v27 = vpop.permute.xlu1 %1297 }
 0x33c   : > { %v1323_v14 = vmul.f32 %v1298_v27, %v1275_v30  ;;  %1347 = vrot.lane.b32.xlu0 %v1592_v11, %s1785_s14 }
 0x33e   : > { %v1593_v34 = vpack.c.bf16 %v1323_v14, %v1323_v14 }
 0x33f   : > { %v1303_v40 = vpop.permute.xlu0 %1302 }
 0x340   : > { %v1324_v48 = vmul.f32 %v1303_v40, %v1276_v41  ;;  %1349 = vrot.lane.b32.xlu1 %v1593_v34, %s1785_s14 }
 0x342   : > { %v1594_v49 = vpack.c.bf16 %v1324_v48, %v1324_v48 }
 0x343   : > { %v1313_v57 = vpop.permute.xlu0 %1312 }
 0x344   : > { %v1326_v60 = vmul.f32 %v1313_v57, %v1278_v15  ;;  %1361 = vrot.lane.b32.xlu0 %v1594_v49, %s1786_s15 }
 0x346   : > { %v1596_v1 = vpack.c.bf16 %v1326_v60, %v1326_v60 }
 0x347   : > { %v1308_v20 = vpop.permute.xlu1 %1307  ;;  %v972_v3 = vpop.permute.xlu0 %971 }
 0x348   : > { %v1325_v4 = vmul.f32 %v1308_v20, %v1277_v2  ;;  %v1009_v0 = vmul.f32 %v972_v3, %v961_v63  ;;  %1375 = vrot.lane.b32.xlu0 %v1596_v1, %s1787_s16 }
 0x34a   : > { %v1595_v5 = vpack.c.bf16 %v1325_v4, %v1325_v4  ;;  %v1229_v6 = vadd.f32 %v2120_v7, %v1009_v0 }
 0x34b   : > { %v1318_v31 = vpop.permute.xlu1 %1317  ;;  %v1283_v51 = vpop.permute.xlu0 %1282 }
 0x34c   : > { %1237 = vst.msk [vmem:[#allocation4] sm:$0xff] %vm421_vm0, %v1229_v6  ;;  %v1327_v36 = vmul.f32 %v1318_v31, %v1279_v8  ;;  %1363 = vrot.lane.b32.xlu1 %v1595_v5, %s1786_s15 }
 0x34e   : > { %v1597_v38 = vpack.c.bf16 %v1327_v36, %v1327_v36 }
 0x34f   : > { %v977_v43 = vpop.permute.xlu1 %976 }
 0x350   : > { %v1010_v44 = vmul.f32 %v977_v43, %v962_v9  ;;  %1377 = vrot.lane.b32.xlu1 %v1597_v38, %s1787_s16 }
 0x352   : > { %v1230_v47 = vadd.f32 %v2122_v39, %v1010_v44 }
 0x353   : > { %v1272_v53 = vld [vmem:[#allocation4] sm:$0xff]  ;;  %v1288_v42 = vpop.permute.xlu1 %1287 }
 0x354   : > { %v1320_v37 = vmul.f32 %v1283_v51, %v1272_v53  ;;  %1238 = vst.msk [vmem:[#allocation4 + $0x8] sm:$0xff] %vm421_vm0, %v1230_v47 }
 0x356   : > { %v1590_v7 = vpack.c.bf16 %v1320_v37, %v1320_v37 }
 0x358   : > { %1340 = vst.msk [vmem:[%s397_s24] sm:$0xf] %vm1339_vm4, %v1590_v7 }
 0x35b   : > { %v1273_v46 = vld [vmem:[#allocation4 + $0x8] sm:$0xff] }
 0x35c   : > { %v1321_v55 = vmul.f32 %v1288_v42, %v1273_v46 }
 0x35e   : > { %v1591_v45 = vpack.c.bf16 %v1321_v55, %v1321_v55 }
 0x360   : > { %1341 = vst.msk [vmem:[%s397_s24 + $0x4] sm:$0xf] %vm1339_vm4, %v1591_v45 }
 0x3ae   : > { %v1348_v52 = vpop.permute.xlu0 %1347 }
 0x3af   : > { %1354 = vst.msk [vmem:[%s397_s24] sm:$0xf] %vm1353_vm5, %v1348_v52 }
 0x3b2   : > { %v1350_v39 = vpop.permute.xlu1 %1349 }
 0x3b3   : > { %1355 = vst.msk [vmem:[%s397_s24 + $0x4] sm:$0xf] %vm1353_vm5, %v1350_v39 }
 0x3b6   : > { %v1362_v56 = vpop.permute.xlu0 %1361 }
 0x3b7   : > { %1368 = vst.msk [vmem:[%s397_s24] sm:$0xf] %vm1367_vm6, %v1362_v56 }
 0x3ba   : > { %v1376_v59 = vpop.permute.xlu0 %1375 }
 0x3bb   : > { %1382 = vst.msk [vmem:[%s397_s24] sm:$0xf] %vm1381_vm7, %v1376_v59 }
 0x3be   : > { %v1364_v61 = vpop.permute.xlu1 %1363 }
 0x3bf   : > { %1369 = vst.msk [vmem:[%s397_s24 + $0x4] sm:$0xf] %vm1367_vm6, %v1364_v61 }
 0x3c2   : > { %v1378_v10 = vpop.permute.xlu1 %1377 }
 0x3c3   : > { %1383 = vst.msk [vmem:[%s397_s24 + $0x4] sm:$0xf] %vm1381_vm7, %v1378_v10 }
 0x3c4 PF: > { %s15_s20 = sadd.s32 1, %s1778_s20   ;;  %s2153_s18 = smov %s1774_s19 }
 0x3c5   : > { %p12_p5 = scmp.ge.s32.totalorder %s15_s20, 4   ;;  %s2154_s19 = smov %s2156_s21 }
 0x3c7   :  { %14 = sbr.rel (!%p12_p5) target bundleno = 2 (0x2), region = 90 }

// kernel: image_transformer_forward.11
= control target key start
LH: loop header
LB: loop body
LE: loop exit
PB: predicated region body
PF: predicated region fallthrough
CT: control target
= control target key end

     0   :  { %v1229_v50 = vmov 0   ;;  %s1651_s0 = inlined_call_operand.vmem [shape: f32[32,128], index: 0, kind: input, shape index: {}]   ;;  %s1652_s3 = inlined_call_operand.vmem [shape: bf16[128,512], index: 3, kind: input, shape index: {}]   ;;  %s1653_s1 = inlined_call_operand.vmem [shape: f32[1,128], index: 1, kind: input, shape index: {}]   ;;  %s1654_s2 = inlined_call_operand.vmem [shape: f32[1,128], index: 2, kind: input, shape index: {}]   ;;  %s1655_s5 = inlined_call_operand.vmem [shape: bf16[512,128], index: 5, kind: input, shape index: {}]   ;;  %s1656_s4 = inlined_call_operand.vmem [shape: f32[1,512], index: 4, kind: input, shape index: {}]   ;;  %s1657_s6 = inlined_call_operand.vmem [shape: f32[1,128], index: 6, kind: input, shape index: {}]   ;;  %s1658_s7 = inlined_call_operand.vmem [shape: f32[32,128], index: 7, kind: output, shape index: {}]  }
   0x1   :  { %v31_v0 = vld [vmem:[%s1651_s0] sm:$0xff]  ;;  %v33_v1 = vld [vmem:[%s1651_s0 + $0x10] sm:$0xff]  ;;  %v32_v2 = vld [vmem:[%s1651_s0 + $0x8] sm:$0xff]  ;;  %358 = vmatprep.mubr.bf16.mxu0 %v1229_v50  ;;  %411 = vmatprep.mubr.bf16.mxu1 %v1229_v50 }
   0x2   :  { %37 = vadd.xlane.f32.xlu0 %v31_v0  ;;  %41 = vadd.xlane.f32.xlu1 %v33_v1  ;;  %v34_v3 = vld [vmem:[%s1651_s0 + $0x18] sm:$0xff]  ;;  %v1108_v4 = vld [vmem:[%s1652_s3 + $0x4] ss:$16 sps:$4 sm:$0xff]   ;;  %v1112_v6 = vld [vmem:[%s1652_s3] ss:$16 sps:$4 sm:$0xff]  }
   0x3   :  { %v1110_v5 = vld [vmem:[%s1652_s3 + $0xc] ss:$16 sps:$4 sm:$0xff]   ;;  %326 = vmatprep.subr.bf16.mxu0 %v1108_v4  ;;  %v1113_v7 = vld [vmem:[%s1652_s3 + $0x8] ss:$16 sps:$4 sm:$0xff]   ;;  %v1114_v8 = vld [vmem:[%s1652_s3 + $0x24] ss:$16 sps:$4 sm:$0xff]  }
   0x4   :  { %379 = vmatprep.subr.bf16.mxu1 %v1110_v5  ;;  %327 = vmatpush1.bf16.msra.mxu0 %v1112_v6  ;;  %v1116_v9 = vld [vmem:[%s1652_s3 + $0x2c] ss:$16 sps:$4 sm:$0xff]   ;;  %v1118_v26 = vld [vmem:[%s1652_s3 + $0x20] ss:$16 sps:$4 sm:$0xff]   ;;  %v1119_v27 = vld [vmem:[%s1652_s3 + $0x28] ss:$16 sps:$4 sm:$0xff]  }
   0x5   :  { %380 = vmatpush1.bf16.msra.mxu1 %v1113_v7  ;;  %328 = vmatprep.subr.bf16.mxu0 %v1114_v8  ;;  %v1120_v28 = vld [vmem:[%s1652_s3 + $0x44] ss:$16 sps:$4 sm:$0xff]   ;;  %v1122_v29 = vld [vmem:[%s1652_s3 + $0x4c] ss:$16 sps:$4 sm:$0xff]   ;;  %v1124_v30 = vld [vmem:[%s1652_s3 + $0x40] ss:$16 sps:$4 sm:$0xff]  }
   0x6   :  { %39 = vadd.xlane.f32.xlu0 %v32_v2  ;;  %43 = vadd.xlane.f32.xlu1 %v34_v3  ;;  %v1125_v31 = vld [vmem:[%s1652_s3 + $0x48] ss:$16 sps:$4 sm:$0xff]   ;;  %v1126_v32 = vld [vmem:[%s1652_s3 + $0x64] ss:$16 sps:$4 sm:$0xff]   ;;  %v1128_v33 = vld [vmem:[%s1652_s3 + $0x6c] ss:$16 sps:$4 sm:$0xff]  }
   0x7   :  { %381 = vmatprep.subr.bf16.mxu1 %v1116_v9  ;;  %v1130_v34 = vld [vmem:[%s1652_s3 + $0x60] ss:$16 sps:$4 sm:$0xff]   ;;  %v1131_v35 = vld [vmem:[%s1652_s3 + $0x68] ss:$16 sps:$4 sm:$0xff]   ;;  %v1132_v36 = vld [vmem:[%s1652_s3 + $0x84] ss:$16 sps:$4 sm:$0xff]  }
   0x8   :  { %329 = vmatpush1.bf16.msra.mxu0 %v1118_v26  ;;  %v1134_v37 = vld [vmem:[%s1652_s3 + $0x8c] ss:$16 sps:$4 sm:$0xff]   ;;  %v1136_v38 = vld [vmem:[%s1652_s3 + $0x80] ss:$16 sps:$4 sm:$0xff]   ;;  %v1137_v39 = vld [vmem:[%s1652_s3 + $0x88] ss:$16 sps:$4 sm:$0xff]  }
   0x9   :  { %382 = vmatpush1.bf16.msra.mxu1 %v1119_v27  ;;  %330 = vmatprep.subr.bf16.mxu0 %v1120_v28  ;;  %v1138_v40 = vld [vmem:[%s1652_s3 + $0xa4] ss:$16 sps:$4 sm:$0xff]   ;;  %v1140_v41 = vld [vmem:[%s1652_s3 + $0xac] ss:$16 sps:$4 sm:$0xff]   ;;  %v1142_v42 = vld [vmem:[%s1652_s3 + $0xa0] ss:$16 sps:$4 sm:$0xff]  }
   0xa   :  { %383 = vmatprep.subr.bf16.mxu1 %v1122_v29  ;;  %v1143_v43 = vld [vmem:[%s1652_s3 + $0xa8] ss:$16 sps:$4 sm:$0xff]   ;;  %v1144_v44 = vld [vmem:[%s1652_s3 + $0xc4] ss:$16 sps:$4 sm:$0xff]   ;;  %v1146_v45 = vld [vmem:[%s1652_s3 + $0xcc] ss:$16 sps:$4 sm:$0xff]  }
   0xb   :  { %v1148_v46 = vld [vmem:[%s1652_s3 + $0xc0] ss:$16 sps:$4 sm:$0xff]   ;;  %v1149_v47 = vld [vmem:[%s1652_s3 + $0xc8] ss:$16 sps:$4 sm:$0xff]   ;;  %v1150_v48 = vld [vmem:[%s1652_s3 + $0xe4] ss:$16 sps:$4 sm:$0xff]  }
   0xc   :  { %331 = vmatpush1.bf16.msra.mxu0 %v1124_v30  ;;  %v1152_v49 = vld [vmem:[%s1652_s3 + $0xec] ss:$16 sps:$4 sm:$0xff]   ;;  %v1154_v51 = vld [vmem:[%s1652_s3 + $0xe0] ss:$16 sps:$4 sm:$0xff]   ;;  %v1155_v52 = vld [vmem:[%s1652_s3 + $0xe8] ss:$16 sps:$4 sm:$0xff]  }
   0xd   :  { %384 = vmatpush1.bf16.msra.mxu1 %v1125_v31  ;;  %332 = vmatprep.subr.bf16.mxu0 %v1126_v32  ;;  %v985_v8 = vld [vmem:[%s1654_s2] ss:$0 sm:$0xff]  ;;  %v1161_v26 = vld [vmem:[%s1655_s5 + $0xc8] sm:$0xff]   ;;  %v1164_v29 = vld [vmem:[%s1655_s5 + $0x50] sm:$0xff]  }
   0xe   :  { %385 = vmatprep.subr.bf16.mxu1 %v1128_v33  ;;  %v1162_v27 = vld [vmem:[%s1655_s5 + $0x8] sm:$0xff]   ;;  %v1165_v30 = vld [vmem:[%s1655_s5 + $0xd0] sm:$0xff]   ;;  %v1168_v33 = vld [vmem:[%s1655_s5 + $0x58] sm:$0xff]  }
   0xf   :  { %v1163_v28 = vld [vmem:[%s1655_s5 + $0x88] sm:$0xff]   ;;  %v1166_v31 = vld [vmem:[%s1655_s5 + $0x10] sm:$0xff]  }
  0x10   :  { %333 = vmatpush1.bf16.msra.mxu0 %v1130_v34  ;;  %v1167_v32 = vld [vmem:[%s1655_s5 + $0x90] sm:$0xff]   ;;  %v1169_v34 = vld [vmem:[%s1655_s5 + $0xd8] sm:$0xff]  }
  0x11   :  { %386 = vmatpush1.bf16.msra.mxu1 %v1131_v35  ;;  %334 = vmatprep.subr.bf16.mxu0 %v1132_v36  ;;  %v1170_v35 = vld [vmem:[%s1655_s5 + $0x18] sm:$0xff]  }
  0x12   :  { %387 = vmatprep.subr.bf16.mxu1 %v1134_v37  ;;  %v1171_v36 = vld [vmem:[%s1655_s5 + $0x98] sm:$0xff]   ;;  %v1172_v37 = vld [vmem:[%s1655_s5 + $0x60] sm:$0xff]  }
  0x14   :  { %335 = vmatpush1.bf16.msra.mxu0 %v1136_v38  ;;  %v1173_v38 = vld [vmem:[%s1655_s5 + $0xe0] sm:$0xff]  }
  0x15   :  { %388 = vmatpush1.bf16.msra.mxu1 %v1137_v39  ;;  %336 = vmatprep.subr.bf16.mxu0 %v1138_v40  ;;  %v1174_v39 = vld [vmem:[%s1655_s5 + $0x20] sm:$0xff]  }
  0x16   :  { %389 = vmatprep.subr.bf16.mxu1 %v1140_v41  ;;  %v1175_v40 = vld [vmem:[%s1655_s5 + $0xa0] sm:$0xff]   ;;  %v1176_v41 = vld [vmem:[%s1655_s5 + $0x68] sm:$0xff]  }
  0x18   :  { %337 = vmatpush1.bf16.msra.mxu0 %v1142_v42  ;;  %v1177_v42 = vld [vmem:[%s1655_s5 + $0xe8] sm:$0xff]  }
  0x19   :  { %390 = vmatpush1.bf16.msra.mxu1 %v1143_v43  ;;  %338 = vmatprep.subr.bf16.mxu0 %v1144_v44  ;;  %v1178_v43 = vld [vmem:[%s1655_s5 + $0x28] sm:$0xff]  }
  0x1a   :  { %391 = vmatprep.subr.bf16.mxu1 %v1146_v45  ;;  %v1179_v44 = vld [vmem:[%s1655_s5 + $0xa8] sm:$0xff]   ;;  %v1180_v45 = vld [vmem:[%s1655_s5 + $0x70] sm:$0xff]  }
  0x1c   :  { %339 = vmatpush1.bf16.msra.mxu0 %v1148_v46  ;;  %v1181_v46 = vld [vmem:[%s1655_s5 + $0xf0] sm:$0xff]  }
  0x1d   :  { %392 = vmatpush1.bf16.msra.mxu1 %v1149_v47  ;;  %340 = vmatprep.subr.bf16.mxu0 %v1150_v48  ;;  %v1182_v47 = vld [vmem:[%s1655_s5 + $0x30] sm:$0xff]  }
  0x1e   :  { %393 = vmatprep.subr.bf16.mxu1 %v1152_v49  ;;  %v1183_v48 = vld [vmem:[%s1655_s5 + $0xb0] sm:$0xff]   ;;  %v1184_v49 = vld [vmem:[%s1655_s5 + $0x78] sm:$0xff]  }
  0x20   :  { %341 = vmatpush1.bf16.msra.mxu0 %v1154_v51  ;;  %v1186_v51 = vld [vmem:[%s1655_s5 + $0x38] sm:$0xff]  }
  0x21   :  { %394 = vmatpush1.bf16.msra.mxu1 %v1155_v52  ;;  %v1187_v52 = vld [vmem:[%s1655_s5 + $0xb8] sm:$0xff]  }
  0x8f   :  { %v38_v10 = vpop.xlane.xlu0 %37  ;;  %v42_v11 = vpop.xlane.xlu1 %41 }
  0x90   :  { %v46_v12 = vmul.f32 0.0078125, %v38_v10  ;;  %v48_v13 = vmul.f32 0.0078125, %v42_v11 }
  0x92   :  { %v1300_v14 = vsub.f32 %v31_v0, %v46_v12  ;;  %v1302_v15 = vsub.f32 %v33_v1, %v48_v13 }
  0x93   :  { %v40_v16 = vpop.xlane.xlu0 %39  ;;  %v44_v17 = vpop.xlane.xlu1 %43 }
  0x94   :  { %v47_v18 = vmul.f32 0.0078125, %v40_v16  ;;  %v54_v19 = vmul.f32 %v1300_v14, %v1300_v14  ;;  %v49_v20 = vmul.f32 0.0078125, %v44_v17  ;;  %v56_v23 = vmul.f32 %v1302_v15, %v1302_v15 }
  0x96   :  { %v1306_v21 = vsub.f32 %v32_v2, %v47_v18  ;;  %58 = vadd.xlane.f32.xlu0 %v54_v19  ;;  %v1308_v22 = vsub.f32 %v34_v3, %v49_v20  ;;  %v984_v3 = vld [vmem:[%s1653_s1] ss:$0 sm:$0xff] }
  0x98   :  { %v55_v24 = vmul.f32 %v1306_v21, %v1306_v21  ;;  %v57_v25 = vmul.f32 %v1308_v22, %v1308_v22 }
  0x9a   :  { %62 = vadd.xlane.f32.xlu0 %v56_v23  ;;  %60 = vadd.xlane.f32.xlu1 %v55_v24  ;;  %v1156_v23 = vld [vmem:[%s1655_s5 + $0x40] sm:$0xff]  }
  0x9b   :  { %1051 = vmatprep.subr.bf16.mxu0 %v1156_v23  ;;  %v1159_v24 = vld [vmem:[%s1655_s5 + $0x80] sm:$0xff]  }
  0x9e   :  { %64 = vadd.xlane.f32.xlu1 %v57_v25  ;;  %v1160_v25 = vld [vmem:[%s1655_s5 + $0x48] sm:$0xff]  }
 0x123   :  { %v59_v53 = vpop.xlane.xlu0 %58 }
 0x124   :  { %v66_v54 = vmul.f32 0.0078125, %v59_v53  ;;  %v146_v53 = vlaneseq }
 0x126   :  { %v70_v55 = vadd.f32 1e-05, %v66_v54  ;;  %v147_v54 = vshrl.u32 %v146_v53, 7 }
 0x127   :  { %v61_v56 = vpop.xlane.xlu1 %60  ;;  %v63_v57 = vpop.xlane.xlu0 %62 }
 0x128   :  { %1188 = vrsqrt.f32 %v70_v55  ;;  %v67_v58 = vmul.f32 0.0078125, %v61_v56  ;;  %v68_v59 = vmul.f32 0.0078125, %v63_v57  ;;  %v148_v55 = vsub.s32 0, %v147_v54  ;;  %v144_v57 = vld [vmem:[%s1656_s4] sm:$0xf] }
 0x129   :  { %v156_v56 = vsub.s32 2, %v147_v54 }
 0x12a   :  { %v71_v60 = vadd.f32 1e-05, %v67_v58  ;;  %v72_v61 = vadd.f32 1e-05, %v68_v59  ;;  %v152_v58 = vsub.s32 1, %v147_v54  ;;  %v1503_v59 = vrot.slane %v144_v57, %v148_v55 }
 0x12b   :  { %v65_v62 = vpop.xlane.xlu1 %64 }
 0x12c   :  { %1190 = vrsqrt.f32 %v71_v60  ;;  %v69_v63 = vmul.f32 0.0078125, %v65_v62  ;;  %v1505_v60 = vrot.slane %v144_v57, %v156_v56 }
 0x12d   :  { %1192 = vrsqrt.f32 %v72_v61  ;;  %v160_v61 = vsub.s32 3, %v147_v54 }
 0x12e   :  { %v73_v0 = vadd.f32 1e-05, %v69_v63 }
 0x130   :  { %1194 = vrsqrt.f32 %v73_v0  ;;  %v1507_v0 = vrot.slane %v144_v57, %v152_v58 }
 0x132   :  { %v1189_v1 = vpop.eup %1188 }
 0x133   :  { %v78_v2 = vmul.f32 %v1189_v1, %v1300_v14 }
 0x135   :  { %v88_v6 = vmul.f32 %v984_v3, %v78_v2 }
 0x136   :  { %v1191_v4 = vpop.eup %1190 }
 0x137   :  { %v79_v5 = vmul.f32 %v1191_v4, %v1306_v21  ;;  %v1193_v7 = vpop.eup %1192  ;;  %v98_v11 = vadd.f32 %v985_v8, %v88_v6 }
 0x138   :  { %v80_v13 = vmul.f32 %v1193_v7, %v1302_v15  ;;  %v1157_v15 = vld [vmem:[%s1655_s5 + $0xc0] sm:$0xff]  }
 0x139   :  { %v89_v9 = vmul.f32 %v984_v3, %v79_v5  ;;  %1079 = vmatprep.subr.bf16.mxu1 %v1157_v15  ;;  %v1511_v5 = vrot.slane %v144_v57, %v160_v61 }
 0x13a   :  { %v1195_v10 = vpop.eup %1194  ;;  %v90_v18 = vmul.f32 %v984_v3, %v80_v13 }
 0x13b   :  { %v99_v12 = vadd.f32 %v985_v8, %v89_v9  ;;  %v81_v14 = vmul.f32 %v1195_v10, %v1308_v22  ;;  %v1158_v22 = vld [vmem:[%s1655_s5] sm:$0xff]  }
 0x13c   :  { %v100_v20 = vadd.f32 %v985_v8, %v90_v18 }
 0x13d   :  { %v102_v16 = vpack.c.bf16 %v99_v12, %v98_v11  ;;  %v91_v17 = vmul.f32 %v984_v3, %v81_v14 }
 0x13f   :  { %359 = vmatmul.mubr.bf16.vlgmr.msra.gmra.mrb[0].mxu0 %v102_v16  ;;  %412 = vmatmul.mubr.bf16.vlgmr.msra.gmra.mrb[0].mxu1 %v102_v16  ;;  %v101_v19 = vadd.f32 %v985_v8, %v91_v17 }
 0x140   :  { %368 = vmatprep.mubr.bf16.mxu0 %v1229_v50  ;;  %421 = vmatprep.mubr.bf16.mxu1 %v1229_v50  ;;  %v1185_v50 = vld [vmem:[%s1655_s5 + $0xf8] sm:$0xff]  }
 0x141   :  { %v103_v21 = vpack.c.bf16 %v101_v19, %v100_v20  ;;  %1052 = vmatpush3.bf16.msra.mxu0 %v1158_v22  ;;  %1080 = vmatpush3.bf16.msra.mxu1 %v1159_v24 }
 0x142   :  { %1053 = vmatprep.subr.bf16.mxu0 %v1160_v25  ;;  %1081 = vmatprep.subr.bf16.mxu1 %v1161_v26 }
 0x145   :  { %1054 = vmatpush3.bf16.msra.mxu0 %v1162_v27  ;;  %1082 = vmatpush3.bf16.msra.mxu1 %v1163_v28 }
 0x146   :  { %1055 = vmatprep.subr.bf16.mxu0 %v1164_v29  ;;  %1083 = vmatprep.subr.bf16.mxu1 %v1165_v30 }
 0x147   :  { %369 = vmatmul.mubr.bf16.gmra.mrb[4].mxu0 %v103_v21  ;;  %422 = vmatmul.mubr.bf16.gmra.mrb[4].mxu1 %v103_v21 }
 0x149   :  { %1056 = vmatpush3.bf16.msra.mxu0 %v1166_v31  ;;  %1084 = vmatpush3.bf16.msra.mxu1 %v1167_v32 }
 0x14a   :  { %1057 = vmatprep.subr.bf16.mxu0 %v1168_v33  ;;  %1085 = vmatprep.subr.bf16.mxu1 %v1169_v34 }
 0x14d   :  { %1058 = vmatpush3.bf16.msra.mxu0 %v1170_v35  ;;  %1086 = vmatpush3.bf16.msra.mxu1 %v1171_v36 }
 0x14e   :  { %1059 = vmatprep.subr.bf16.mxu0 %v1172_v37  ;;  %1087 = vmatprep.subr.bf16.mxu1 %v1173_v38 }
 0x151   :  { %1060 = vmatpush3.bf16.msra.mxu0 %v1174_v39  ;;  %1088 = vmatpush3.bf16.msra.mxu1 %v1175_v40 }
 0x152   :  { %1061 = vmatprep.subr.bf16.mxu0 %v1176_v41  ;;  %1089 = vmatprep.subr.bf16.mxu1 %v1177_v42 }
 0x155   :  { %1062 = vmatpush3.bf16.msra.mxu0 %v1178_v43  ;;  %1090 = vmatpush3.bf16.msra.mxu1 %v1179_v44 }
 0x156   :  { %1063 = vmatprep.subr.bf16.mxu0 %v1180_v45  ;;  %1091 = vmatprep.subr.bf16.mxu1 %v1181_v46 }
 0x159   :  { %1064 = vmatpush3.bf16.msra.mxu0 %v1182_v47  ;;  %1092 = vmatpush3.bf16.msra.mxu1 %v1183_v48 }
 0x15a   :  { %1065 = vmatprep.subr.bf16.mxu0 %v1184_v49  ;;  %1093 = vmatprep.subr.bf16.mxu1 %v1185_v50 }
 0x15d   :  { %1066 = vmatpush3.bf16.msra.mxu0 %v1186_v51  ;;  %1094 = vmatpush3.bf16.msra.mxu1 %v1187_v52 }
 0x212   :  { %v360_v62 = vpop.f32.mrb[0].mxu0  ;;  %v413_v63 = vpop.f32.mrb[0].mxu1 }
 0x213   :  { %v361_v1 = vadd.f32 %v360_v62, %v1503_v59  ;;  %v414_v2 = vadd.f32 %v413_v63, %v1505_v60  ;;  %v362_v3 = vpop.f32.mrb[1].mxu0  ;;  %v415_v4 = vpop.f32.mrb[1].mxu1 }
 0x214   :  { %v364_v6 = vpop.f32.mrb[2].mxu0  ;;  %v417_v7 = vpop.f32.mrb[2].mxu1  ;;  %v1514_v10 = vadd.f32 %v362_v3, %v1507_v0  ;;  %v1524_v19 = vadd.f32 %v415_v4, %v1511_v5 }
 0x215   :  { %v448_v8 = vmul.f32 0.044715, %v361_v1  ;;  %v450_v9 = vmul.f32 0.044715, %v414_v2  ;;  %v365_v11 = vadd.f32 %v364_v6, %v1503_v59  ;;  %v1518_v12 = vadd.f32 %v417_v7, %v1505_v60  ;;  %v366_v13 = vpop.f32.mrb[3].mxu0  ;;  %v419_v14 = vpop.f32.mrb[3].mxu1 }
 0x216   :  { %v1521_v18 = vadd.f32 %v366_v13, %v1507_v0  ;;  %v1527_v21 = vadd.f32 %v419_v14, %v1511_v5  ;;  %v1529_v23 = vmul.f32 0.5, %v361_v1  ;;  %v449_v25 = vmul.f32 0.044715, %v1514_v10 }
 0x217   :  { %v464_v16 = vmul.f32 %v448_v8, %v361_v1  ;;  %v466_v17 = vmul.f32 %v450_v9, %v414_v2  ;;  %v452_v20 = vmul.f32 0.044715, %v365_v11  ;;  %v454_v24 = vmul.f32 0.044715, %v1518_v12 }
 0x218   :  { %v453_v27 = vmul.f32 0.044715, %v1521_v18  ;;  %v1534_v31 = vmul.f32 0.5, %v414_v2  ;;  %v451_v36 = vmul.f32 0.044715, %v1524_v19  ;;  %v465_v47 = vmul.f32 %v449_v25, %v1514_v10 }
 0x219   :  { %v480_v15 = vmul.f32 %v464_v16, %v361_v1  ;;  %v482_v22 = vmul.f32 %v466_v17, %v414_v2  ;;  %v468_v26 = vmul.f32 %v452_v20, %v365_v11  ;;  %v470_v33 = vmul.f32 %v454_v24, %v1518_v12 }
 0x21a   :  { %v370_v28 = vpop.f32.mrb[4].mxu0  ;;  %v423_v29 = vpop.f32.mrb[4].mxu1  ;;  %v455_v38 = vmul.f32 0.044715, %v1527_v21  ;;  %v469_v49 = vmul.f32 %v453_v27, %v1521_v18  ;;  %v467_v54 = vmul.f32 %v451_v36, %v1524_v19  ;;  %v481_v63 = vmul.f32 %v465_v47, %v1514_v10 }
 0x21b   :  { %v496_v30 = vadd.f32 %v480_v15, %v361_v1  ;;  %v498_v32 = vadd.f32 %v482_v22, %v414_v2  ;;  %v372_v34 = vpop.f32.mrb[5].mxu0  ;;  %v425_v35 = vpop.f32.mrb[5].mxu1  ;;  %v484_v37 = vmul.f32 %v468_v26, %v365_v11  ;;  %v1540_v39 = vadd.f32 %v370_v28, %v1503_v59 }
 0x21c   :  { %v374_v40 = vpop.f32.mrb[6].mxu0  ;;  %v427_v41 = vpop.f32.mrb[6].mxu1  ;;  %v486_v44 = vmul.f32 %v470_v33, %v1518_v12  ;;  %v1546_v50 = vadd.f32 %v423_v29, %v1505_v60  ;;  %v1551_v53 = vadd.f32 %v372_v34, %v1507_v0  ;;  %v471_v56 = vmul.f32 %v455_v38, %v1527_v21 }
 0x21d   :  { %v512_v42 = vmul.f32 0.7978846, %v496_v30  ;;  %v514_v43 = vmul.f32 0.7978846, %v498_v32  ;;  %v376_v45 = vpop.f32.mrb[7].mxu0  ;;  %v429_v46 = vpop.f32.mrb[7].mxu1  ;;  %v500_v48 = vadd.f32 %v484_v37, %v365_v11  ;;  %v1557_v61 = vadd.f32 %v425_v35, %v1511_v5 }
 0x21e   :  { %v502_v51 = vadd.f32 %v486_v44, %v1518_v12  ;;  %v456_v52 = vmul.f32 0.044715, %v1540_v39  ;;  %v457_v58 = vmul.f32 0.044715, %v1551_v53  ;;  %v1560_v62 = vadd.f32 %v374_v40, %v1503_v59 }
 0x21f   :  { %1196 = vtanh.f32 %v512_v42  ;;  %v516_v55 = vmul.f32 0.7978846, %v500_v48  ;;  %v485_v1 = vmul.f32 %v469_v49, %v1521_v18  ;;  %v1565_v2 = vadd.f32 %v427_v41, %v1505_v60 }
 0x220   :  { %1198 = vtanh.f32 %v514_v43  ;;  %v518_v57 = vmul.f32 0.7978846, %v502_v51  ;;  %v472_v3 = vmul.f32 %v456_v52, %v1540_v39  ;;  %v458_v4 = vmul.f32 0.044715, %v1546_v50 }
 0x221   :  { %1200 = vtanh.f32 %v516_v55  ;;  %v459_v6 = vmul.f32 0.044715, %v1557_v61  ;;  %v436_v7 = vmul.f32 0.5, %v365_v11  ;;  %v473_v8 = vmul.f32 %v457_v58, %v1551_v53 }
 0x222   :  { %1202 = vtanh.f32 %v518_v57  ;;  %v1572_v59 = vadd.f32 %v376_v45, %v1507_v0  ;;  %v1575_v9 = vadd.f32 %v429_v46, %v1511_v5  ;;  %v483_v13 = vmul.f32 %v467_v54, %v1524_v19 }
 0x223   :  { %v487_v60 = vmul.f32 %v471_v56, %v1527_v21  ;;  %v460_v14 = vmul.f32 0.044715, %v1560_v62  ;;  %v462_v16 = vmul.f32 0.044715, %v1565_v2  ;;  %v475_v17 = vmul.f32 %v459_v6, %v1557_v61 }
 0x224   :  { %v461_v11 = vmul.f32 0.044715, %v1572_v59  ;;  %v463_v20 = vmul.f32 0.044715, %v1575_v9  ;;  %v497_v0 = vadd.f32 %v481_v63, %v1514_v10  ;;  %v438_v15 = vmul.f32 0.5, %v1518_v12 }
 0x225   :  { %v488_v5 = vmul.f32 %v472_v3, %v1540_v39  ;;  %v474_v22 = vmul.f32 %v458_v4, %v1546_v50  ;;  %v501_v24 = vadd.f32 %v485_v1, %v1521_v18  ;;  %v489_v25 = vmul.f32 %v473_v8, %v1551_v53 }
 0x226   :  { %v477_v26 = vmul.f32 %v461_v11, %v1572_v59  ;;  %v479_v27 = vmul.f32 %v463_v20, %v1575_v9  ;;  %v513_v28 = vmul.f32 0.7978846, %v497_v0  ;;  %v476_v30 = vmul.f32 %v460_v14, %v1560_v62 }
 0x227   :  { %v517_v32 = vmul.f32 0.7978846, %v501_v24  ;;  %v499_v33 = vadd.f32 %v483_v13, %v1524_v19  ;;  %v503_v12 = vadd.f32 %v487_v60, %v1527_v21  ;;  %v491_v35 = vmul.f32 %v475_v17, %v1557_v61 }
 0x228   :  { %v478_v36 = vmul.f32 %v462_v16, %v1565_v2  ;;  %v493_v37 = vmul.f32 %v477_v26, %v1572_v59  ;;  %1204 = vtanh.f32 %v513_v28  ;;  %v490_v43 = vmul.f32 %v474_v22, %v1546_v50 }
 0x229   :  { %v1197_v29 = vpop.eup %1196  ;;  %1206 = vtanh.f32 %v517_v32  ;;  %v515_v38 = vmul.f32 0.7978846, %v499_v33  ;;  %v519_v40 = vmul.f32 0.7978846, %v503_v12  ;;  %v495_v44 = vmul.f32 %v479_v27, %v1575_v9 }
 0x22a   :  { %v1199_v34 = vpop.eup %1198  ;;  %v544_v41 = vadd.f32 1.0, %v1197_v29  ;;  %v505_v46 = vadd.f32 %v489_v25, %v1551_v53  ;;  %v492_v48 = vmul.f32 %v476_v30, %v1560_v62  ;;  %v509_v51 = vadd.f32 %v493_v37, %v1572_v59 }
 0x22b   :  { %v1201_v42 = vpop.eup %1200  ;;  %v546_v45 = vadd.f32 1.0, %v1199_v34  ;;  %1208 = vtanh.f32 %v515_v38  ;;  %v494_v52 = vmul.f32 %v478_v36, %v1565_v2  ;;  %v507_v63 = vadd.f32 %v491_v35, %v1557_v61 }
 0x22c   :  { %v1203_v47 = vpop.eup %1202  ;;  %v548_v49 = vadd.f32 1.0, %v1201_v42  ;;  %1210 = vtanh.f32 %v519_v40  ;;  %v521_v55 = vmul.f32 0.7978846, %v505_v46  ;;  %v560_v56 = vmul.f32 %v544_v41, %v1529_v23 }
 0x22d   :  { %v550_v54 = vadd.f32 1.0, %v1203_v47  ;;  %v525_v58 = vmul.f32 0.7978846, %v509_v51  ;;  %v562_v1 = vmul.f32 %v546_v45, %v1534_v31  ;;  %v511_v4 = vadd.f32 %v495_v44, %v1575_v9 }
 0x22e   :  { %v564_v57 = vmul.f32 %v548_v49, %v436_v7  ;;  %1212 = vtanh.f32 %v521_v55  ;;  %v523_v8 = vmul.f32 0.7978846, %v507_v63  ;;  %v504_v14 = vadd.f32 %v488_v5, %v1540_v39 }
 0x22f   :  { %v566_v3 = vmul.f32 %v550_v54, %v438_v15  ;;  %1214 = vtanh.f32 %v525_v58  ;;  %v527_v60 = vmul.f32 0.7978846, %v511_v4  ;;  %v508_v16 = vadd.f32 %v492_v48, %v1560_v62 }
 0x230   :  { %v580_v6 = vpack.c.bf16 %v564_v57, %v560_v56  ;;  %1216 = vtanh.f32 %v523_v8  ;;  %v506_v23 = vadd.f32 %v490_v43, %v1546_v50  ;;  %v520_v17 = vmul.f32 0.7978846, %v504_v14 }
 0x231   :  { %v582_v13 = vpack.c.bf16 %v566_v3, %v562_v1  ;;  %1218 = vtanh.f32 %v527_v60  ;;  %v524_v31 = vmul.f32 0.7978846, %v508_v16  ;;  %v510_v11 = vadd.f32 %v494_v52, %v1565_v2 }
 0x232   :  { %v1205_v7 = vpop.eup %1204  ;;  %v433_v0 = vmul.f32 0.5, %v1514_v10  ;;  %v522_v22 = vmul.f32 0.7978846, %v506_v23  ;;  %v437_v24 = vmul.f32 0.5, %v1521_v18  ;;  %1220 = vtanh.f32 %v520_v17 }
 0x233   :  { %v1207_v20 = vpop.eup %1206  ;;  %v545_v15 = vadd.f32 1.0, %v1205_v7  ;;  %v526_v5 = vmul.f32 0.7978846, %v510_v11  ;;  %1222 = vtanh.f32 %v524_v31  ;;  %v435_v32 = vmul.f32 0.5, %v1524_v19 }
 0x234   :  { %v549_v25 = vadd.f32 1.0, %v1207_v20  ;;  %1224 = vtanh.f32 %v522_v22  ;;  %v439_v33 = vmul.f32 0.5, %v1527_v21  ;;  %v441_v38 = vmul.f32 0.5, %v1551_v53 }
 0x235   :  { %v1209_v26 = vpop.eup %1208  ;;  %v561_v28 = vmul.f32 %v545_v15, %v433_v0  ;;  %1226 = vtanh.f32 %v526_v5  ;;  %v445_v40 = vmul.f32 0.5, %v1572_v59  ;;  %v443_v46 = vmul.f32 0.5, %v1557_v61 }
 0x236   :  { %v1211_v27 = vpop.eup %1210  ;;  %v565_v29 = vmul.f32 %v549_v25, %v437_v24  ;;  %v547_v30 = vadd.f32 1.0, %v1209_v26  ;;  %v447_v47 = vmul.f32 0.5, %v1575_v9  ;;  %v440_v56 = vmul.f32 0.5, %v1540_v39  ;;  %v969_v26 = vld [vmem:[%s1651_s0 + $0x8] sm:$0xff] }
 0x237   :  { %v551_v12 = vadd.f32 1.0, %v1211_v27  ;;  %v444_v57 = vmul.f32 0.5, %v1560_v62  ;;  %v442_v61 = vmul.f32 0.5, %v1546_v50  ;;  %v1228_v27 = vld [vmem:[%s1651_s0] sm:$0xff] }
 0x238   :  { %v1213_v10 = vpop.eup %1212  ;;  %v581_v34 = vpack.c.bf16 %v565_v29, %v561_v28  ;;  %v563_v18 = vmul.f32 %v547_v30, %v435_v32 }
 0x239   :  { %v1215_v35 = vpop.eup %1214  ;;  %v567_v36 = vmul.f32 %v551_v12, %v439_v33  ;;  %v553_v37 = vadd.f32 1.0, %v1213_v10 }
 0x23a   :  { %876 = vmatprep.mubr.bf16.mxu0 %v581_v34  ;;  %v557_v41 = vadd.f32 1.0, %v1215_v35  ;;  %v1217_v42 = vpop.eup %1216 }
 0x23b   :  { %v583_v43 = vpack.c.bf16 %v567_v36, %v563_v18  ;;  %877 = vmatmul.mubr.bf16.vlgmr.msra.gmra.mrb[8].mxu0 %v580_v6  ;;  %v1219_v19 = vpop.eup %1218  ;;  %v569_v44 = vmul.f32 %v553_v37, %v441_v38  ;;  %v555_v45 = vadd.f32 1.0, %v1217_v42  ;;  %v446_v6 = vmul.f32 0.5, %v1565_v2  ;;  %v1050_v2 = vld [vmem:[%s1657_s6] ss:$0 sm:$0xff] }
 0x23c   :  { %v573_v21 = vmul.f32 %v557_v41, %v445_v40  ;;  %v559_v48 = vadd.f32 1.0, %v1219_v19  ;;  %v1221_v49 = vpop.eup %1220 }
 0x23d   :  { %925 = vmatprep.mubr.bf16.mxu1 %v583_v43  ;;  %v1223_v53 = vpop.eup %1222  ;;  %v571_v52 = vmul.f32 %v555_v45, %v443_v46  ;;  %v552_v54 = vadd.f32 1.0, %v1221_v49  ;;  %v970_v43 = vld [vmem:[%s1651_s0 + $0x10] sm:$0xff] }
 0x23e   :  { %926 = vmatmul.mubr.bf16.vlgmr.msra.gmra.mrb[8].mxu1 %v582_v13  ;;  %v585_v51 = vpack.c.bf16 %v573_v21, %v569_v44  ;;  %v575_v59 = vmul.f32 %v559_v48, %v447_v47  ;;  %v1225_v55 = vpop.eup %1224  ;;  %v556_v58 = vadd.f32 1.0, %v1223_v53  ;;  %v971_v21 = vld [vmem:[%s1651_s0 + $0x18] sm:$0xff] }
 0x23f   :  { %v1227_v63 = vpop.eup %1226  ;;  %v554_v9 = vadd.f32 1.0, %v1225_v55  ;;  %v568_v3 = vmul.f32 %v552_v54, %v440_v56 }
 0x240   :  { %884 = vmatprep.mubr.bf16.mxu0 %v585_v51  ;;  %v587_v1 = vpack.c.bf16 %v575_v59, %v571_v52  ;;  %v572_v4 = vmul.f32 %v556_v58, %v444_v57  ;;  %v558_v8 = vadd.f32 1.0, %v1227_v63 }
 0x241   :  { %v570_v60 = vmul.f32 %v554_v9, %v442_v61 }
 0x242   :  { %933 = vmatprep.mubr.bf16.mxu1 %v587_v1  ;;  %v584_v13 = vpack.c.bf16 %v572_v4, %v568_v3  ;;  %v574_v14 = vmul.f32 %v558_v8, %v446_v6 }
 0x244   :  { %885 = vmatmul.mubr.bf16.gmra.mrb[12].mxu0 %v584_v13  ;;  %v586_v16 = vpack.c.bf16 %v574_v14, %v570_v60 }
 0x246   :  { %934 = vmatmul.mubr.bf16.gmra.mrb[12].mxu1 %v586_v16 }
 0x30e   :  { %v1067_v39 = vpop.f32.mrb[8].mxu0 }
 0x30f   :  { %v1068_v62 = vpop.f32.mrb[9].mxu0 }
 0x310   :  { %v1069_v23 = vadd.f32 %v1068_v62, %v1067_v39  ;;  %v1070_v7 = vpop.f32.mrb[10].mxu0 }
 0x311   :  { %v1095_v17 = vpop.f32.mrb[8].mxu1  ;;  %v1071_v31 = vpop.f32.mrb[11].mxu0 }
 0x312   :  { %v1096_v50 = vpop.f32.mrb[9].mxu1  ;;  %v1072_v11 = vadd.f32 %v1071_v31, %v1070_v7 }
 0x313   :  { %v1097_v20 = vadd.f32 %v1096_v50, %v1095_v17  ;;  %v1098_v0 = vpop.f32.mrb[10].mxu1 }
 0x314   :  { %v1099_v15 = vpop.f32.mrb[11].mxu1 }
 0x315   :  { %v928_v22 = vadd.f32 %v1097_v20, %v1069_v23  ;;  %v1100_v24 = vadd.f32 %v1099_v15, %v1098_v0 }
 0x317   :  { %v964_v25 = vadd.f32 %v1050_v2, %v928_v22  ;;  %v931_v5 = vadd.f32 %v1100_v24, %v1072_v11  ;;  %v1073_v30 = vpop.f32.mrb[12].mxu0 }
 0x318   :  { %v1074_v32 = vpop.f32.mrb[13].mxu0 }
 0x319   :  { %v972_v28 = vadd.f32 %v1228_v27, %v964_v25  ;;  %v965_v29 = vadd.f32 %v1050_v2, %v931_v5  ;;  %v1101_v12 = vpop.f32.mrb[12].mxu1  ;;  %v1075_v10 = vadd.f32 %v1074_v32, %v1073_v30  ;;  %v1076_v34 = vpop.f32.mrb[14].mxu0 }
 0x31a   :  { %v1102_v35 = vpop.f32.mrb[13].mxu1  ;;  %v1077_v18 = vpop.f32.mrb[15].mxu0 }
 0x31b   :  { %976 = vst [vmem:[%s1658_s7] sm:$0xff] %v972_v28  ;;  %v973_v33 = vadd.f32 %v969_v26, %v965_v29  ;;  %v1103_v36 = vadd.f32 %v1102_v35, %v1101_v12  ;;  %v1104_v37 = vpop.f32.mrb[14].mxu1  ;;  %v1078_v38 = vadd.f32 %v1077_v18, %v1076_v34 }
 0x31c   :  { %v1105_v40 = vpop.f32.mrb[15].mxu1 }
 0x31d   :  { %977 = vst [vmem:[%s1658_s7 + $0x8] sm:$0xff] %v973_v33  ;;  %v936_v41 = vadd.f32 %v1103_v36, %v1075_v10  ;;  %v1106_v42 = vadd.f32 %v1105_v40, %v1104_v37 }
 0x31f   :  { %v966_v19 = vadd.f32 %v1050_v2, %v936_v41  ;;  %v939_v44 = vadd.f32 %v1106_v42, %v1078_v38 }
 0x321   :  { %v974_v45 = vadd.f32 %v970_v43, %v966_v19  ;;  %v967_v46 = vadd.f32 %v1050_v2, %v939_v44 }
 0x323   :  { %978 = vst [vmem:[%s1658_s7 + $0x10] sm:$0xff] %v974_v45  ;;  %v975_v47 = vadd.f32 %v971_v21, %v967_v46 }
 0x325   :  { %979 = vst [vmem:[%s1658_s7 + $0x18] sm:$0xff] %v975_v47 }

// kernel: image_transformer_forward.12
= control target key start
LH: loop header
LB: loop body
LE: loop exit
PB: predicated region body
PF: predicated region fallthrough
CT: control target
= control target key end

     0   :  { %v518_v39 = vmov 0   ;;  %s678_s0 = inlined_call_operand.vmem [shape: f32[32,128], index: 0, kind: input, shape index: {}]   ;;  %s679_s3 = inlined_call_operand.vmem [shape: bf16[128,384], index: 3, kind: input, shape index: {}]   ;;  %s680_s1 = inlined_call_operand.vmem [shape: f32[1,128], index: 1, kind: input, shape index: {}]   ;;  %s681_s2 = inlined_call_operand.vmem [shape: f32[1,128], index: 2, kind: input, shape index: {}]   ;;  %s682_s4 = inlined_call_operand.vmem [shape: bf16[32,384], index: 4, kind: output, shape index: {}]  }
   0x1   :  { %v18_v0 = vld [vmem:[%s678_s0] sm:$0xff]  ;;  %v20_v1 = vld [vmem:[%s678_s0 + $0x10] sm:$0xff]  ;;  %v19_v2 = vld [vmem:[%s678_s0 + $0x8] sm:$0xff]  ;;  %283 = vmatprep.mubr.bf16.mxu0 %v518_v39 }
   0x2   :  { %24 = vadd.xlane.f32.xlu0 %v18_v0  ;;  %28 = vadd.xlane.f32.xlu1 %v20_v1  ;;  %v21_v3 = vld [vmem:[%s678_s0 + $0x18] sm:$0xff]  ;;  %v478_v4 = vld [vmem:[%s679_s3 + $0x4] ss:$12 sps:$4 sm:$0xff]   ;;  %v480_v5 = vld [vmem:[%s679_s3] ss:$12 sps:$4 sm:$0xff]  }
   0x3   :  { %251 = vmatprep.subr.bf16.mxu0 %v478_v4  ;;  %v481_v6 = vld [vmem:[%s679_s3 + $0x1c] ss:$12 sps:$4 sm:$0xff]   ;;  %v484_v24 = vld [vmem:[%s679_s3 + $0x18] ss:$12 sps:$4 sm:$0xff]   ;;  %v485_v25 = vld [vmem:[%s679_s3 + $0x34] ss:$12 sps:$4 sm:$0xff]  }
   0x4   :  { %252 = vmatpush1.bf16.msra.mxu0 %v480_v5  ;;  %v483_v7 = vld [vmem:[%s679_s3 + $0x8] ss:$12 sps:$4 sm:$0xff]   ;;  %v487_v26 = vld [vmem:[%s679_s3 + $0x20] ss:$12 sps:$4 sm:$0xff]   ;;  %v488_v27 = vld [vmem:[%s679_s3 + $0x30] ss:$12 sps:$4 sm:$0xff]  }
   0x5   :  { %253 = vmatprep.subr.bf16.mxu0 %v481_v6  ;;  %457 = vmatprep.subr.bf16.mxu1 %v483_v7  ;;  %v489_v28 = vld [vmem:[%s679_s3 + $0x4c] ss:$12 sps:$4 sm:$0xff]   ;;  %v492_v30 = vld [vmem:[%s679_s3 + $0x48] ss:$12 sps:$4 sm:$0xff]   ;;  %v493_v31 = vld [vmem:[%s679_s3 + $0x64] ss:$12 sps:$4 sm:$0xff]  }
   0x6   :  { %26 = vadd.xlane.f32.xlu0 %v19_v2  ;;  %30 = vadd.xlane.f32.xlu1 %v21_v3  ;;  %v491_v29 = vld [vmem:[%s679_s3 + $0x38] ss:$12 sps:$4 sm:$0xff]   ;;  %v495_v32 = vld [vmem:[%s679_s3 + $0x50] ss:$12 sps:$4 sm:$0xff]   ;;  %v496_v33 = vld [vmem:[%s679_s3 + $0x60] ss:$12 sps:$4 sm:$0xff]  }
   0x7   :  { %458 = vmatpush3.bf16.msra.mxu1 %v483_v7  ;;  %v497_v34 = vld [vmem:[%s679_s3 + $0x7c] ss:$12 sps:$4 sm:$0xff]   ;;  %v500_v36 = vld [vmem:[%s679_s3 + $0x78] ss:$12 sps:$4 sm:$0xff]   ;;  %v501_v37 = vld [vmem:[%s679_s3 + $0x94] ss:$12 sps:$4 sm:$0xff]  }
   0x8   :  { %254 = vmatpush1.bf16.msra.mxu0 %v484_v24  ;;  %459 = vmatprep.subr.bf16.mxu1 %v487_v26  ;;  %v499_v35 = vld [vmem:[%s679_s3 + $0x68] ss:$12 sps:$4 sm:$0xff]   ;;  %v503_v38 = vld [vmem:[%s679_s3 + $0x80] ss:$12 sps:$4 sm:$0xff]   ;;  %v504_v40 = vld [vmem:[%s679_s3 + $0x90] ss:$12 sps:$4 sm:$0xff]  }
   0x9   :  { %255 = vmatprep.subr.bf16.mxu0 %v485_v25  ;;  %v505_v41 = vld [vmem:[%s679_s3 + $0xac] ss:$12 sps:$4 sm:$0xff]   ;;  %v508_v43 = vld [vmem:[%s679_s3 + $0xa8] ss:$12 sps:$4 sm:$0xff]   ;;  %v509_v44 = vld [vmem:[%s679_s3 + $0xb0] ss:$12 sps:$4 sm:$0xff]  }
   0xa   :  { %v507_v42 = vld [vmem:[%s679_s3 + $0x98] ss:$12 sps:$4 sm:$0xff]   ;;  %v405_v59 = vld [vmem:[%s680_s1] ss:$0 sm:$0xff] }
   0xb   :  { %460 = vmatpush3.bf16.msra.mxu1 %v487_v26 }
   0xc   :  { %256 = vmatpush1.bf16.msra.mxu0 %v488_v27  ;;  %461 = vmatprep.subr.bf16.mxu1 %v491_v29 }
   0xd   :  { %257 = vmatprep.subr.bf16.mxu0 %v489_v28 }
   0xf   :  { %462 = vmatpush3.bf16.msra.mxu1 %v491_v29 }
  0x10   :  { %258 = vmatpush1.bf16.msra.mxu0 %v492_v30  ;;  %463 = vmatprep.subr.bf16.mxu1 %v495_v32 }
  0x11   :  { %259 = vmatprep.subr.bf16.mxu0 %v493_v31 }
  0x13   :  { %464 = vmatpush3.bf16.msra.mxu1 %v495_v32 }
  0x14   :  { %260 = vmatpush1.bf16.msra.mxu0 %v496_v33  ;;  %465 = vmatprep.subr.bf16.mxu1 %v499_v35 }
  0x15   :  { %261 = vmatprep.subr.bf16.mxu0 %v497_v34 }
  0x17   :  { %466 = vmatpush3.bf16.msra.mxu1 %v499_v35 }
  0x18   :  { %262 = vmatpush1.bf16.msra.mxu0 %v500_v36  ;;  %467 = vmatprep.subr.bf16.mxu1 %v503_v38 }
  0x19   :  { %263 = vmatprep.subr.bf16.mxu0 %v501_v37 }
  0x1b   :  { %468 = vmatpush3.bf16.msra.mxu1 %v503_v38 }
  0x1c   :  { %264 = vmatpush1.bf16.msra.mxu0 %v504_v40  ;;  %469 = vmatprep.subr.bf16.mxu1 %v507_v42 }
  0x1d   :  { %265 = vmatprep.subr.bf16.mxu0 %v505_v41 }
  0x1f   :  { %470 = vmatpush3.bf16.msra.mxu1 %v507_v42 }
  0x20   :  { %266 = vmatpush1.bf16.msra.mxu0 %v508_v43  ;;  %471 = vmatprep.subr.bf16.mxu1 %v509_v44 }
  0x23   :  { %472 = vmatpush3.bf16.msra.mxu1 %v509_v44 }
  0x8f   :  { %v25_v8 = vpop.xlane.xlu0 %24  ;;  %v29_v9 = vpop.xlane.xlu1 %28 }
  0x90   :  { %v33_v10 = vmul.f32 0.0078125, %v25_v8  ;;  %v35_v11 = vmul.f32 0.0078125, %v29_v9 }
  0x92   :  { %v568_v12 = vsub.f32 %v18_v0, %v33_v10  ;;  %v570_v13 = vsub.f32 %v20_v1, %v35_v11  ;;  %v406_v0 = vld [vmem:[%s681_s2] ss:$0 sm:$0xff] }
  0x93   :  { %v27_v14 = vpop.xlane.xlu0 %26  ;;  %v31_v15 = vpop.xlane.xlu1 %30 }
  0x94   :  { %v34_v16 = vmul.f32 0.0078125, %v27_v14  ;;  %v41_v17 = vmul.f32 %v568_v12, %v568_v12  ;;  %v36_v18 = vmul.f32 0.0078125, %v31_v15  ;;  %v43_v21 = vmul.f32 %v570_v13, %v570_v13 }
  0x96   :  { %v574_v19 = vsub.f32 %v19_v2, %v34_v16  ;;  %45 = vadd.xlane.f32.xlu0 %v41_v17  ;;  %v576_v20 = vsub.f32 %v21_v3, %v36_v18 }
  0x98   :  { %v42_v22 = vmul.f32 %v574_v19, %v574_v19  ;;  %v44_v23 = vmul.f32 %v576_v20, %v576_v20 }
  0x9a   :  { %49 = vadd.xlane.f32.xlu0 %v43_v21  ;;  %47 = vadd.xlane.f32.xlu1 %v42_v22 }
  0x9e   :  { %51 = vadd.xlane.f32.xlu1 %v44_v23 }
 0x123   :  { %v46_v45 = vpop.xlane.xlu0 %45 }
 0x124   :  { %v53_v46 = vmul.f32 0.0078125, %v46_v45 }
 0x126   :  { %v57_v47 = vadd.f32 1e-05, %v53_v46 }
 0x127   :  { %v48_v48 = vpop.xlane.xlu1 %47  ;;  %v50_v49 = vpop.xlane.xlu0 %49 }
 0x128   :  { %510 = vrsqrt.f32 %v57_v47  ;;  %v54_v50 = vmul.f32 0.0078125, %v48_v48  ;;  %v55_v51 = vmul.f32 0.0078125, %v50_v49 }
 0x12a   :  { %v58_v52 = vadd.f32 1e-05, %v54_v50  ;;  %v59_v53 = vadd.f32 1e-05, %v55_v51 }
 0x12b   :  { %v52_v54 = vpop.xlane.xlu1 %51 }
 0x12c   :  { %512 = vrsqrt.f32 %v58_v52  ;;  %v56_v55 = vmul.f32 0.0078125, %v52_v54 }
 0x12d   :  { %514 = vrsqrt.f32 %v59_v53 }
 0x12e   :  { %v60_v56 = vadd.f32 1e-05, %v56_v55 }
 0x130   :  { %516 = vrsqrt.f32 %v60_v56 }
 0x132   :  { %v511_v57 = vpop.eup %510 }
 0x133   :  { %v65_v58 = vmul.f32 %v511_v57, %v568_v12 }
 0x135   :  { %v75_v63 = vmul.f32 %v405_v59, %v65_v58 }
 0x136   :  { %v513_v60 = vpop.eup %512 }
 0x137   :  { %v515_v61 = vpop.eup %514  ;;  %v66_v62 = vmul.f32 %v513_v60, %v574_v19  ;;  %v85_v4 = vadd.f32 %v406_v0, %v75_v63 }
 0x138   :  { %v67_v1 = vmul.f32 %v515_v61, %v570_v13 }
 0x139   :  { %v76_v2 = vmul.f32 %v405_v59, %v66_v62 }
 0x13a   :  { %v517_v3 = vpop.eup %516  ;;  %v77_v7 = vmul.f32 %v405_v59, %v67_v1 }
 0x13b   :  { %v86_v5 = vadd.f32 %v406_v0, %v76_v2  ;;  %v68_v6 = vmul.f32 %v517_v3, %v576_v20 }
 0x13c   :  { %v87_v10 = vadd.f32 %v406_v0, %v77_v7 }
 0x13d   :  { %v89_v8 = vpack.c.bf16 %v86_v5, %v85_v4  ;;  %v78_v9 = vmul.f32 %v405_v59, %v68_v6 }
 0x13f   :  { %284 = vmatmul.mubr.bf16.vlgmr.msra.gmra.mrb[0].mxu0 %v89_v8  ;;  %473 = vmatprep.mubr.bf16.mxu1 %v89_v8  ;;  %v88_v11 = vadd.f32 %v406_v0, %v78_v9 }
 0x140   :  { %293 = vmatprep.mubr.bf16.mxu0 %v518_v39 }
 0x141   :  { %v90_v12 = vpack.c.bf16 %v88_v11, %v87_v10 }
 0x143   :  { %474 = vmatmul.mubr.bf16.vlgmr.msra.gmra.mrb[0].mxu1 %v90_v12 }
 0x147   :  { %294 = vmatmul.mubr.bf16.gmra.mrb[4].mxu0 %v90_v12 }
 0x212   :  { %v285_v14 = vpop.f32.mrb[0].mxu0 }
 0x213   :  { %v287_v15 = vpop.f32.mrb[1].mxu0 }
 0x214   :  { %v439_v13 = vpack.c.bf16 %v287_v15, %v285_v14  ;;  %v289_v16 = vpop.f32.mrb[2].mxu0 }
 0x215   :  { %v291_v17 = vpop.f32.mrb[3].mxu0 }
 0x216   :  { %393 = vst [vmem:[%s682_s4] sm:$0xff] %v439_v13  ;;  %v441_v18 = vpack.c.bf16 %v291_v17, %v289_v16  ;;  %v475_v19 = vpop.f32.mrb[0].mxu1 }
 0x217   :  { %v444_v20 = vpack.c.bf16 %v475_v19, %v475_v19  ;;  %v338_v21 = vpop.f32.mrb[1].mxu1 }
 0x218   :  { %395 = vst [vmem:[%s682_s4 + $0xc] sm:$0xff] %v441_v18  ;;  %v440_v22 = vpack.c.bf16 %v338_v21, %v338_v21  ;;  %v476_v23 = vpop.f32.mrb[2].mxu1 }
 0x219   :  { %398 = vst [vmem:[%s682_s4 + $0x20] sm:$0xf] %v444_v20  ;;  %v446_v24 = vpack.c.bf16 %v476_v23, %v476_v23  ;;  %v341_v25 = vpop.f32.mrb[3].mxu1 }
 0x21a   :  { %394 = vst [vmem:[%s682_s4 + $0x8] sm:$0xf] %v440_v22  ;;  %v442_v26 = vpack.c.bf16 %v341_v25, %v341_v25  ;;  %v295_v27 = vpop.f32.mrb[4].mxu0 }
 0x21b   :  { %400 = vst [vmem:[%s682_s4 + $0x2c] sm:$0xf] %v446_v24  ;;  %v297_v28 = vpop.f32.mrb[5].mxu0 }
 0x21c   :  { %396 = vst [vmem:[%s682_s4 + $0x14] sm:$0xf] %v442_v26  ;;  %v443_v29 = vpack.c.bf16 %v297_v28, %v295_v27  ;;  %v299_v30 = vpop.f32.mrb[6].mxu0 }
 0x21d   :  { %v301_v31 = vpop.f32.mrb[7].mxu0 }
 0x21e   :  { %397 = vst [vmem:[%s682_s4 + $0x18] sm:$0xff] %v443_v29  ;;  %v445_v32 = vpack.c.bf16 %v301_v31, %v299_v30 }
 0x220   :  { %399 = vst [vmem:[%s682_s4 + $0x24] sm:$0xff] %v445_v32 }

// kernel: image_transformer_forward.15
= control target key start
LH: loop header
LB: loop body
LE: loop exit
PB: predicated region body
PF: predicated region fallthrough
CT: control target
= control target key end

     0   :  { %s1695_s0 = inlined_call_operand.vmem [shape: f32[32,128], index: 0, kind: input, shape index: {}]   ;;  %s1696_s1 = inlined_call_operand.vmem [shape: f32[1,128], index: 1, kind: input, shape index: {}]   ;;  %s1697_s2 = inlined_call_operand.vmem [shape: f32[1,128], index: 2, kind: input, shape index: {}]   ;;  %s1698_s3 = inlined_call_operand.vmem [shape: bf16[128,512], index: 3, kind: input, shape index: {}]   ;;  %s1699_s4 = inlined_call_operand.vmem [shape: f32[1,512], index: 4, kind: input, shape index: {}]   ;;  %s1700_s5 = inlined_call_operand.vmem [shape: bf16[512,128], index: 5, kind: input, shape index: {}]   ;;  %s1701_s6 = inlined_call_operand.vmem [shape: f32[1,128], index: 6, kind: input, shape index: {}]   ;;  %s1702_s7 = inlined_call_operand.hbm [shape: f32[32,128], index: 7, kind: output, shape index: {}]  }
   0x1   :  { %v32_v0 = vld [vmem:[%s1695_s0] sm:$0xff]  ;;  %v34_v1 = vld [vmem:[%s1695_s0 + $0x10] sm:$0xff]  ;;  %v33_v2 = vld [vmem:[%s1695_s0 + $0x8] sm:$0xff] }
   0x2   :  { %38 = vadd.xlane.f32.xlu0 %v32_v0  ;;  %42 = vadd.xlane.f32.xlu1 %v34_v1  ;;  %v35_v3 = vld [vmem:[%s1695_s0 + $0x18] sm:$0xff]  ;;  %v1124_v4 = vld [vmem:[%s1698_s3 + $0x4] ss:$16 sps:$4 sm:$0xff]   ;;  %v1128_v6 = vld [vmem:[%s1698_s3] ss:$16 sps:$4 sm:$0xff]  }
   0x3   :  { %v1126_v5 = vld [vmem:[%s1698_s3 + $0xc] ss:$16 sps:$4 sm:$0xff]   ;;  %v1129_v7 = vld [vmem:[%s1698_s3 + $0x8] ss:$16 sps:$4 sm:$0xff]   ;;  %v1130_v8 = vld [vmem:[%s1698_s3 + $0x24] ss:$16 sps:$4 sm:$0xff]   ;;  %327 = vmatprep.subr.bf16.mxu0 %v1124_v4 }
   0x4   :  { %v1132_v9 = vld [vmem:[%s1698_s3 + $0x2c] ss:$16 sps:$4 sm:$0xff]   ;;  %380 = vmatprep.subr.bf16.mxu1 %v1126_v5  ;;  %328 = vmatpush1.bf16.msra.mxu0 %v1128_v6 }
   0x5   :  { %381 = vmatpush1.bf16.msra.mxu1 %v1129_v7  ;;  %329 = vmatprep.subr.bf16.mxu0 %v1130_v8 }
   0x6   :  { %40 = vadd.xlane.f32.xlu0 %v33_v2  ;;  %44 = vadd.xlane.f32.xlu1 %v35_v3 }
   0x7   :  { %382 = vmatprep.subr.bf16.mxu1 %v1132_v9 }
   0x8   :  { %12 = vsyncpa [#allocation5], 0  ;;  %v1134_v26 = vld [vmem:[%s1698_s3 + $0x20] ss:$16 sps:$4 sm:$0xff]   ;;  %v1135_v27 = vld [vmem:[%s1698_s3 + $0x28] ss:$16 sps:$4 sm:$0xff]  }
   0x9   :  { %330 = vmatpush1.bf16.msra.mxu0 %v1134_v26  ;;  %383 = vmatpush1.bf16.msra.mxu1 %v1135_v27  ;;  %v1136_v28 = vld [vmem:[%s1698_s3 + $0x44] ss:$16 sps:$4 sm:$0xff]   ;;  %v1138_v29 = vld [vmem:[%s1698_s3 + $0x4c] ss:$16 sps:$4 sm:$0xff]   ;;  %v1140_v30 = vld [vmem:[%s1698_s3 + $0x40] ss:$16 sps:$4 sm:$0xff]  }
   0xa   :  { %331 = vmatprep.subr.bf16.mxu0 %v1136_v28  ;;  %384 = vmatprep.subr.bf16.mxu1 %v1138_v29  ;;  %v1141_v31 = vld [vmem:[%s1698_s3 + $0x48] ss:$16 sps:$4 sm:$0xff]   ;;  %v1142_v32 = vld [vmem:[%s1698_s3 + $0x64] ss:$16 sps:$4 sm:$0xff]   ;;  %v1144_v33 = vld [vmem:[%s1698_s3 + $0x6c] ss:$16 sps:$4 sm:$0xff]  }
   0xb   :  { %v1146_v34 = vld [vmem:[%s1698_s3 + $0x60] ss:$16 sps:$4 sm:$0xff]   ;;  %v1147_v35 = vld [vmem:[%s1698_s3 + $0x68] ss:$16 sps:$4 sm:$0xff]   ;;  %v1148_v36 = vld [vmem:[%s1698_s3 + $0x84] ss:$16 sps:$4 sm:$0xff]  }
   0xc   :  { %v1150_v37 = vld [vmem:[%s1698_s3 + $0x8c] ss:$16 sps:$4 sm:$0xff]   ;;  %v1152_v38 = vld [vmem:[%s1698_s3 + $0x80] ss:$16 sps:$4 sm:$0xff]   ;;  %v1153_v39 = vld [vmem:[%s1698_s3 + $0x88] ss:$16 sps:$4 sm:$0xff]  }
   0xd   :  { %332 = vmatpush1.bf16.msra.mxu0 %v1140_v30  ;;  %385 = vmatpush1.bf16.msra.mxu1 %v1141_v31  ;;  %v1154_v40 = vld [vmem:[%s1698_s3 + $0xa4] ss:$16 sps:$4 sm:$0xff]   ;;  %v1156_v41 = vld [vmem:[%s1698_s3 + $0xac] ss:$16 sps:$4 sm:$0xff]   ;;  %v1158_v42 = vld [vmem:[%s1698_s3 + $0xa0] ss:$16 sps:$4 sm:$0xff]  }
   0xe   :  { %333 = vmatprep.subr.bf16.mxu0 %v1142_v32  ;;  %386 = vmatprep.subr.bf16.mxu1 %v1144_v33  ;;  %v1159_v43 = vld [vmem:[%s1698_s3 + $0xa8] ss:$16 sps:$4 sm:$0xff]   ;;  %v1160_v44 = vld [vmem:[%s1698_s3 + $0xc4] ss:$16 sps:$4 sm:$0xff]   ;;  %v1162_v45 = vld [vmem:[%s1698_s3 + $0xcc] ss:$16 sps:$4 sm:$0xff]  }
   0xf   :  { %v1164_v46 = vld [vmem:[%s1698_s3 + $0xc0] ss:$16 sps:$4 sm:$0xff]   ;;  %v1165_v47 = vld [vmem:[%s1698_s3 + $0xc8] ss:$16 sps:$4 sm:$0xff]   ;;  %v1166_v48 = vld [vmem:[%s1698_s3 + $0xe4] ss:$16 sps:$4 sm:$0xff]  }
  0x10   :  { %v1168_v49 = vld [vmem:[%s1698_s3 + $0xec] ss:$16 sps:$4 sm:$0xff]   ;;  %v1270_v50 = vmov 0   ;;  %v1170_v51 = vld [vmem:[%s1698_s3 + $0xe0] ss:$16 sps:$4 sm:$0xff]   ;;  %s1271_s26 = smov [#allocation4]  }
  0x11   :  { %334 = vmatpush1.bf16.msra.mxu0 %v1146_v34  ;;  %387 = vmatpush1.bf16.msra.mxu1 %v1147_v35  ;;  %v1171_v52 = vld [vmem:[%s1698_s3 + $0xe8] ss:$16 sps:$4 sm:$0xff]   ;;  %v998_v8 = vld [vmem:[%s1697_s2] ss:$0 sm:$0xff]  ;;  %v1180_v29 = vld [vmem:[%s1700_s5 + $0x50] sm:$0xff]   ;;  %s986_s3 = sshll.u32 %s1271_s26, 4  ;;  %s987_s3 = int_to_ptr.vmem [resolvable:$true] %s986_s3 }
  0x12   :  { %335 = vmatprep.subr.bf16.mxu0 %v1148_v36  ;;  %388 = vmatprep.subr.bf16.mxu1 %v1150_v37  ;;  %v1177_v26 = vld [vmem:[%s1700_s5 + $0xc8] sm:$0xff]   ;;  %v1181_v30 = vld [vmem:[%s1700_s5 + $0xd0] sm:$0xff]   ;;  %v1184_v33 = vld [vmem:[%s1700_s5 + $0x58] sm:$0xff]   ;;  %s1246_s27 = scalar_lea.vmem %s987_s3, 512  ;;  %p1251_p1 = scmp.lt.s32.totalorder %s987_s3, %s987_s3 }
  0x13   :  { %359 = vmatprep.mubr.bf16.mxu0 %v1270_v50  ;;  %412 = vmatprep.mubr.bf16.mxu1 %v1270_v50  ;;  %v1178_v27 = vld [vmem:[%s1700_s5 + $0x8] sm:$0xff]   ;;  %v1182_v31 = vld [vmem:[%s1700_s5 + $0x10] sm:$0xff]   ;;  %v1185_v34 = vld [vmem:[%s1700_s5 + $0xd8] sm:$0xff]   ;;  %p1247_p0 = scmp.ne.s32.totalorder %s987_s3, %s1246_s27  ;;  %p1252_p2 = scmp.lt.s32.totalorder %s1246_s27, %s1246_s27 }
  0x14   :  { %v1179_v28 = vld [vmem:[%s1700_s5 + $0x88] sm:$0xff]   ;;  %v1183_v32 = vld [vmem:[%s1700_s5 + $0x90] sm:$0xff]   ;;  %v1186_v35 = vld [vmem:[%s1700_s5 + $0x18] sm:$0xff]  }
  0x15   :  { %336 = vmatpush1.bf16.msra.mxu0 %v1152_v38  ;;  %389 = vmatpush1.bf16.msra.mxu1 %v1153_v39  ;;  %v1187_v36 = vld [vmem:[%s1700_s5 + $0x98] sm:$0xff]   ;;  %v1188_v37 = vld [vmem:[%s1700_s5 + $0x60] sm:$0xff]   ;;  %p1253_p3 = por %p1252_p2, %p1251_p1 }
  0x16   :  { %337 = vmatprep.subr.bf16.mxu0 %v1154_v40  ;;  %390 = vmatprep.subr.bf16.mxu1 %v1156_v41  ;;  %v1189_v38 = vld [vmem:[%s1700_s5 + $0xe0] sm:$0xff]   ;;  %v1192_v41 = vld [vmem:[%s1700_s5 + $0x68] sm:$0xff]  }
  0x17   :  { %v1190_v39 = vld [vmem:[%s1700_s5 + $0x20] sm:$0xff]   ;;  %p1254_p4 = pnand %p1253_p3, %p1247_p0 }
  0x18   :  { %v1191_v40 = vld [vmem:[%s1700_s5 + $0xa0] sm:$0xff]  }
  0x19   :  { %338 = vmatpush1.bf16.msra.mxu0 %v1158_v42  ;;  %391 = vmatpush1.bf16.msra.mxu1 %v1159_v43  ;;  %v1193_v42 = vld [vmem:[%s1700_s5 + $0xe8] sm:$0xff]  }
  0x1a   :  { %339 = vmatprep.subr.bf16.mxu0 %v1160_v44  ;;  %392 = vmatprep.subr.bf16.mxu1 %v1162_v45  ;;  %v1194_v43 = vld [vmem:[%s1700_s5 + $0x28] sm:$0xff]   ;;  %v1196_v45 = vld [vmem:[%s1700_s5 + $0x70] sm:$0xff]  }
  0x1b   :  { %v1195_v44 = vld [vmem:[%s1700_s5 + $0xa8] sm:$0xff]  }
  0x1d   :  { %340 = vmatpush1.bf16.msra.mxu0 %v1164_v46  ;;  %393 = vmatpush1.bf16.msra.mxu1 %v1165_v47  ;;  %v1197_v46 = vld [vmem:[%s1700_s5 + $0xf0] sm:$0xff]  }
  0x1e   :  { %341 = vmatprep.subr.bf16.mxu0 %v1166_v48  ;;  %394 = vmatprep.subr.bf16.mxu1 %v1168_v49  ;;  %v1198_v47 = vld [vmem:[%s1700_s5 + $0x30] sm:$0xff]   ;;  %v1200_v49 = vld [vmem:[%s1700_s5 + $0x78] sm:$0xff]  }
  0x1f   :  { %v1199_v48 = vld [vmem:[%s1700_s5 + $0xb0] sm:$0xff]  }
  0x21   :  { %342 = vmatpush1.bf16.msra.mxu0 %v1170_v51  ;;  %395 = vmatpush1.bf16.msra.mxu1 %v1171_v52  ;;  %v1202_v51 = vld [vmem:[%s1700_s5 + $0x38] sm:$0xff]  }
  0x22   :  { %v1203_v52 = vld [vmem:[%s1700_s5 + $0xb8] sm:$0xff]  }
  0x8f   :  { %v39_v10 = vpop.xlane.xlu0 %38  ;;  %v43_v11 = vpop.xlane.xlu1 %42 }
  0x90   :  { %v47_v12 = vmul.f32 0.0078125, %v39_v10  ;;  %v49_v13 = vmul.f32 0.0078125, %v43_v11 }
  0x92   :  { %v1344_v14 = vsub.f32 %v32_v0, %v47_v12  ;;  %v1346_v15 = vsub.f32 %v34_v1, %v49_v13 }
  0x93   :  { %v41_v16 = vpop.xlane.xlu0 %40  ;;  %v45_v17 = vpop.xlane.xlu1 %44 }
  0x94   :  { %v48_v18 = vmul.f32 0.0078125, %v41_v16  ;;  %v55_v19 = vmul.f32 %v1344_v14, %v1344_v14  ;;  %v50_v20 = vmul.f32 0.0078125, %v45_v17  ;;  %v57_v23 = vmul.f32 %v1346_v15, %v1346_v15 }
  0x96   :  { %v1350_v21 = vsub.f32 %v33_v2, %v48_v18  ;;  %59 = vadd.xlane.f32.xlu0 %v55_v19  ;;  %v1352_v22 = vsub.f32 %v35_v3, %v50_v20  ;;  %v997_v3 = vld [vmem:[%s1696_s1] ss:$0 sm:$0xff] }
  0x98   :  { %v56_v24 = vmul.f32 %v1350_v21, %v1350_v21  ;;  %v58_v25 = vmul.f32 %v1352_v22, %v1352_v22 }
  0x9a   :  { %63 = vadd.xlane.f32.xlu0 %v57_v23  ;;  %61 = vadd.xlane.f32.xlu1 %v56_v24  ;;  %v1172_v23 = vld [vmem:[%s1700_s5 + $0x40] sm:$0xff]  }
  0x9b   :  { %1064 = vmatprep.subr.bf16.mxu0 %v1172_v23  ;;  %v1175_v24 = vld [vmem:[%s1700_s5 + $0x80] sm:$0xff]  }
  0x9e   :  { %65 = vadd.xlane.f32.xlu1 %v58_v25  ;;  %v1176_v25 = vld [vmem:[%s1700_s5 + $0x48] sm:$0xff]  }
 0x123   :  { %v60_v53 = vpop.xlane.xlu0 %59 }
 0x124   :  { %v67_v54 = vmul.f32 0.0078125, %v60_v53  ;;  %v147_v53 = vlaneseq }
 0x126   :  { %v71_v55 = vadd.f32 1e-05, %v67_v54  ;;  %v148_v54 = vshrl.u32 %v147_v53, 7 }
 0x127   :  { %v62_v56 = vpop.xlane.xlu1 %61  ;;  %v64_v57 = vpop.xlane.xlu0 %63 }
 0x128   :  { %1204 = vrsqrt.f32 %v71_v55  ;;  %v68_v58 = vmul.f32 0.0078125, %v62_v56  ;;  %v69_v59 = vmul.f32 0.0078125, %v64_v57  ;;  %v149_v55 = vsub.s32 0, %v148_v54  ;;  %v145_v57 = vld [vmem:[%s1699_s4] sm:$0xf] }
 0x129   :  { %v157_v56 = vsub.s32 2, %v148_v54 }
 0x12a   :  { %v72_v60 = vadd.f32 1e-05, %v68_v58  ;;  %v73_v61 = vadd.f32 1e-05, %v69_v59  ;;  %v153_v58 = vsub.s32 1, %v148_v54  ;;  %v1547_v59 = vrot.slane %v145_v57, %v149_v55 }
 0x12b   :  { %v66_v62 = vpop.xlane.xlu1 %65 }
 0x12c   :  { %1206 = vrsqrt.f32 %v72_v60  ;;  %v70_v63 = vmul.f32 0.0078125, %v66_v62  ;;  %v1549_v60 = vrot.slane %v145_v57, %v157_v56 }
 0x12d   :  { %1208 = vrsqrt.f32 %v73_v61  ;;  %v161_v61 = vsub.s32 3, %v148_v54 }
 0x12e   :  { %v74_v0 = vadd.f32 1e-05, %v70_v63 }
 0x130   :  { %1210 = vrsqrt.f32 %v74_v0  ;;  %v1551_v0 = vrot.slane %v145_v57, %v153_v58 }
 0x132   :  { %v1205_v1 = vpop.eup %1204 }
 0x133   :  { %v79_v2 = vmul.f32 %v1205_v1, %v1344_v14 }
 0x135   :  { %v89_v6 = vmul.f32 %v997_v3, %v79_v2 }
 0x136   :  { %v1207_v4 = vpop.eup %1206 }
 0x137   :  { %v80_v5 = vmul.f32 %v1207_v4, %v1350_v21  ;;  %v1209_v7 = vpop.eup %1208  ;;  %v99_v11 = vadd.f32 %v998_v8, %v89_v6 }
 0x138   :  { %v81_v13 = vmul.f32 %v1209_v7, %v1346_v15  ;;  %v1173_v15 = vld [vmem:[%s1700_s5 + $0xc0] sm:$0xff]  }
 0x139   :  { %v90_v9 = vmul.f32 %v997_v3, %v80_v5  ;;  %1092 = vmatprep.subr.bf16.mxu1 %v1173_v15  ;;  %v1555_v5 = vrot.slane %v145_v57, %v161_v61 }
 0x13a   :  { %v1211_v10 = vpop.eup %1210  ;;  %v91_v18 = vmul.f32 %v997_v3, %v81_v13 }
 0x13b   :  { %v100_v12 = vadd.f32 %v998_v8, %v90_v9  ;;  %v82_v14 = vmul.f32 %v1211_v10, %v1352_v22  ;;  %v1174_v22 = vld [vmem:[%s1700_s5] sm:$0xff]  }
 0x13c   :  { %v101_v20 = vadd.f32 %v998_v8, %v91_v18 }
 0x13d   :  { %v103_v16 = vpack.c.bf16 %v100_v12, %v99_v11  ;;  %v92_v17 = vmul.f32 %v997_v3, %v82_v14 }
 0x13f   :  { %360 = vmatmul.mubr.bf16.vlgmr.msra.gmra.mrb[0].mxu0 %v103_v16  ;;  %413 = vmatmul.mubr.bf16.vlgmr.msra.gmra.mrb[0].mxu1 %v103_v16  ;;  %v102_v19 = vadd.f32 %v998_v8, %v92_v17 }
 0x140   :  { %369 = vmatprep.mubr.bf16.mxu0 %v1270_v50  ;;  %422 = vmatprep.mubr.bf16.mxu1 %v1270_v50  ;;  %v1201_v50 = vld [vmem:[%s1700_s5 + $0xf8] sm:$0xff]  }
 0x141   :  { %v104_v21 = vpack.c.bf16 %v102_v19, %v101_v20  ;;  %1065 = vmatpush3.bf16.msra.mxu0 %v1174_v22  ;;  %1093 = vmatpush3.bf16.msra.mxu1 %v1175_v24 }
 0x142   :  { %1066 = vmatprep.subr.bf16.mxu0 %v1176_v25  ;;  %1094 = vmatprep.subr.bf16.mxu1 %v1177_v26 }
 0x145   :  { %1067 = vmatpush3.bf16.msra.mxu0 %v1178_v27  ;;  %1095 = vmatpush3.bf16.msra.mxu1 %v1179_v28 }
 0x146   :  { %1068 = vmatprep.subr.bf16.mxu0 %v1180_v29  ;;  %1096 = vmatprep.subr.bf16.mxu1 %v1181_v30 }
 0x147   :  { %370 = vmatmul.mubr.bf16.gmra.mrb[4].mxu0 %v104_v21  ;;  %423 = vmatmul.mubr.bf16.gmra.mrb[4].mxu1 %v104_v21 }
 0x149   :  { %1069 = vmatpush3.bf16.msra.mxu0 %v1182_v31  ;;  %1097 = vmatpush3.bf16.msra.mxu1 %v1183_v32 }
 0x14a   :  { %1070 = vmatprep.subr.bf16.mxu0 %v1184_v33  ;;  %1098 = vmatprep.subr.bf16.mxu1 %v1185_v34 }
 0x14d   :  { %1071 = vmatpush3.bf16.msra.mxu0 %v1186_v35  ;;  %1099 = vmatpush3.bf16.msra.mxu1 %v1187_v36 }
 0x14e   :  { %1072 = vmatprep.subr.bf16.mxu0 %v1188_v37  ;;  %1100 = vmatprep.subr.bf16.mxu1 %v1189_v38 }
 0x151   :  { %1073 = vmatpush3.bf16.msra.mxu0 %v1190_v39  ;;  %1101 = vmatpush3.bf16.msra.mxu1 %v1191_v40 }
 0x152   :  { %1074 = vmatprep.subr.bf16.mxu0 %v1192_v41  ;;  %1102 = vmatprep.subr.bf16.mxu1 %v1193_v42 }
 0x155   :  { %1075 = vmatpush3.bf16.msra.mxu0 %v1194_v43  ;;  %1103 = vmatpush3.bf16.msra.mxu1 %v1195_v44 }
 0x156   :  { %1076 = vmatprep.subr.bf16.mxu0 %v1196_v45  ;;  %1104 = vmatprep.subr.bf16.mxu1 %v1197_v46 }
 0x159   :  { %1077 = vmatpush3.bf16.msra.mxu0 %v1198_v47  ;;  %1105 = vmatpush3.bf16.msra.mxu1 %v1199_v48 }
 0x15a   :  { %1078 = vmatprep.subr.bf16.mxu0 %v1200_v49  ;;  %1106 = vmatprep.subr.bf16.mxu1 %v1201_v50 }
 0x15d   :  { %1079 = vmatpush3.bf16.msra.mxu0 %v1202_v51  ;;  %1107 = vmatpush3.bf16.msra.mxu1 %v1203_v52 }
 0x212   :  { %v361_v62 = vpop.f32.mrb[0].mxu0  ;;  %v414_v63 = vpop.f32.mrb[0].mxu1 }
 0x213   :  { %v362_v1 = vadd.f32 %v361_v62, %v1547_v59  ;;  %v415_v2 = vadd.f32 %v414_v63, %v1549_v60  ;;  %v363_v3 = vpop.f32.mrb[1].mxu0  ;;  %v416_v4 = vpop.f32.mrb[1].mxu1 }
 0x214   :  { %v365_v6 = vpop.f32.mrb[2].mxu0  ;;  %v418_v7 = vpop.f32.mrb[2].mxu1  ;;  %v1558_v10 = vadd.f32 %v363_v3, %v1551_v0  ;;  %v1568_v19 = vadd.f32 %v416_v4, %v1555_v5 }
 0x215   :  { %v449_v8 = vmul.f32 0.044715, %v362_v1  ;;  %v451_v9 = vmul.f32 0.044715, %v415_v2  ;;  %v366_v11 = vadd.f32 %v365_v6, %v1547_v59  ;;  %v1562_v12 = vadd.f32 %v418_v7, %v1549_v60  ;;  %v367_v13 = vpop.f32.mrb[3].mxu0  ;;  %v420_v14 = vpop.f32.mrb[3].mxu1 }
 0x216   :  { %v1565_v18 = vadd.f32 %v367_v13, %v1551_v0  ;;  %v1571_v21 = vadd.f32 %v420_v14, %v1555_v5  ;;  %v1573_v23 = vmul.f32 0.5, %v362_v1  ;;  %v450_v25 = vmul.f32 0.044715, %v1558_v10 }
 0x217   :  { %v465_v16 = vmul.f32 %v449_v8, %v362_v1  ;;  %v467_v17 = vmul.f32 %v451_v9, %v415_v2  ;;  %v453_v20 = vmul.f32 0.044715, %v366_v11  ;;  %v455_v24 = vmul.f32 0.044715, %v1562_v12 }
 0x218   :  { %v454_v27 = vmul.f32 0.044715, %v1565_v18  ;;  %v1578_v31 = vmul.f32 0.5, %v415_v2  ;;  %v452_v36 = vmul.f32 0.044715, %v1568_v19  ;;  %v466_v47 = vmul.f32 %v450_v25, %v1558_v10 }
 0x219   :  { %v481_v15 = vmul.f32 %v465_v16, %v362_v1  ;;  %v483_v22 = vmul.f32 %v467_v17, %v415_v2  ;;  %v469_v26 = vmul.f32 %v453_v20, %v366_v11  ;;  %v471_v33 = vmul.f32 %v455_v24, %v1562_v12 }
 0x21a   :  { %v371_v28 = vpop.f32.mrb[4].mxu0  ;;  %v424_v29 = vpop.f32.mrb[4].mxu1  ;;  %v456_v38 = vmul.f32 0.044715, %v1571_v21  ;;  %v470_v49 = vmul.f32 %v454_v27, %v1565_v18  ;;  %v468_v54 = vmul.f32 %v452_v36, %v1568_v19  ;;  %v482_v63 = vmul.f32 %v466_v47, %v1558_v10 }
 0x21b   :  { %v497_v30 = vadd.f32 %v481_v15, %v362_v1  ;;  %v499_v32 = vadd.f32 %v483_v22, %v415_v2  ;;  %v373_v34 = vpop.f32.mrb[5].mxu0  ;;  %v426_v35 = vpop.f32.mrb[5].mxu1  ;;  %v485_v37 = vmul.f32 %v469_v26, %v366_v11  ;;  %v1584_v39 = vadd.f32 %v371_v28, %v1547_v59 }
 0x21c   :  { %v375_v40 = vpop.f32.mrb[6].mxu0  ;;  %v428_v41 = vpop.f32.mrb[6].mxu1  ;;  %v487_v44 = vmul.f32 %v471_v33, %v1562_v12  ;;  %v1590_v50 = vadd.f32 %v424_v29, %v1549_v60  ;;  %v1595_v53 = vadd.f32 %v373_v34, %v1551_v0  ;;  %v472_v56 = vmul.f32 %v456_v38, %v1571_v21 }
 0x21d   :  { %v513_v42 = vmul.f32 0.7978846, %v497_v30  ;;  %v515_v43 = vmul.f32 0.7978846, %v499_v32  ;;  %v377_v45 = vpop.f32.mrb[7].mxu0  ;;  %v430_v46 = vpop.f32.mrb[7].mxu1  ;;  %v501_v48 = vadd.f32 %v485_v37, %v366_v11  ;;  %v1601_v61 = vadd.f32 %v426_v35, %v1555_v5 }
 0x21e   :  { %v503_v51 = vadd.f32 %v487_v44, %v1562_v12  ;;  %v457_v52 = vmul.f32 0.044715, %v1584_v39  ;;  %v458_v58 = vmul.f32 0.044715, %v1595_v53  ;;  %v1604_v62 = vadd.f32 %v375_v40, %v1547_v59 }
 0x21f   :  { %1212 = vtanh.f32 %v513_v42  ;;  %v517_v55 = vmul.f32 0.7978846, %v501_v48  ;;  %v486_v1 = vmul.f32 %v470_v49, %v1565_v18  ;;  %v1609_v2 = vadd.f32 %v428_v41, %v1549_v60 }
 0x220   :  { %1214 = vtanh.f32 %v515_v43  ;;  %v519_v57 = vmul.f32 0.7978846, %v503_v51  ;;  %v473_v3 = vmul.f32 %v457_v52, %v1584_v39  ;;  %v459_v4 = vmul.f32 0.044715, %v1590_v50 }
 0x221   :  { %1216 = vtanh.f32 %v517_v55  ;;  %v460_v6 = vmul.f32 0.044715, %v1601_v61  ;;  %v437_v7 = vmul.f32 0.5, %v366_v11  ;;  %v474_v8 = vmul.f32 %v458_v58, %v1595_v53 }
 0x222   :  { %1218 = vtanh.f32 %v519_v57  ;;  %v1616_v59 = vadd.f32 %v377_v45, %v1551_v0  ;;  %v1619_v9 = vadd.f32 %v430_v46, %v1555_v5  ;;  %v484_v13 = vmul.f32 %v468_v54, %v1568_v19 }
 0x223   :  { %v488_v60 = vmul.f32 %v472_v56, %v1571_v21  ;;  %v461_v14 = vmul.f32 0.044715, %v1604_v62  ;;  %v463_v16 = vmul.f32 0.044715, %v1609_v2  ;;  %v476_v17 = vmul.f32 %v460_v6, %v1601_v61 }
 0x224   :  { %v462_v11 = vmul.f32 0.044715, %v1616_v59  ;;  %v464_v20 = vmul.f32 0.044715, %v1619_v9  ;;  %v498_v0 = vadd.f32 %v482_v63, %v1558_v10  ;;  %v439_v15 = vmul.f32 0.5, %v1562_v12 }
 0x225   :  { %v489_v5 = vmul.f32 %v473_v3, %v1584_v39  ;;  %v475_v22 = vmul.f32 %v459_v4, %v1590_v50  ;;  %v502_v24 = vadd.f32 %v486_v1, %v1565_v18  ;;  %v490_v25 = vmul.f32 %v474_v8, %v1595_v53 }
 0x226   :  { %v478_v26 = vmul.f32 %v462_v11, %v1616_v59  ;;  %v480_v27 = vmul.f32 %v464_v20, %v1619_v9  ;;  %v514_v28 = vmul.f32 0.7978846, %v498_v0  ;;  %v477_v30 = vmul.f32 %v461_v14, %v1604_v62 }
 0x227   :  { %v518_v32 = vmul.f32 0.7978846, %v502_v24  ;;  %v500_v33 = vadd.f32 %v484_v13, %v1568_v19  ;;  %v504_v12 = vadd.f32 %v488_v60, %v1571_v21  ;;  %v492_v35 = vmul.f32 %v476_v17, %v1601_v61 }
 0x228   :  { %v479_v36 = vmul.f32 %v463_v16, %v1609_v2  ;;  %v494_v37 = vmul.f32 %v478_v26, %v1616_v59  ;;  %1220 = vtanh.f32 %v514_v28  ;;  %v491_v43 = vmul.f32 %v475_v22, %v1590_v50 }
 0x229   :  { %v1213_v29 = vpop.eup %1212  ;;  %1222 = vtanh.f32 %v518_v32  ;;  %v516_v38 = vmul.f32 0.7978846, %v500_v33  ;;  %v520_v40 = vmul.f32 0.7978846, %v504_v12  ;;  %v496_v44 = vmul.f32 %v480_v27, %v1619_v9 }
 0x22a   :  { %v1215_v34 = vpop.eup %1214  ;;  %v545_v41 = vadd.f32 1.0, %v1213_v29  ;;  %v506_v46 = vadd.f32 %v490_v25, %v1595_v53  ;;  %v493_v48 = vmul.f32 %v477_v30, %v1604_v62  ;;  %v510_v51 = vadd.f32 %v494_v37, %v1616_v59 }
 0x22b   :  { %v1217_v42 = vpop.eup %1216  ;;  %v547_v45 = vadd.f32 1.0, %v1215_v34  ;;  %1224 = vtanh.f32 %v516_v38  ;;  %v495_v52 = vmul.f32 %v479_v36, %v1609_v2  ;;  %v508_v63 = vadd.f32 %v492_v35, %v1601_v61 }
 0x22c   :  { %v1219_v47 = vpop.eup %1218  ;;  %v549_v49 = vadd.f32 1.0, %v1217_v42  ;;  %1226 = vtanh.f32 %v520_v40  ;;  %v522_v55 = vmul.f32 0.7978846, %v506_v46  ;;  %v561_v56 = vmul.f32 %v545_v41, %v1573_v23 }
 0x22d   :  { %v551_v54 = vadd.f32 1.0, %v1219_v47  ;;  %v526_v58 = vmul.f32 0.7978846, %v510_v51  ;;  %v563_v1 = vmul.f32 %v547_v45, %v1578_v31  ;;  %v512_v4 = vadd.f32 %v496_v44, %v1619_v9 }
 0x22e   :  { %v565_v57 = vmul.f32 %v549_v49, %v437_v7  ;;  %1228 = vtanh.f32 %v522_v55  ;;  %v524_v8 = vmul.f32 0.7978846, %v508_v63  ;;  %v505_v14 = vadd.f32 %v489_v5, %v1584_v39 }
 0x22f   :  { %v567_v3 = vmul.f32 %v551_v54, %v439_v15  ;;  %1230 = vtanh.f32 %v526_v58  ;;  %v528_v60 = vmul.f32 0.7978846, %v512_v4  ;;  %v509_v16 = vadd.f32 %v493_v48, %v1604_v62 }
 0x230   :  { %v581_v6 = vpack.c.bf16 %v565_v57, %v561_v56  ;;  %1232 = vtanh.f32 %v524_v8  ;;  %v507_v23 = vadd.f32 %v491_v43, %v1590_v50  ;;  %v521_v17 = vmul.f32 0.7978846, %v505_v14 }
 0x231   :  { %v583_v13 = vpack.c.bf16 %v567_v3, %v563_v1  ;;  %1234 = vtanh.f32 %v528_v60  ;;  %v525_v31 = vmul.f32 0.7978846, %v509_v16  ;;  %v511_v11 = vadd.f32 %v495_v52, %v1609_v2 }
 0x232   :  { %v1221_v7 = vpop.eup %1220  ;;  %v434_v0 = vmul.f32 0.5, %v1558_v10  ;;  %v523_v22 = vmul.f32 0.7978846, %v507_v23  ;;  %v438_v24 = vmul.f32 0.5, %v1565_v18  ;;  %1236 = vtanh.f32 %v521_v17 }
 0x233   :  { %v1223_v20 = vpop.eup %1222  ;;  %v546_v15 = vadd.f32 1.0, %v1221_v7  ;;  %v527_v5 = vmul.f32 0.7978846, %v511_v11  ;;  %1238 = vtanh.f32 %v525_v31  ;;  %v436_v32 = vmul.f32 0.5, %v1568_v19 }
 0x234   :  { %v550_v25 = vadd.f32 1.0, %v1223_v20  ;;  %1240 = vtanh.f32 %v523_v22  ;;  %v440_v33 = vmul.f32 0.5, %v1571_v21  ;;  %v442_v38 = vmul.f32 0.5, %v1595_v53 }
 0x235   :  { %v1225_v26 = vpop.eup %1224  ;;  %v562_v28 = vmul.f32 %v546_v15, %v434_v0  ;;  %1242 = vtanh.f32 %v527_v5  ;;  %v446_v40 = vmul.f32 0.5, %v1616_v59  ;;  %v444_v46 = vmul.f32 0.5, %v1601_v61 }
 0x236   :  { %v1227_v27 = vpop.eup %1226  ;;  %v566_v29 = vmul.f32 %v550_v25, %v438_v24  ;;  %v548_v30 = vadd.f32 1.0, %v1225_v26  ;;  %v448_v47 = vmul.f32 0.5, %v1619_v9  ;;  %v441_v56 = vmul.f32 0.5, %v1584_v39  ;;  %v1244_v26 = vld [vmem:[%s1695_s0] sm:$0xff] }
 0x237   :  { %v552_v12 = vadd.f32 1.0, %v1227_v27  ;;  %v445_v57 = vmul.f32 0.5, %v1604_v62  ;;  %v443_v61 = vmul.f32 0.5, %v1590_v50 }
 0x238   :  { %v1229_v10 = vpop.eup %1228  ;;  %v582_v34 = vpack.c.bf16 %v566_v29, %v562_v28  ;;  %v564_v18 = vmul.f32 %v548_v30, %v436_v32  ;;  %v1245_v32 = vld [vmem:[%s1695_s0 + $0x8] sm:$0xff] }
 0x239   :  { %v1231_v35 = vpop.eup %1230  ;;  %v568_v36 = vmul.f32 %v552_v12, %v440_v33  ;;  %v554_v37 = vadd.f32 1.0, %v1229_v10 }
 0x23a   :  { %877 = vmatprep.mubr.bf16.mxu0 %v582_v34  ;;  %v558_v41 = vadd.f32 1.0, %v1231_v35  ;;  %v1233_v42 = vpop.eup %1232 }
 0x23b   :  { %v584_v43 = vpack.c.bf16 %v568_v36, %v564_v18  ;;  %878 = vmatmul.mubr.bf16.vlgmr.msra.gmra.mrb[8].mxu0 %v581_v6  ;;  %v1235_v19 = vpop.eup %1234  ;;  %v570_v44 = vmul.f32 %v554_v37, %v442_v38  ;;  %v556_v45 = vadd.f32 1.0, %v1233_v42  ;;  %v447_v6 = vmul.f32 0.5, %v1609_v2  ;;  %v1063_v2 = vld [vmem:[%s1701_s6] ss:$0 sm:$0xff] }
 0x23c   :  { %v574_v21 = vmul.f32 %v558_v41, %v446_v40  ;;  %v560_v48 = vadd.f32 1.0, %v1235_v19  ;;  %v1237_v49 = vpop.eup %1236 }
 0x23d   :  { %926 = vmatprep.mubr.bf16.mxu1 %v584_v43  ;;  %v1239_v53 = vpop.eup %1238  ;;  %v572_v52 = vmul.f32 %v556_v45, %v444_v46  ;;  %v553_v54 = vadd.f32 1.0, %v1237_v49  ;;  %v971_v43 = vld [vmem:[%s1695_s0 + $0x10] sm:$0xff] }
 0x23e   :  { %927 = vmatmul.mubr.bf16.vlgmr.msra.gmra.mrb[8].mxu1 %v583_v13  ;;  %v586_v51 = vpack.c.bf16 %v574_v21, %v570_v44  ;;  %v576_v59 = vmul.f32 %v560_v48, %v448_v47  ;;  %v1241_v55 = vpop.eup %1240  ;;  %v557_v58 = vadd.f32 1.0, %v1239_v53  ;;  %v972_v21 = vld [vmem:[%s1695_s0 + $0x18] sm:$0xff] }
 0x23f   :  { %v1243_v63 = vpop.eup %1242  ;;  %v555_v9 = vadd.f32 1.0, %v1241_v55  ;;  %v569_v3 = vmul.f32 %v553_v54, %v441_v56 }
 0x240   :  { %885 = vmatprep.mubr.bf16.mxu0 %v586_v51  ;;  %v588_v1 = vpack.c.bf16 %v576_v59, %v572_v52  ;;  %v573_v4 = vmul.f32 %v557_v58, %v445_v57  ;;  %v559_v8 = vadd.f32 1.0, %v1243_v63 }
 0x241   :  { %v571_v60 = vmul.f32 %v555_v9, %v443_v61 }
 0x242   :  { %934 = vmatprep.mubr.bf16.mxu1 %v588_v1  ;;  %v585_v13 = vpack.c.bf16 %v573_v4, %v569_v3  ;;  %v575_v14 = vmul.f32 %v559_v8, %v447_v6 }
 0x244   :  { %886 = vmatmul.mubr.bf16.gmra.mrb[12].mxu0 %v585_v13  ;;  %v587_v16 = vpack.c.bf16 %v575_v14, %v571_v60 }
 0x246   :  { %935 = vmatmul.mubr.bf16.gmra.mrb[12].mxu1 %v587_v16 }
 0x30e   :  { %v1080_v39 = vpop.f32.mrb[8].mxu0 }
 0x30f   :  { %v1081_v62 = vpop.f32.mrb[9].mxu0 }
 0x310   :  { %v1082_v23 = vadd.f32 %v1081_v62, %v1080_v39  ;;  %v1083_v7 = vpop.f32.mrb[10].mxu0 }
 0x311   :  { %v1108_v17 = vpop.f32.mrb[8].mxu1  ;;  %v1084_v31 = vpop.f32.mrb[11].mxu0 }
 0x312   :  { %v1109_v50 = vpop.f32.mrb[9].mxu1  ;;  %v1085_v11 = vadd.f32 %v1084_v31, %v1083_v7 }
 0x313   :  { %v1110_v20 = vadd.f32 %v1109_v50, %v1108_v17  ;;  %v1111_v0 = vpop.f32.mrb[10].mxu1 }
 0x314   :  { %v1112_v15 = vpop.f32.mrb[11].mxu1 }
 0x315   :  { %v929_v22 = vadd.f32 %v1110_v20, %v1082_v23  ;;  %v1113_v24 = vadd.f32 %v1112_v15, %v1111_v0 }
 0x317   :  { %v965_v25 = vadd.f32 %v1063_v2, %v929_v22  ;;  %v932_v5 = vadd.f32 %v1113_v24, %v1085_v11  ;;  %v1086_v29 = vpop.f32.mrb[12].mxu0 }
 0x318   :  { %v1087_v30 = vpop.f32.mrb[13].mxu0 }
 0x319   :  { %v973_v27 = vadd.f32 %v1244_v26, %v965_v25  ;;  %v966_v28 = vadd.f32 %v1063_v2, %v932_v5  ;;  %v1114_v12 = vpop.f32.mrb[12].mxu1  ;;  %v1088_v10 = vadd.f32 %v1087_v30, %v1086_v29  ;;  %v1089_v34 = vpop.f32.mrb[14].mxu0 }
 0x31a   :  { %v1115_v35 = vpop.f32.mrb[13].mxu1  ;;  %v1090_v18 = vpop.f32.mrb[15].mxu0 }
 0x31b   :  { %977 = vst [vmem:[#allocation4] sm:$0xff] %v973_v27  ;;  %v974_v33 = vadd.f32 %v1245_v32, %v966_v28  ;;  %v1116_v36 = vadd.f32 %v1115_v35, %v1114_v12  ;;  %v1117_v37 = vpop.f32.mrb[14].mxu1  ;;  %v1091_v38 = vadd.f32 %v1090_v18, %v1089_v34 }
 0x31c   :  { %v1118_v40 = vpop.f32.mrb[15].mxu1 }
 0x31d   :  { %978 = vst [vmem:[#allocation4 + $0x8] sm:$0xff] %v974_v33  ;;  %v937_v41 = vadd.f32 %v1116_v36, %v1088_v10  ;;  %v1119_v42 = vadd.f32 %v1118_v40, %v1117_v37 }
 0x31f   :  { %v967_v19 = vadd.f32 %v1063_v2, %v937_v41  ;;  %v940_v44 = vadd.f32 %v1119_v42, %v1091_v38 }
 0x321   :  { %v975_v45 = vadd.f32 %v971_v43, %v967_v19  ;;  %v968_v46 = vadd.f32 %v1063_v2, %v940_v44 }
 0x323   :  { %979 = vst [vmem:[#allocation4 + $0x10] sm:$0xff] %v975_v45  ;;  %v976_v47 = vadd.f32 %v972_v21, %v968_v46 }
 0x325   :  { %980 = vst [vmem:[#allocation4 + $0x18] sm:$0xff] %v976_v47 }
 0x326   :  { %1257 = shalt.err (!%p1254_p4)
}
 0x327   :  { %s1258_s1 = scalar_lea.hbm %s1702_s7, 512 }
 0x328   :  { %p1259_p5 = scmp.ne.s32.totalorder %s1702_s7, %s1258_s1  ;;  %p1262_p6 = scmp.lt.u32.totalorder %s1258_s1, %s1702_s7 }
 0x32a   :  { %p1264_p7 = pnand %p1262_p6, %p1259_p5 }
 0x32c   :  { %1267 = shalt.err (!%p1264_p7)
}
 0x32d   :  { %s1272_s9 = smov 128   ;;  %s1273_s10 = smov 8  }
 0x32e   :  { %992 = dma.vmem_to_hbm [thread:$0]  %s987_s3, 512, %s1702_s7, [#allocation5], %s1272_s9, %s1272_s9, %s1273_s10  }
 0x32f   :  { %1268 = dma.done.wait [#allocation5], 512  }
 0x330   :  { %1269 = vsyncadd [#allocation5], 4294966784 }
 0x331   :  { %996 = vsyncpa [#allocation5], 1 }

</bundles_post_ra>
